<compile_context>
chip_gen: v7x
topology: tpu7x:2x2x1
jax: 0.10.0
libtpu: 0.0.40
codegen_flags: <defaults>
</compile_context>

<pallas_src>
import functools

import jax
import jax.numpy as jnp
import numpy as np
from jax.experimental import pallas as pl
from jax.experimental.pallas import tpu as pltpu

_LANE = 128


def _cdiv(a, b):
    return -(-a // b)


def _msfeat_kernel(bias_ref, w1_ref, w2_ref, w3_ref, w4_ref,   # SMEM (scalar prefetch)
                   mask_ref,                                   # (HG, LS) VMEM, f32 0/1
                   x_ref,                                      # (1, Cin, HS, LS) VMEM
                   out_ref,                                    # (1, 4C, HG, LS)  VMEM
                   pad_ref,                                    # (C, HS, LS) VMEM scratch
                   *, C, Cin, H, LS):
    HG = H + 8           # accumulation / output grid rows
    HS = H + 12          # input-slab rows (2 extra guard rows on each side)

    mask = mask_ref[...]                      # 1.0 inside each image's interior

    def lane_shift(slab, dx):
        # slab[:, j + dx].  Wrap-around only brings zero guard columns in and
        # only affects positions outside every image interior (masked/cropped).
        if dx == 0:
            return slab
        return pltpu.roll(slab, (-dx) % LS, axis=1)

    def load_x(ic, r):
        return x_ref[0, ic, r:r + HG, :]      # lane offset 0, full width

    def load_pad(ic, r):
        return pad_ref[ic, r:r + HG, :]

    # TODO(synk): for channel counts well beyond C=2/Cin=4 switch these fully
    # unrolled loops to lax.fori_loop with dynamic SMEM weight indexing and/or
    # an MXU (jnp.dot over the 9*Cin taps) formulation.
    def conv_pass(load_row, n_in, w_ref, oc_base, dil):
        acc = [jnp.full((HG, LS), bias_ref[oc_base + oc], jnp.float32)
               for oc in range(C)]
        for ic in range(n_in):
            for ky in range(3):
                dy = dil * (ky - 1)
                row = load_row(ic, 2 + dy)                     # (HG, LS)
                for kx in range(3):
                    dx = dil * (kx - 1)
                    win = lane_shift(row, dx)                  # reused over oc
                    base = (ic * 3 + ky) * 3 + kx
                    for oc in range(C):
                        acc[oc] = acc[oc] + w_ref[oc * n_in * 9 + base] * win
        return acc

    zrow = jnp.zeros((2, LS), jnp.float32)

    def finish_direct(acc, oc_base):
        # ReLU + zero outside each image interior: these slabs are exactly the
        # zero-padded (pad=2) inputs of the chained conv.  Stage them in
        # pad_ref (with 2 extra zero guard rows top/bottom) for the row taps.
        for oc in range(C):
            c = jnp.maximum(acc[oc], 0.0) * mask
            out_ref[0, oc_base + oc, :, :] = c
            pad_ref[oc, 0:2, :] = zrow
            pad_ref[oc, 2:2 + HG, :] = c
            pad_ref[oc, 2 + HG:HS, :] = zrow

    def finish_chained(acc, oc_base):
        for oc in range(C):
            out_ref[0, oc_base + oc, :, :] = jnp.maximum(acc[oc], 0.0)

    # Phase A: conv1 (dil=1 from the input) -> conv4 (dil=2 on conv1).
    finish_direct(conv_pass(load_x, Cin, w1_ref, 0 * C, 1), 0 * C)
    finish_chained(conv_pass(load_pad, C, w4_ref, 3 * C, 2), 3 * C)

    # Phase B: conv2 (dil=2 from the input) -> conv3 (dil=1 on conv2).
    finish_direct(conv_pass(load_x, Cin, w2_ref, 1 * C, 2), 1 * C)
    finish_chained(conv_pass(load_pad, C, w3_ref, 2 * C, 1), 2 * C)


def _pick_bt(B, Cin, H, W, C, *, vmem_budget_bytes=40 << 20):
    """Pick how many images to pack along the lane axis (lane utilization)."""
    Wp = W + 4
    HS, HG = H + 12, H + 8
    best_bt, best_eff = 1, -1.0
    for bt in range(1, B + 1):
        LS = _cdiv(bt * Wp + 8, _LANE) * _LANE
        nb = _cdiv(B, bt)
        # double-buffered input + output blocks, mask, pad scratch (f32)
        need = 4 * LS * (2 * Cin * HS + 2 * 4 * C * HG + C * HS + 2 * HG)
        if need > vmem_budget_bytes and bt > 1:
            continue
        eff = (B * W) / (nb * LS)          # useful lanes / lanes paid for
        if nb >= 2:
            eff *= 1.05                    # let both v7x TensorCores participate
        if eff > best_eff:
            best_bt, best_eff = bt, eff
    return best_bt


def msfeat2d(x, params):
    """x: (B, Cin, H, W) f32 -> (B, 4*C, H, W) f32."""
    B, Cin, H, W = x.shape
    C = params["w1"].shape[0]
    Hp, Wp = H + 4, W + 4
    HS, HG = H + 12, H + 8

    # TODO(synk): for very large H*W add a row-band grid axis so blocks fit the
    # v7x 64 MiB VMEM, and fold this input repack (and the output unpack) into
    # the kernel via manual DMA to avoid the extra HBM round trip (v5e).
    Bt = _pick_bt(B, Cin, H, W, C)
    NB = _cdiv(B, Bt)
    Bp = NB * Bt
    L = Bt * Wp
    LS = _cdiv(L + 8, _LANE) * _LANE           # lane extent: multiple of 128

    xf = x.astype(jnp.float32)
    if Bp != B:                                # pad the batch with dummy images
        xf = jnp.concatenate(
            [xf, jnp.zeros((Bp - B, Cin, H, W), jnp.float32)], axis=0)

    # Per-image pad=2, pack Bt images along lanes, add the zero guard ring and
    # round the lane extent up to a multiple of 128.
    xt = xf.reshape(NB, Bt, Cin, H, W)
    xp = jnp.pad(xt, ((0, 0), (0, 0), (0, 0), (2, 2), (2, 2)))     # (NB,Bt,Cin,Hp,Wp)
    xp = xp.transpose(0, 2, 3, 1, 4).reshape(NB, Cin, Hp, L)
    xs = jnp.pad(xp, ((0, 0), (0, 0), (4, 4), (4, LS - L - 4)))    # (NB,Cin,HS,LS)

    # Interior mask on the output grid (built once here, not per grid step).
    rows = jnp.arange(HG)
    cols = jnp.arange(LS)
    row_ok = (rows >= 4) & (rows < 4 + H)
    col_ok = jnp.zeros((LS,), bool)
    for b in range(Bt):
        lo = b * Wp + 6
        col_ok = col_ok | ((cols >= lo) & (cols < lo + W))
    mask = (row_ok[:, None] & col_ok[None, :]).astype(jnp.float32)  # (HG, LS)

    bias_all = jnp.concatenate(
        [params["b1"], params["b2"], params["b3"], params["b4"]]).astype(jnp.float32)
    w1f = params["w1"].reshape(-1).astype(jnp.float32)
    w2f = params["w2"].reshape(-1).astype(jnp.float32)
    w3f = params["w3"].reshape(-1).astype(jnp.float32)
    w4f = params["w4"].reshape(-1).astype(jnp.float32)

    kernel = functools.partial(_msfeat_kernel, C=C, Cin=Cin, H=H, LS=LS)

    block_bytes = 4 * LS * (2 * Cin * HS + 2 * 4 * C * HG + C * HS + 2 * HG)
    vmem_limit = min(64 << 20, max(32 << 20, int(block_bytes * 1.5) + (1 << 20)))

    out_packed = pl.pallas_call(
        kernel,
        out_shape=jax.ShapeDtypeStruct((NB, 4 * C, HG, LS), jnp.float32),
        grid_spec=pltpu.PrefetchScalarGridSpec(
            num_scalar_prefetch=5,
            grid=(NB,),
            in_specs=[
                pl.BlockSpec((HG, LS), lambda i, *_: (0, 0)),             # mask
                pl.BlockSpec((1, Cin, HS, LS), lambda i, *_: (i, 0, 0, 0)),
            ],
            out_specs=pl.BlockSpec((1, 4 * C, HG, LS),
                                   lambda i, *_: (i, 0, 0, 0)),
            scratch_shapes=[pltpu.VMEM((C, HS, LS), jnp.float32)],
        ),
        compiler_params=pltpu.CompilerParams(
            dimension_semantics=("parallel",),
            vmem_limit_bytes=vmem_limit),
    )(bias_all, w1f, w2f, w3f, w4f, mask, xs)

    # Unpack: rows [4:4+H], image b columns [b*Wp+6 : b*Wp+6+W]  (layout only).
    core = out_packed[:, :, 4:4 + H, 6:6 + L]                  # (NB, 4C, H, L)
    core = core.reshape(NB, 4 * C, H, Bt, Wp)[..., :W]
    out = core.transpose(0, 3, 1, 2, 4).reshape(Bp, 4 * C, H, W)
    return out[:B]


def init_params(key, in_channels, outchannel_ms=2):
    """Deterministic kaiming_normal_(fan_in, relu) weights, zero biases."""
    def kaiming(k, shape):
        fan_in = shape[1] * shape[2] * shape[3]
        std = float(np.sqrt(2.0 / fan_in))
        return jax.random.normal(k, shape, jnp.float32) * std

    k1, k2, k3, k4 = jax.random.split(key, 4)
    C = outchannel_ms
    return {
        "w1": kaiming(k1, (C, in_channels, 3, 3)), "b1": jnp.zeros((C,), jnp.float32),
        "w2": kaiming(k2, (C, in_channels, 3, 3)), "b2": jnp.zeros((C,), jnp.float32),
        "w3": kaiming(k3, (C, C, 3, 3)),           "b3": jnp.zeros((C,), jnp.float32),
        "w4": kaiming(k4, (C, C, 3, 3)),           "b4": jnp.zeros((C,), jnp.float32),
    }


def _reference(x, params):
    """Plain-JAX reference matching the PyTorch forward (for verification)."""
    def conv(inp, w, b, dil):
        out = jax.lax.conv_general_dilated(
            inp, w, window_strides=(1, 1),
            padding=((dil, dil), (dil, dil)),
            rhs_dilation=(dil, dil),
            dimension_numbers=("NCHW", "OIHW", "NCHW"))
        return jax.nn.relu(out + b[None, :, None, None])

    c1 = conv(x, params["w1"], params["b1"], 1)
    c2 = conv(x, params["w2"], params["b2"], 2)
    c3 = conv(c2, params["w3"], params["b3"], 1)
    c4 = conv(c1, params["w4"], params["b4"], 2)
    return jnp.concatenate([c1, c2, c3, c4], axis=1)


if __name__ == "__main__":
    key = jax.random.PRNGKey(0)
    kx, kp = jax.random.split(key)

    B, Cin, H, W = 2, 4, 16, 16
    outchannel_ms = 2

    x = jax.random.normal(kx, (B, Cin, H, W), jnp.float32)
    params = init_params(kp, Cin, outchannel_ms)

    out = jax.block_until_ready(msfeat2d(x, params))
    ref = jax.block_until_ready(_reference(x, params))

    np.testing.assert_allclose(np.asarray(out), np.asarray(ref), rtol=1e-4, atol=1e-4)
    assert out.shape == (B, 4 * outchannel_ms, H, W)

    print("KERNEL_OK")
</pallas_src>

<mosaic_0001>
module attributes {stable_mosaic.version = 11 : i64} {
  func.func @_msfeat_kernel(%arg0: i32, %arg1: memref<8xf32, #tpu.memory_space<smem>>, %arg2: memref<72xf32, #tpu.memory_space<smem>>, %arg3: memref<72xf32, #tpu.memory_space<smem>>, %arg4: memref<36xf32, #tpu.memory_space<smem>>, %arg5: memref<36xf32, #tpu.memory_space<smem>>, %arg6: memref<24x128xf32, #tpu.memory_space<vmem>>, %arg7: memref<1x4x28x128xf32, #tpu.memory_space<vmem>>, %arg8: memref<1x8x24x128xf32, #tpu.memory_space<vmem>>, %arg9: memref<2x28x128xf32, #tpu.memory_space<vmem>>) attributes {dimension_semantics = [#tpu.dimension_semantics<parallel>], iteration_bounds = array<i64: 1>, scalar_prefetch = 5 : i64, scratch_operands = 1 : i64, tpu.core_type = #tpu.core_type<tc>, window_params = [{pipeline_mode = #tpu.pipeline_mode<synchronous>, transform_indices = @transform_0, window_bounds = array<i64: 24, 128>}, {transform_indices = @transform_1, window_bounds = array<i64: 1, 4, 28, 128>}, {transform_indices = @transform_2, window_bounds = array<i64: 1, 8, 24, 128>}]} {
    %c0 = arith.constant 0 : index
    %c0_0 = arith.constant 0 : index
    %0 = vector.load %arg6[%c0, %c0_0] : memref<24x128xf32, #tpu.memory_space<vmem>>, vector<24x128xf32>
    %cst = arith.constant 0.000000e+00 : f32
    %1 = vector.broadcast %cst : f32 to vector<2x128xf32>
    %c0_1 = arith.constant 0 : index
    %2 = memref.load %arg1[%c0_1] : memref<8xf32, #tpu.memory_space<smem>>
    %3 = vector.broadcast %2 : f32 to vector<24x128xf32>
    %c1 = arith.constant 1 : index
    %4 = memref.load %arg1[%c1] : memref<8xf32, #tpu.memory_space<smem>>
    %5 = vector.broadcast %4 : f32 to vector<24x128xf32>
    %c0_2 = arith.constant 0 : index
    %c0_3 = arith.constant 0 : index
    %c1_4 = arith.constant 1 : index
    %c0_5 = arith.constant 0 : index
    %6 = vector.load %arg7[%c0_2, %c0_3, %c1_4, %c0_5] : memref<1x4x28x128xf32, #tpu.memory_space<vmem>>, vector<1x1x24x128xf32>
    %7 = vector.shape_cast %6 : vector<1x1x24x128xf32> to vector<24x128xf32>
    %c1_i32 = arith.constant 1 : i32
    %8 = tpu.dynamic_rotate %7 by %c1_i32 dim 1 : vector<24x128xf32>, i32 -> vector<24x128xf32>
    %c0_6 = arith.constant 0 : index
    %9 = memref.load %arg2[%c0_6] : memref<72xf32, #tpu.memory_space<smem>>
    %10 = vector.broadcast %9 : f32 to vector<24x128xf32>
    %11 = arith.mulf %10, %8 : vector<24x128xf32>
    %12 = arith.addf %3, %11 : vector<24x128xf32>
    %c36 = arith.constant 36 : index
    %13 = memref.load %arg2[%c36] : memref<72xf32, #tpu.memory_space<smem>>
    %14 = vector.broadcast %13 : f32 to vector<24x128xf32>
    %15 = arith.mulf %14, %8 : vector<24x128xf32>
    %16 = arith.addf %5, %15 : vector<24x128xf32>
    %c1_7 = arith.constant 1 : index
    %17 = memref.load %arg2[%c1_7] : memref<72xf32, #tpu.memory_space<smem>>
    %18 = vector.broadcast %17 : f32 to vector<24x128xf32>
    %19 = arith.mulf %18, %7 : vector<24x128xf32>
    %20 = arith.addf %12, %19 : vector<24x128xf32>
    %c37 = arith.constant 37 : index
    %21 = memref.load %arg2[%c37] : memref<72xf32, #tpu.memory_space<smem>>
    %22 = vector.broadcast %21 : f32 to vector<24x128xf32>
    %23 = arith.mulf %22, %7 : vector<24x128xf32>
    %24 = arith.addf %16, %23 : vector<24x128xf32>
    %c127_i32 = arith.constant 127 : i32
    %25 = tpu.dynamic_rotate %7 by %c127_i32 dim 1 : vector<24x128xf32>, i32 -> vector<24x128xf32>
    %c2 = arith.constant 2 : index
    %26 = memref.load %arg2[%c2] : memref<72xf32, #tpu.memory_space<smem>>
    %27 = vector.broadcast %26 : f32 to vector<24x128xf32>
    %28 = arith.mulf %27, %25 : vector<24x128xf32>
    %29 = arith.addf %20, %28 : vector<24x128xf32>
    %c38 = arith.constant 38 : index
    %30 = memref.load %arg2[%c38] : memref<72xf32, #tpu.memory_space<smem>>
    %31 = vector.broadcast %30 : f32 to vector<24x128xf32>
    %32 = arith.mulf %31, %25 : vector<24x128xf32>
    %33 = arith.addf %24, %32 : vector<24x128xf32>
    %c0_8 = arith.constant 0 : index
    %c0_9 = arith.constant 0 : index
    %c2_10 = arith.constant 2 : index
    %c0_11 = arith.constant 0 : index
    %34 = vector.load %arg7[%c0_8, %c0_9, %c2_10, %c0_11] : memref<1x4x28x128xf32, #tpu.memory_space<vmem>>, vector<1x1x24x128xf32>
    %35 = vector.shape_cast %34 : vector<1x1x24x128xf32> to vector<24x128xf32>
    %c1_i32_12 = arith.constant 1 : i32
    %36 = tpu.dynamic_rotate %35 by %c1_i32_12 dim 1 : vector<24x128xf32>, i32 -> vector<24x128xf32>
    %c3 = arith.constant 3 : index
    %37 = memref.load %arg2[%c3] : memref<72xf32, #tpu.memory_space<smem>>
    %38 = vector.broadcast %37 : f32 to vector<24x128xf32>
    %39 = arith.mulf %38, %36 : vector<24x128xf32>
    %40 = arith.addf %29, %39 : vector<24x128xf32>
    %c39 = arith.constant 39 : index
    %41 = memref.load %arg2[%c39] : memref<72xf32, #tpu.memory_space<smem>>
    %42 = vector.broadcast %41 : f32 to vector<24x128xf32>
    %43 = arith.mulf %42, %36 : vector<24x128xf32>
    %44 = arith.addf %33, %43 : vector<24x128xf32>
    %c4 = arith.constant 4 : index
    %45 = memref.load %arg2[%c4] : memref<72xf32, #tpu.memory_space<smem>>
    %46 = vector.broadcast %45 : f32 to vector<24x128xf32>
    %47 = arith.mulf %46, %35 : vector<24x128xf32>
    %48 = arith.addf %40, %47 : vector<24x128xf32>
    %c40 = arith.constant 40 : index
    %49 = memref.load %arg2[%c40] : memref<72xf32, #tpu.memory_space<smem>>
    %50 = vector.broadcast %49 : f32 to vector<24x128xf32>
    %51 = arith.mulf %50, %35 : vector<24x128xf32>
    %52 = arith.addf %44, %51 : vector<24x128xf32>
    %c127_i32_13 = arith.constant 127 : i32
    %53 = tpu.dynamic_rotate %35 by %c127_i32_13 dim 1 : vector<24x128xf32>, i32 -> vector<24x128xf32>
    %c5 = arith.constant 5 : index
    %54 = memref.load %arg2[%c5] : memref<72xf32, #tpu.memory_space<smem>>
    %55 = vector.broadcast %54 : f32 to vector<24x128xf32>
    %56 = arith.mulf %55, %53 : vector<24x128xf32>
    %57 = arith.addf %48, %56 : vector<24x128xf32>
    %c41 = arith.constant 41 : index
    %58 = memref.load %arg2[%c41] : memref<72xf32, #tpu.memory_space<smem>>
    %59 = vector.broadcast %58 : f32 to vector<24x128xf32>
    %60 = arith.mulf %59, %53 : vector<24x128xf32>
    %61 = arith.addf %52, %60 : vector<24x128xf32>
    %c0_14 = arith.constant 0 : index
    %c0_15 = arith.constant 0 : index
    %c3_16 = arith.constant 3 : index
    %c0_17 = arith.constant 0 : index
    %62 = vector.load %arg7[%c0_14, %c0_15, %c3_16, %c0_17] : memref<1x4x28x128xf32, #tpu.memory_space<vmem>>, vector<1x1x24x128xf32>
    %63 = vector.shape_cast %62 : vector<1x1x24x128xf32> to vector<24x128xf32>
    %c1_i32_18 = arith.constant 1 : i32
    %64 = tpu.dynamic_rotate %63 by %c1_i32_18 dim 1 : vector<24x128xf32>, i32 -> vector<24x128xf32>
    %c6 = arith.constant 6 : index
    %65 = memref.load %arg2[%c6] : memref<72xf32, #tpu.memory_space<smem>>
    %66 = vector.broadcast %65 : f32 to vector<24x128xf32>
    %67 = arith.mulf %66, %64 : vector<24x128xf32>
    %68 = arith.addf %57, %67 : vector<24x128xf32>
    %c42 = arith.constant 42 : index
    %69 = memref.load %arg2[%c42] : memref<72xf32, #tpu.memory_space<smem>>
    %70 = vector.broadcast %69 : f32 to vector<24x128xf32>
    %71 = arith.mulf %70, %64 : vector<24x128xf32>
    %72 = arith.addf %61, %71 : vector<24x128xf32>
    %c7 = arith.constant 7 : index
    %73 = memref.load %arg2[%c7] : memref<72xf32, #tpu.memory_space<smem>>
    %74 = vector.broadcast %73 : f32 to vector<24x128xf32>
    %75 = arith.mulf %74, %63 : vector<24x128xf32>
    %76 = arith.addf %68, %75 : vector<24x128xf32>
    %c43 = arith.constant 43 : index
    %77 = memref.load %arg2[%c43] : memref<72xf32, #tpu.memory_space<smem>>
    %78 = vector.broadcast %77 : f32 to vector<24x128xf32>
    %79 = arith.mulf %78, %63 : vector<24x128xf32>
    %80 = arith.addf %72, %79 : vector<24x128xf32>
    %c127_i32_19 = arith.constant 127 : i32
    %81 = tpu.dynamic_rotate %63 by %c127_i32_19 dim 1 : vector<24x128xf32>, i32 -> vector<24x128xf32>
    %c8 = arith.constant 8 : index
    %82 = memref.load %arg2[%c8] : memref<72xf32, #tpu.memory_space<smem>>
    %83 = vector.broadcast %82 : f32 to vector<24x128xf32>
    %84 = arith.mulf %83, %81 : vector<24x128xf32>
    %85 = arith.addf %76, %84 : vector<24x128xf32>
    %c44 = arith.constant 44 : index
    %86 = memref.load %arg2[%c44] : memref<72xf32, #tpu.memory_space<smem>>
    %87 = vector.broadcast %86 : f32 to vector<24x128xf32>
    %88 = arith.mulf %87, %81 : vector<24x128xf32>
    %89 = arith.addf %80, %88 : vector<24x128xf32>
    %c0_20 = arith.constant 0 : index
    %c1_21 = arith.constant 1 : index
    %c1_22 = arith.constant 1 : index
    %c0_23 = arith.constant 0 : index
    %90 = vector.load %arg7[%c0_20, %c1_21, %c1_22, %c0_23] : memref<1x4x28x128xf32, #tpu.memory_space<vmem>>, vector<1x1x24x128xf32>
    %91 = vector.shape_cast %90 : vector<1x1x24x128xf32> to vector<24x128xf32>
    %c1_i32_24 = arith.constant 1 : i32
    %92 = tpu.dynamic_rotate %91 by %c1_i32_24 dim 1 : vector<24x128xf32>, i32 -> vector<24x128xf32>
    %c9 = arith.constant 9 : index
    %93 = memref.load %arg2[%c9] : memref<72xf32, #tpu.memory_space<smem>>
    %94 = vector.broadcast %93 : f32 to vector<24x128xf32>
    %95 = arith.mulf %94, %92 : vector<24x128xf32>
    %96 = arith.addf %85, %95 : vector<24x128xf32>
    %c45 = arith.constant 45 : index
    %97 = memref.load %arg2[%c45] : memref<72xf32, #tpu.memory_space<smem>>
    %98 = vector.broadcast %97 : f32 to vector<24x128xf32>
    %99 = arith.mulf %98, %92 : vector<24x128xf32>
    %100 = arith.addf %89, %99 : vector<24x128xf32>
    %c10 = arith.constant 10 : index
    %101 = memref.load %arg2[%c10] : memref<72xf32, #tpu.memory_space<smem>>
    %102 = vector.broadcast %101 : f32 to vector<24x128xf32>
    %103 = arith.mulf %102, %91 : vector<24x128xf32>
    %104 = arith.addf %96, %103 : vector<24x128xf32>
    %c46 = arith.constant 46 : index
    %105 = memref.load %arg2[%c46] : memref<72xf32, #tpu.memory_space<smem>>
    %106 = vector.broadcast %105 : f32 to vector<24x128xf32>
    %107 = arith.mulf %106, %91 : vector<24x128xf32>
    %108 = arith.addf %100, %107 : vector<24x128xf32>
    %c127_i32_25 = arith.constant 127 : i32
    %109 = tpu.dynamic_rotate %91 by %c127_i32_25 dim 1 : vector<24x128xf32>, i32 -> vector<24x128xf32>
    %c11 = arith.constant 11 : index
    %110 = memref.load %arg2[%c11] : memref<72xf32, #tpu.memory_space<smem>>
    %111 = vector.broadcast %110 : f32 to vector<24x128xf32>
    %112 = arith.mulf %111, %109 : vector<24x128xf32>
    %113 = arith.addf %104, %112 : vector<24x128xf32>
    %c47 = arith.constant 47 : index
    %114 = memref.load %arg2[%c47] : memref<72xf32, #tpu.memory_space<smem>>
    %115 = vector.broadcast %114 : f32 to vector<24x128xf32>
    %116 = arith.mulf %115, %109 : vector<24x128xf32>
    %117 = arith.addf %108, %116 : vector<24x128xf32>
    %c0_26 = arith.constant 0 : index
    %c1_27 = arith.constant 1 : index
    %c2_28 = arith.constant 2 : index
    %c0_29 = arith.constant 0 : index
    %118 = vector.load %arg7[%c0_26, %c1_27, %c2_28, %c0_29] : memref<1x4x28x128xf32, #tpu.memory_space<vmem>>, vector<1x1x24x128xf32>
    %119 = vector.shape_cast %118 : vector<1x1x24x128xf32> to vector<24x128xf32>
    %c1_i32_30 = arith.constant 1 : i32
    %120 = tpu.dynamic_rotate %119 by %c1_i32_30 dim 1 : vector<24x128xf32>, i32 -> vector<24x128xf32>
    %c12 = arith.constant 12 : index
    %121 = memref.load %arg2[%c12] : memref<72xf32, #tpu.memory_space<smem>>
    %122 = vector.broadcast %121 : f32 to vector<24x128xf32>
    %123 = arith.mulf %122, %120 : vector<24x128xf32>
    %124 = arith.addf %113, %123 : vector<24x128xf32>
    %c48 = arith.constant 48 : index
    %125 = memref.load %arg2[%c48] : memref<72xf32, #tpu.memory_space<smem>>
    %126 = vector.broadcast %125 : f32 to vector<24x128xf32>
    %127 = arith.mulf %126, %120 : vector<24x128xf32>
    %128 = arith.addf %117, %127 : vector<24x128xf32>
    %c13 = arith.constant 13 : index
    %129 = memref.load %arg2[%c13] : memref<72xf32, #tpu.memory_space<smem>>
    %130 = vector.broadcast %129 : f32 to vector<24x128xf32>
    %131 = arith.mulf %130, %119 : vector<24x128xf32>
    %132 = arith.addf %124, %131 : vector<24x128xf32>
    %c49 = arith.constant 49 : index
    %133 = memref.load %arg2[%c49] : memref<72xf32, #tpu.memory_space<smem>>
    %134 = vector.broadcast %133 : f32 to vector<24x128xf32>
    %135 = arith.mulf %134, %119 : vector<24x128xf32>
    %136 = arith.addf %128, %135 : vector<24x128xf32>
    %c127_i32_31 = arith.constant 127 : i32
    %137 = tpu.dynamic_rotate %119 by %c127_i32_31 dim 1 : vector<24x128xf32>, i32 -> vector<24x128xf32>
    %c14 = arith.constant 14 : index
    %138 = memref.load %arg2[%c14] : memref<72xf32, #tpu.memory_space<smem>>
    %139 = vector.broadcast %138 : f32 to vector<24x128xf32>
    %140 = arith.mulf %139, %137 : vector<24x128xf32>
    %141 = arith.addf %132, %140 : vector<24x128xf32>
    %c50 = arith.constant 50 : index
    %142 = memref.load %arg2[%c50] : memref<72xf32, #tpu.memory_space<smem>>
    %143 = vector.broadcast %142 : f32 to vector<24x128xf32>
    %144 = arith.mulf %143, %137 : vector<24x128xf32>
    %145 = arith.addf %136, %144 : vector<24x128xf32>
    %c0_32 = arith.constant 0 : index
    %c1_33 = arith.constant 1 : index
    %c3_34 = arith.constant 3 : index
    %c0_35 = arith.constant 0 : index
    %146 = vector.load %arg7[%c0_32, %c1_33, %c3_34, %c0_35] : memref<1x4x28x128xf32, #tpu.memory_space<vmem>>, vector<1x1x24x128xf32>
    %147 = vector.shape_cast %146 : vector<1x1x24x128xf32> to vector<24x128xf32>
    %c1_i32_36 = arith.constant 1 : i32
    %148 = tpu.dynamic_rotate %147 by %c1_i32_36 dim 1 : vector<24x128xf32>, i32 -> vector<24x128xf32>
    %c15 = arith.constant 15 : index
    %149 = memref.load %arg2[%c15] : memref<72xf32, #tpu.memory_space<smem>>
    %150 = vector.broadcast %149 : f32 to vector<24x128xf32>
    %151 = arith.mulf %150, %148 : vector<24x128xf32>
    %152 = arith.addf %141, %151 : vector<24x128xf32>
    %c51 = arith.constant 51 : index
    %153 = memref.load %arg2[%c51] : memref<72xf32, #tpu.memory_space<smem>>
    %154 = vector.broadcast %153 : f32 to vector<24x128xf32>
    %155 = arith.mulf %154, %148 : vector<24x128xf32>
    %156 = arith.addf %145, %155 : vector<24x128xf32>
    %c16 = arith.constant 16 : index
    %157 = memref.load %arg2[%c16] : memref<72xf32, #tpu.memory_space<smem>>
    %158 = vector.broadcast %157 : f32 to vector<24x128xf32>
    %159 = arith.mulf %158, %147 : vector<24x128xf32>
    %160 = arith.addf %152, %159 : vector<24x128xf32>
    %c52 = arith.constant 52 : index
    %161 = memref.load %arg2[%c52] : memref<72xf32, #tpu.memory_space<smem>>
    %162 = vector.broadcast %161 : f32 to vector<24x128xf32>
    %163 = arith.mulf %162, %147 : vector<24x128xf32>
    %164 = arith.addf %156, %163 : vector<24x128xf32>
    %c127_i32_37 = arith.constant 127 : i32
    %165 = tpu.dynamic_rotate %147 by %c127_i32_37 dim 1 : vector<24x128xf32>, i32 -> vector<24x128xf32>
    %c17 = arith.constant 17 : index
    %166 = memref.load %arg2[%c17] : memref<72xf32, #tpu.memory_space<smem>>
    %167 = vector.broadcast %166 : f32 to vector<24x128xf32>
    %168 = arith.mulf %167, %165 : vector<24x128xf32>
    %169 = arith.addf %160, %168 : vector<24x128xf32>
    %c53 = arith.constant 53 : index
    %170 = memref.load %arg2[%c53] : memref<72xf32, #tpu.memory_space<smem>>
    %171 = vector.broadcast %170 : f32 to vector<24x128xf32>
    %172 = arith.mulf %171, %165 : vector<24x128xf32>
    %173 = arith.addf %164, %172 : vector<24x128xf32>
    %c0_38 = arith.constant 0 : index
    %c2_39 = arith.constant 2 : index
    %c1_40 = arith.constant 1 : index
    %c0_41 = arith.constant 0 : index
    %174 = vector.load %arg7[%c0_38, %c2_39, %c1_40, %c0_41] : memref<1x4x28x128xf32, #tpu.memory_space<vmem>>, vector<1x1x24x128xf32>
    %175 = vector.shape_cast %174 : vector<1x1x24x128xf32> to vector<24x128xf32>
    %c1_i32_42 = arith.constant 1 : i32
    %176 = tpu.dynamic_rotate %175 by %c1_i32_42 dim 1 : vector<24x128xf32>, i32 -> vector<24x128xf32>
    %c18 = arith.constant 18 : index
    %177 = memref.load %arg2[%c18] : memref<72xf32, #tpu.memory_space<smem>>
    %178 = vector.broadcast %177 : f32 to vector<24x128xf32>
    %179 = arith.mulf %178, %176 : vector<24x128xf32>
    %180 = arith.addf %169, %179 : vector<24x128xf32>
    %c54 = arith.constant 54 : index
    %181 = memref.load %arg2[%c54] : memref<72xf32, #tpu.memory_space<smem>>
    %182 = vector.broadcast %181 : f32 to vector<24x128xf32>
    %183 = arith.mulf %182, %176 : vector<24x128xf32>
    %184 = arith.addf %173, %183 : vector<24x128xf32>
    %c19 = arith.constant 19 : index
    %185 = memref.load %arg2[%c19] : memref<72xf32, #tpu.memory_space<smem>>
    %186 = vector.broadcast %185 : f32 to vector<24x128xf32>
    %187 = arith.mulf %186, %175 : vector<24x128xf32>
    %188 = arith.addf %180, %187 : vector<24x128xf32>
    %c55 = arith.constant 55 : index
    %189 = memref.load %arg2[%c55] : memref<72xf32, #tpu.memory_space<smem>>
    %190 = vector.broadcast %189 : f32 to vector<24x128xf32>
    %191 = arith.mulf %190, %175 : vector<24x128xf32>
    %192 = arith.addf %184, %191 : vector<24x128xf32>
    %c127_i32_43 = arith.constant 127 : i32
    %193 = tpu.dynamic_rotate %175 by %c127_i32_43 dim 1 : vector<24x128xf32>, i32 -> vector<24x128xf32>
    %c20 = arith.constant 20 : index
    %194 = memref.load %arg2[%c20] : memref<72xf32, #tpu.memory_space<smem>>
    %195 = vector.broadcast %194 : f32 to vector<24x128xf32>
    %196 = arith.mulf %195, %193 : vector<24x128xf32>
    %197 = arith.addf %188, %196 : vector<24x128xf32>
    %c56 = arith.constant 56 : index
    %198 = memref.load %arg2[%c56] : memref<72xf32, #tpu.memory_space<smem>>
    %199 = vector.broadcast %198 : f32 to vector<24x128xf32>
    %200 = arith.mulf %199, %193 : vector<24x128xf32>
    %201 = arith.addf %192, %200 : vector<24x128xf32>
    %c0_44 = arith.constant 0 : index
    %c2_45 = arith.constant 2 : index
    %c2_46 = arith.constant 2 : index
    %c0_47 = arith.constant 0 : index
    %202 = vector.load %arg7[%c0_44, %c2_45, %c2_46, %c0_47] : memref<1x4x28x128xf32, #tpu.memory_space<vmem>>, vector<1x1x24x128xf32>
    %203 = vector.shape_cast %202 : vector<1x1x24x128xf32> to vector<24x128xf32>
    %c1_i32_48 = arith.constant 1 : i32
    %204 = tpu.dynamic_rotate %203 by %c1_i32_48 dim 1 : vector<24x128xf32>, i32 -> vector<24x128xf32>
    %c21 = arith.constant 21 : index
    %205 = memref.load %arg2[%c21] : memref<72xf32, #tpu.memory_space<smem>>
    %206 = vector.broadcast %205 : f32 to vector<24x128xf32>
    %207 = arith.mulf %206, %204 : vector<24x128xf32>
    %208 = arith.addf %197, %207 : vector<24x128xf32>
    %c57 = arith.constant 57 : index
    %209 = memref.load %arg2[%c57] : memref<72xf32, #tpu.memory_space<smem>>
    %210 = vector.broadcast %209 : f32 to vector<24x128xf32>
    %211 = arith.mulf %210, %204 : vector<24x128xf32>
    %212 = arith.addf %201, %211 : vector<24x128xf32>
    %c22 = arith.constant 22 : index
    %213 = memref.load %arg2[%c22] : memref<72xf32, #tpu.memory_space<smem>>
    %214 = vector.broadcast %213 : f32 to vector<24x128xf32>
    %215 = arith.mulf %214, %203 : vector<24x128xf32>
    %216 = arith.addf %208, %215 : vector<24x128xf32>
    %c58 = arith.constant 58 : index
    %217 = memref.load %arg2[%c58] : memref<72xf32, #tpu.memory_space<smem>>
    %218 = vector.broadcast %217 : f32 to vector<24x128xf32>
    %219 = arith.mulf %218, %203 : vector<24x128xf32>
    %220 = arith.addf %212, %219 : vector<24x128xf32>
    %c127_i32_49 = arith.constant 127 : i32
    %221 = tpu.dynamic_rotate %203 by %c127_i32_49 dim 1 : vector<24x128xf32>, i32 -> vector<24x128xf32>
    %c23 = arith.constant 23 : index
    %222 = memref.load %arg2[%c23] : memref<72xf32, #tpu.memory_space<smem>>
    %223 = vector.broadcast %222 : f32 to vector<24x128xf32>
    %224 = arith.mulf %223, %221 : vector<24x128xf32>
    %225 = arith.addf %216, %224 : vector<24x128xf32>
    %c59 = arith.constant 59 : index
    %226 = memref.load %arg2[%c59] : memref<72xf32, #tpu.memory_space<smem>>
    %227 = vector.broadcast %226 : f32 to vector<24x128xf32>
    %228 = arith.mulf %227, %221 : vector<24x128xf32>
    %229 = arith.addf %220, %228 : vector<24x128xf32>
    %c0_50 = arith.constant 0 : index
    %c2_51 = arith.constant 2 : index
    %c3_52 = arith.constant 3 : index
    %c0_53 = arith.constant 0 : index
    %230 = vector.load %arg7[%c0_50, %c2_51, %c3_52, %c0_53] : memref<1x4x28x128xf32, #tpu.memory_space<vmem>>, vector<1x1x24x128xf32>
    %231 = vector.shape_cast %230 : vector<1x1x24x128xf32> to vector<24x128xf32>
    %c1_i32_54 = arith.constant 1 : i32
    %232 = tpu.dynamic_rotate %231 by %c1_i32_54 dim 1 : vector<24x128xf32>, i32 -> vector<24x128xf32>
    %c24 = arith.constant 24 : index
    %233 = memref.load %arg2[%c24] : memref<72xf32, #tpu.memory_space<smem>>
    %234 = vector.broadcast %233 : f32 to vector<24x128xf32>
    %235 = arith.mulf %234, %232 : vector<24x128xf32>
    %236 = arith.addf %225, %235 : vector<24x128xf32>
    %c60 = arith.constant 60 : index
    %237 = memref.load %arg2[%c60] : memref<72xf32, #tpu.memory_space<smem>>
    %238 = vector.broadcast %237 : f32 to vector<24x128xf32>
    %239 = arith.mulf %238, %232 : vector<24x128xf32>
    %240 = arith.addf %229, %239 : vector<24x128xf32>
    %c25 = arith.constant 25 : index
    %241 = memref.load %arg2[%c25] : memref<72xf32, #tpu.memory_space<smem>>
    %242 = vector.broadcast %241 : f32 to vector<24x128xf32>
    %243 = arith.mulf %242, %231 : vector<24x128xf32>
    %244 = arith.addf %236, %243 : vector<24x128xf32>
    %c61 = arith.constant 61 : index
    %245 = memref.load %arg2[%c61] : memref<72xf32, #tpu.memory_space<smem>>
    %246 = vector.broadcast %245 : f32 to vector<24x128xf32>
    %247 = arith.mulf %246, %231 : vector<24x128xf32>
    %248 = arith.addf %240, %247 : vector<24x128xf32>
    %c127_i32_55 = arith.constant 127 : i32
    %249 = tpu.dynamic_rotate %231 by %c127_i32_55 dim 1 : vector<24x128xf32>, i32 -> vector<24x128xf32>
    %c26 = arith.constant 26 : index
    %250 = memref.load %arg2[%c26] : memref<72xf32, #tpu.memory_space<smem>>
    %251 = vector.broadcast %250 : f32 to vector<24x128xf32>
    %252 = arith.mulf %251, %249 : vector<24x128xf32>
    %253 = arith.addf %244, %252 : vector<24x128xf32>
    %c62 = arith.constant 62 : index
    %254 = memref.load %arg2[%c62] : memref<72xf32, #tpu.memory_space<smem>>
    %255 = vector.broadcast %254 : f32 to vector<24x128xf32>
    %256 = arith.mulf %255, %249 : vector<24x128xf32>
    %257 = arith.addf %248, %256 : vector<24x128xf32>
    %c0_56 = arith.constant 0 : index
    %c3_57 = arith.constant 3 : index
    %c1_58 = arith.constant 1 : index
    %c0_59 = arith.constant 0 : index
    %258 = vector.load %arg7[%c0_56, %c3_57, %c1_58, %c0_59] : memref<1x4x28x128xf32, #tpu.memory_space<vmem>>, vector<1x1x24x128xf32>
    %259 = vector.shape_cast %258 : vector<1x1x24x128xf32> to vector<24x128xf32>
    %c1_i32_60 = arith.constant 1 : i32
    %260 = tpu.dynamic_rotate %259 by %c1_i32_60 dim 1 : vector<24x128xf32>, i32 -> vector<24x128xf32>
    %c27 = arith.constant 27 : index
    %261 = memref.load %arg2[%c27] : memref<72xf32, #tpu.memory_space<smem>>
    %262 = vector.broadcast %261 : f32 to vector<24x128xf32>
    %263 = arith.mulf %262, %260 : vector<24x128xf32>
    %264 = arith.addf %253, %263 : vector<24x128xf32>
    %c63 = arith.constant 63 : index
    %265 = memref.load %arg2[%c63] : memref<72xf32, #tpu.memory_space<smem>>
    %266 = vector.broadcast %265 : f32 to vector<24x128xf32>
    %267 = arith.mulf %266, %260 : vector<24x128xf32>
    %268 = arith.addf %257, %267 : vector<24x128xf32>
    %c28 = arith.constant 28 : index
    %269 = memref.load %arg2[%c28] : memref<72xf32, #tpu.memory_space<smem>>
    %270 = vector.broadcast %269 : f32 to vector<24x128xf32>
    %271 = arith.mulf %270, %259 : vector<24x128xf32>
    %272 = arith.addf %264, %271 : vector<24x128xf32>
    %c64 = arith.constant 64 : index
    %273 = memref.load %arg2[%c64] : memref<72xf32, #tpu.memory_space<smem>>
    %274 = vector.broadcast %273 : f32 to vector<24x128xf32>
    %275 = arith.mulf %274, %259 : vector<24x128xf32>
    %276 = arith.addf %268, %275 : vector<24x128xf32>
    %c127_i32_61 = arith.constant 127 : i32
    %277 = tpu.dynamic_rotate %259 by %c127_i32_61 dim 1 : vector<24x128xf32>, i32 -> vector<24x128xf32>
    %c29 = arith.constant 29 : index
    %278 = memref.load %arg2[%c29] : memref<72xf32, #tpu.memory_space<smem>>
    %279 = vector.broadcast %278 : f32 to vector<24x128xf32>
    %280 = arith.mulf %279, %277 : vector<24x128xf32>
    %281 = arith.addf %272, %280 : vector<24x128xf32>
    %c65 = arith.constant 65 : index
    %282 = memref.load %arg2[%c65] : memref<72xf32, #tpu.memory_space<smem>>
    %283 = vector.broadcast %282 : f32 to vector<24x128xf32>
    %284 = arith.mulf %283, %277 : vector<24x128xf32>
    %285 = arith.addf %276, %284 : vector<24x128xf32>
    %c0_62 = arith.constant 0 : index
    %c3_63 = arith.constant 3 : index
    %c2_64 = arith.constant 2 : index
    %c0_65 = arith.constant 0 : index
    %286 = vector.load %arg7[%c0_62, %c3_63, %c2_64, %c0_65] : memref<1x4x28x128xf32, #tpu.memory_space<vmem>>, vector<1x1x24x128xf32>
    %287 = vector.shape_cast %286 : vector<1x1x24x128xf32> to vector<24x128xf32>
    %c1_i32_66 = arith.constant 1 : i32
    %288 = tpu.dynamic_rotate %287 by %c1_i32_66 dim 1 : vector<24x128xf32>, i32 -> vector<24x128xf32>
    %c30 = arith.constant 30 : index
    %289 = memref.load %arg2[%c30] : memref<72xf32, #tpu.memory_space<smem>>
    %290 = vector.broadcast %289 : f32 to vector<24x128xf32>
    %291 = arith.mulf %290, %288 : vector<24x128xf32>
    %292 = arith.addf %281, %291 : vector<24x128xf32>
    %c66 = arith.constant 66 : index
    %293 = memref.load %arg2[%c66] : memref<72xf32, #tpu.memory_space<smem>>
    %294 = vector.broadcast %293 : f32 to vector<24x128xf32>
    %295 = arith.mulf %294, %288 : vector<24x128xf32>
    %296 = arith.addf %285, %295 : vector<24x128xf32>
    %c31 = arith.constant 31 : index
    %297 = memref.load %arg2[%c31] : memref<72xf32, #tpu.memory_space<smem>>
    %298 = vector.broadcast %297 : f32 to vector<24x128xf32>
    %299 = arith.mulf %298, %287 : vector<24x128xf32>
    %300 = arith.addf %292, %299 : vector<24x128xf32>
    %c67 = arith.constant 67 : index
    %301 = memref.load %arg2[%c67] : memref<72xf32, #tpu.memory_space<smem>>
    %302 = vector.broadcast %301 : f32 to vector<24x128xf32>
    %303 = arith.mulf %302, %287 : vector<24x128xf32>
    %304 = arith.addf %296, %303 : vector<24x128xf32>
    %c127_i32_67 = arith.constant 127 : i32
    %305 = tpu.dynamic_rotate %287 by %c127_i32_67 dim 1 : vector<24x128xf32>, i32 -> vector<24x128xf32>
    %c32 = arith.constant 32 : index
    %306 = memref.load %arg2[%c32] : memref<72xf32, #tpu.memory_space<smem>>
    %307 = vector.broadcast %306 : f32 to vector<24x128xf32>
    %308 = arith.mulf %307, %305 : vector<24x128xf32>
    %309 = arith.addf %300, %308 : vector<24x128xf32>
    %c68 = arith.constant 68 : index
    %310 = memref.load %arg2[%c68] : memref<72xf32, #tpu.memory_space<smem>>
    %311 = vector.broadcast %310 : f32 to vector<24x128xf32>
    %312 = arith.mulf %311, %305 : vector<24x128xf32>
    %313 = arith.addf %304, %312 : vector<24x128xf32>
    %c0_68 = arith.constant 0 : index
    %c3_69 = arith.constant 3 : index
    %c3_70 = arith.constant 3 : index
    %c0_71 = arith.constant 0 : index
    %314 = vector.load %arg7[%c0_68, %c3_69, %c3_70, %c0_71] : memref<1x4x28x128xf32, #tpu.memory_space<vmem>>, vector<1x1x24x128xf32>
    %315 = vector.shape_cast %314 : vector<1x1x24x128xf32> to vector<24x128xf32>
    %c1_i32_72 = arith.constant 1 : i32
    %316 = tpu.dynamic_rotate %315 by %c1_i32_72 dim 1 : vector<24x128xf32>, i32 -> vector<24x128xf32>
    %c33 = arith.constant 33 : index
    %317 = memref.load %arg2[%c33] : memref<72xf32, #tpu.memory_space<smem>>
    %318 = vector.broadcast %317 : f32 to vector<24x128xf32>
    %319 = arith.mulf %318, %316 : vector<24x128xf32>
    %320 = arith.addf %309, %319 : vector<24x128xf32>
    %c69 = arith.constant 69 : index
    %321 = memref.load %arg2[%c69] : memref<72xf32, #tpu.memory_space<smem>>
    %322 = vector.broadcast %321 : f32 to vector<24x128xf32>
    %323 = arith.mulf %322, %316 : vector<24x128xf32>
    %324 = arith.addf %313, %323 : vector<24x128xf32>
    %c34 = arith.constant 34 : index
    %325 = memref.load %arg2[%c34] : memref<72xf32, #tpu.memory_space<smem>>
    %326 = vector.broadcast %325 : f32 to vector<24x128xf32>
    %327 = arith.mulf %326, %315 : vector<24x128xf32>
    %328 = arith.addf %320, %327 : vector<24x128xf32>
    %c70 = arith.constant 70 : index
    %329 = memref.load %arg2[%c70] : memref<72xf32, #tpu.memory_space<smem>>
    %330 = vector.broadcast %329 : f32 to vector<24x128xf32>
    %331 = arith.mulf %330, %315 : vector<24x128xf32>
    %332 = arith.addf %324, %331 : vector<24x128xf32>
    %c127_i32_73 = arith.constant 127 : i32
    %333 = tpu.dynamic_rotate %315 by %c127_i32_73 dim 1 : vector<24x128xf32>, i32 -> vector<24x128xf32>
    %c35 = arith.constant 35 : index
    %334 = memref.load %arg2[%c35] : memref<72xf32, #tpu.memory_space<smem>>
    %335 = vector.broadcast %334 : f32 to vector<24x128xf32>
    %336 = arith.mulf %335, %333 : vector<24x128xf32>
    %337 = arith.addf %328, %336 : vector<24x128xf32>
    %c71 = arith.constant 71 : index
    %338 = memref.load %arg2[%c71] : memref<72xf32, #tpu.memory_space<smem>>
    %339 = vector.broadcast %338 : f32 to vector<24x128xf32>
    %340 = arith.mulf %339, %333 : vector<24x128xf32>
    %341 = arith.addf %332, %340 : vector<24x128xf32>
    %cst_74 = arith.constant 0.000000e+00 : f32
    %342 = vector.broadcast %cst_74 : f32 to vector<24x128xf32>
    %343 = arith.maximumf %337, %342 : vector<24x128xf32>
    %344 = arith.mulf %343, %0 : vector<24x128xf32>
    %c0_75 = arith.constant 0 : index
    %c0_76 = arith.constant 0 : index
    %c0_77 = arith.constant 0 : index
    %c0_78 = arith.constant 0 : index
    %345 = vector.load %arg8[%c0_75, %c0_76, %c0_77, %c0_78] : memref<1x8x24x128xf32, #tpu.memory_space<vmem>>, vector<1x1x24x128xf32>
    %346 = vector.shape_cast %345 : vector<1x1x24x128xf32> to vector<24x128xf32>
    %347 = vector.shape_cast %344 : vector<24x128xf32> to vector<1x1x24x128xf32>
    tpu.vector_store %arg8[%c0_75, %c0_76, %c0_77, %c0_78], %347 {strides = array<i32>} : memref<1x8x24x128xf32, #tpu.memory_space<vmem>>, vector<1x1x24x128xf32>,
    %c0_79 = arith.constant 0 : index
    %c0_80 = arith.constant 0 : index
    %c0_81 = arith.constant 0 : index
    %348 = vector.load %arg9[%c0_79, %c0_80, %c0_81] : memref<2x28x128xf32, #tpu.memory_space<vmem>>, vector<1x2x128xf32>
    %349 = vector.shape_cast %348 : vector<1x2x128xf32> to vector<2x128xf32>
    %350 = vector.shape_cast %1 : vector<2x128xf32> to vector<1x2x128xf32>
    tpu.vector_store %arg9[%c0_79, %c0_80, %c0_81], %350 {strides = array<i32>} : memref<2x28x128xf32, #tpu.memory_space<vmem>>, vector<1x2x128xf32>,
    %c0_82 = arith.constant 0 : index
    %c2_83 = arith.constant 2 : index
    %c0_84 = arith.constant 0 : index
    %351 = vector.load %arg9[%c0_82, %c2_83, %c0_84] : memref<2x28x128xf32, #tpu.memory_space<vmem>>, vector<1x24x128xf32>
    %352 = vector.shape_cast %351 : vector<1x24x128xf32> to vector<24x128xf32>
    %353 = vector.shape_cast %344 : vector<24x128xf32> to vector<1x24x128xf32>
    tpu.vector_store %arg9[%c0_82, %c2_83, %c0_84], %353 {strides = array<i32>} : memref<2x28x128xf32, #tpu.memory_space<vmem>>, vector<1x24x128xf32>,
    %c0_85 = arith.constant 0 : index
    %c26_86 = arith.constant 26 : index
    %c0_87 = arith.constant 0 : index
    %354 = vector.load %arg9[%c0_85, %c26_86, %c0_87] : memref<2x28x128xf32, #tpu.memory_space<vmem>>, vector<1x2x128xf32>
    %355 = vector.shape_cast %354 : vector<1x2x128xf32> to vector<2x128xf32>
    %356 = vector.shape_cast %1 : vector<2x128xf32> to vector<1x2x128xf32>
    tpu.vector_store %arg9[%c0_85, %c26_86, %c0_87], %356 {strides = array<i32>} : memref<2x28x128xf32, #tpu.memory_space<vmem>>, vector<1x2x128xf32>,
    %cst_88 = arith.constant 0.000000e+00 : f32
    %357 = vector.broadcast %cst_88 : f32 to vector<24x128xf32>
    %358 = arith.maximumf %341, %357 : vector<24x128xf32>
    %359 = arith.mulf %358, %0 : vector<24x128xf32>
    %c0_89 = arith.constant 0 : index
    %c1_90 = arith.constant 1 : index
    %c0_91 = arith.constant 0 : index
    %c0_92 = arith.constant 0 : index
    %360 = vector.load %arg8[%c0_89, %c1_90, %c0_91, %c0_92] : memref<1x8x24x128xf32, #tpu.memory_space<vmem>>, vector<1x1x24x128xf32>
    %361 = vector.shape_cast %360 : vector<1x1x24x128xf32> to vector<24x128xf32>
    %362 = vector.shape_cast %359 : vector<24x128xf32> to vector<1x1x24x128xf32>
    tpu.vector_store %arg8[%c0_89, %c1_90, %c0_91, %c0_92], %362 {strides = array<i32>} : memref<1x8x24x128xf32, #tpu.memory_space<vmem>>, vector<1x1x24x128xf32>,
    %c1_93 = arith.constant 1 : index
    %c0_94 = arith.constant 0 : index
    %c0_95 = arith.constant 0 : index
    %363 = vector.load %arg9[%c1_93, %c0_94, %c0_95] : memref<2x28x128xf32, #tpu.memory_space<vmem>>, vector<1x2x128xf32>
    %364 = vector.shape_cast %363 : vector<1x2x128xf32> to vector<2x128xf32>
    %365 = vector.shape_cast %1 : vector<2x128xf32> to vector<1x2x128xf32>
    tpu.vector_store %arg9[%c1_93, %c0_94, %c0_95], %365 {strides = array<i32>} : memref<2x28x128xf32, #tpu.memory_space<vmem>>, vector<1x2x128xf32>,
    %c1_96 = arith.constant 1 : index
    %c2_97 = arith.constant 2 : index
    %c0_98 = arith.constant 0 : index
    %366 = vector.load %arg9[%c1_96, %c2_97, %c0_98] : memref<2x28x128xf32, #tpu.memory_space<vmem>>, vector<1x24x128xf32>
    %367 = vector.shape_cast %366 : vector<1x24x128xf32> to vector<24x128xf32>
    %368 = vector.shape_cast %359 : vector<24x128xf32> to vector<1x24x128xf32>
    tpu.vector_store %arg9[%c1_96, %c2_97, %c0_98], %368 {strides = array<i32>} : memref<2x28x128xf32, #tpu.memory_space<vmem>>, vector<1x24x128xf32>,
    %c1_99 = arith.constant 1 : index
    %c26_100 = arith.constant 26 : index
    %c0_101 = arith.constant 0 : index
    %369 = vector.load %arg9[%c1_99, %c26_100, %c0_101] : memref<2x28x128xf32, #tpu.memory_space<vmem>>, vector<1x2x128xf32>
    %370 = vector.shape_cast %369 : vector<1x2x128xf32> to vector<2x128xf32>
    %371 = vector.shape_cast %1 : vector<2x128xf32> to vector<1x2x128xf32>
    tpu.vector_store %arg9[%c1_99, %c26_100, %c0_101], %371 {strides = array<i32>} : memref<2x28x128xf32, #tpu.memory_space<vmem>>, vector<1x2x128xf32>,
    %c6_102 = arith.constant 6 : index
    %372 = memref.load %arg1[%c6_102] : memref<8xf32, #tpu.memory_space<smem>>
    %373 = vector.broadcast %372 : f32 to vector<24x128xf32>
    %c7_103 = arith.constant 7 : index
    %374 = memref.load %arg1[%c7_103] : memref<8xf32, #tpu.memory_space<smem>>
    %375 = vector.broadcast %374 : f32 to vector<24x128xf32>
    %c0_104 = arith.constant 0 : index
    %c0_105 = arith.constant 0 : index
    %c0_106 = arith.constant 0 : index
    %376 = vector.load %arg9[%c0_104, %c0_105, %c0_106] : memref<2x28x128xf32, #tpu.memory_space<vmem>>, vector<1x24x128xf32>
    %377 = vector.shape_cast %376 : vector<1x24x128xf32> to vector<24x128xf32>
    %c2_i32 = arith.constant 2 : i32
    %378 = tpu.dynamic_rotate %377 by %c2_i32 dim 1 : vector<24x128xf32>, i32 -> vector<24x128xf32>
    %c0_107 = arith.constant 0 : index
    %379 = memref.load %arg5[%c0_107] : memref<36xf32, #tpu.memory_space<smem>>
    %380 = vector.broadcast %379 : f32 to vector<24x128xf32>
    %381 = arith.mulf %380, %378 : vector<24x128xf32>
    %382 = arith.addf %373, %381 : vector<24x128xf32>
    %c18_108 = arith.constant 18 : index
    %383 = memref.load %arg5[%c18_108] : memref<36xf32, #tpu.memory_space<smem>>
    %384 = vector.broadcast %383 : f32 to vector<24x128xf32>
    %385 = arith.mulf %384, %378 : vector<24x128xf32>
    %386 = arith.addf %375, %385 : vector<24x128xf32>
    %c1_109 = arith.constant 1 : index
    %387 = memref.load %arg5[%c1_109] : memref<36xf32, #tpu.memory_space<smem>>
    %388 = vector.broadcast %387 : f32 to vector<24x128xf32>
    %389 = arith.mulf %388, %377 : vector<24x128xf32>
    %390 = arith.addf %382, %389 : vector<24x128xf32>
    %c19_110 = arith.constant 19 : index
    %391 = memref.load %arg5[%c19_110] : memref<36xf32, #tpu.memory_space<smem>>
    %392 = vector.broadcast %391 : f32 to vector<24x128xf32>
    %393 = arith.mulf %392, %377 : vector<24x128xf32>
    %394 = arith.addf %386, %393 : vector<24x128xf32>
    %c126_i32 = arith.constant 126 : i32
    %395 = tpu.dynamic_rotate %377 by %c126_i32 dim 1 : vector<24x128xf32>, i32 -> vector<24x128xf32>
    %c2_111 = arith.constant 2 : index
    %396 = memref.load %arg5[%c2_111] : memref<36xf32, #tpu.memory_space<smem>>
    %397 = vector.broadcast %396 : f32 to vector<24x128xf32>
    %398 = arith.mulf %397, %395 : vector<24x128xf32>
    %399 = arith.addf %390, %398 : vector<24x128xf32>
    %c20_112 = arith.constant 20 : index
    %400 = memref.load %arg5[%c20_112] : memref<36xf32, #tpu.memory_space<smem>>
    %401 = vector.broadcast %400 : f32 to vector<24x128xf32>
    %402 = arith.mulf %401, %395 : vector<24x128xf32>
    %403 = arith.addf %394, %402 : vector<24x128xf32>
    %c0_113 = arith.constant 0 : index
    %c2_114 = arith.constant 2 : index
    %c0_115 = arith.constant 0 : index
    %404 = vector.load %arg9[%c0_113, %c2_114, %c0_115] : memref<2x28x128xf32, #tpu.memory_space<vmem>>, vector<1x24x128xf32>
    %405 = vector.shape_cast %404 : vector<1x24x128xf32> to vector<24x128xf32>
    %c2_i32_116 = arith.constant 2 : i32
    %406 = tpu.dynamic_rotate %405 by %c2_i32_116 dim 1 : vector<24x128xf32>, i32 -> vector<24x128xf32>
    %c3_117 = arith.constant 3 : index
    %407 = memref.load %arg5[%c3_117] : memref<36xf32, #tpu.memory_space<smem>>
    %408 = vector.broadcast %407 : f32 to vector<24x128xf32>
    %409 = arith.mulf %408, %406 : vector<24x128xf32>
    %410 = arith.addf %399, %409 : vector<24x128xf32>
    %c21_118 = arith.constant 21 : index
    %411 = memref.load %arg5[%c21_118] : memref<36xf32, #tpu.memory_space<smem>>
    %412 = vector.broadcast %411 : f32 to vector<24x128xf32>
    %413 = arith.mulf %412, %406 : vector<24x128xf32>
    %414 = arith.addf %403, %413 : vector<24x128xf32>
    %c4_119 = arith.constant 4 : index
    %415 = memref.load %arg5[%c4_119] : memref<36xf32, #tpu.memory_space<smem>>
    %416 = vector.broadcast %415 : f32 to vector<24x128xf32>
    %417 = arith.mulf %416, %405 : vector<24x128xf32>
    %418 = arith.addf %410, %417 : vector<24x128xf32>
    %c22_120 = arith.constant 22 : index
    %419 = memref.load %arg5[%c22_120] : memref<36xf32, #tpu.memory_space<smem>>
    %420 = vector.broadcast %419 : f32 to vector<24x128xf32>
    %421 = arith.mulf %420, %405 : vector<24x128xf32>
    %422 = arith.addf %414, %421 : vector<24x128xf32>
    %c126_i32_121 = arith.constant 126 : i32
    %423 = tpu.dynamic_rotate %405 by %c126_i32_121 dim 1 : vector<24x128xf32>, i32 -> vector<24x128xf32>
    %c5_122 = arith.constant 5 : index
    %424 = memref.load %arg5[%c5_122] : memref<36xf32, #tpu.memory_space<smem>>
    %425 = vector.broadcast %424 : f32 to vector<24x128xf32>
    %426 = arith.mulf %425, %423 : vector<24x128xf32>
    %427 = arith.addf %418, %426 : vector<24x128xf32>
    %c23_123 = arith.constant 23 : index
    %428 = memref.load %arg5[%c23_123] : memref<36xf32, #tpu.memory_space<smem>>
    %429 = vector.broadcast %428 : f32 to vector<24x128xf32>
    %430 = arith.mulf %429, %423 : vector<24x128xf32>
    %431 = arith.addf %422, %430 : vector<24x128xf32>
    %c0_124 = arith.constant 0 : index
    %c4_125 = arith.constant 4 : index
    %c0_126 = arith.constant 0 : index
    %432 = vector.load %arg9[%c0_124, %c4_125, %c0_126] : memref<2x28x128xf32, #tpu.memory_space<vmem>>, vector<1x24x128xf32>
    %433 = vector.shape_cast %432 : vector<1x24x128xf32> to vector<24x128xf32>
    %c2_i32_127 = arith.constant 2 : i32
    %434 = tpu.dynamic_rotate %433 by %c2_i32_127 dim 1 : vector<24x128xf32>, i32 -> vector<24x128xf32>
    %c6_128 = arith.constant 6 : index
    %435 = memref.load %arg5[%c6_128] : memref<36xf32, #tpu.memory_space<smem>>
    %436 = vector.broadcast %435 : f32 to vector<24x128xf32>
    %437 = arith.mulf %436, %434 : vector<24x128xf32>
    %438 = arith.addf %427, %437 : vector<24x128xf32>
    %c24_129 = arith.constant 24 : index
    %439 = memref.load %arg5[%c24_129] : memref<36xf32, #tpu.memory_space<smem>>
    %440 = vector.broadcast %439 : f32 to vector<24x128xf32>
    %441 = arith.mulf %440, %434 : vector<24x128xf32>
    %442 = arith.addf %431, %441 : vector<24x128xf32>
    %c7_130 = arith.constant 7 : index
    %443 = memref.load %arg5[%c7_130] : memref<36xf32, #tpu.memory_space<smem>>
    %444 = vector.broadcast %443 : f32 to vector<24x128xf32>
    %445 = arith.mulf %444, %433 : vector<24x128xf32>
    %446 = arith.addf %438, %445 : vector<24x128xf32>
    %c25_131 = arith.constant 25 : index
    %447 = memref.load %arg5[%c25_131] : memref<36xf32, #tpu.memory_space<smem>>
    %448 = vector.broadcast %447 : f32 to vector<24x128xf32>
    %449 = arith.mulf %448, %433 : vector<24x128xf32>
    %450 = arith.addf %442, %449 : vector<24x128xf32>
    %c126_i32_132 = arith.constant 126 : i32
    %451 = tpu.dynamic_rotate %433 by %c126_i32_132 dim 1 : vector<24x128xf32>, i32 -> vector<24x128xf32>
    %c8_133 = arith.constant 8 : index
    %452 = memref.load %arg5[%c8_133] : memref<36xf32, #tpu.memory_space<smem>>
    %453 = vector.broadcast %452 : f32 to vector<24x128xf32>
    %454 = arith.mulf %453, %451 : vector<24x128xf32>
    %455 = arith.addf %446, %454 : vector<24x128xf32>
    %c26_134 = arith.constant 26 : index
    %456 = memref.load %arg5[%c26_134] : memref<36xf32, #tpu.memory_space<smem>>
    %457 = vector.broadcast %456 : f32 to vector<24x128xf32>
    %458 = arith.mulf %457, %451 : vector<24x128xf32>
    %459 = arith.addf %450, %458 : vector<24x128xf32>
    %c1_135 = arith.constant 1 : index
    %c0_136 = arith.constant 0 : index
    %c0_137 = arith.constant 0 : index
    %460 = vector.load %arg9[%c1_135, %c0_136, %c0_137] : memref<2x28x128xf32, #tpu.memory_space<vmem>>, vector<1x24x128xf32>
    %461 = vector.shape_cast %460 : vector<1x24x128xf32> to vector<24x128xf32>
    %c2_i32_138 = arith.constant 2 : i32
    %462 = tpu.dynamic_rotate %461 by %c2_i32_138 dim 1 : vector<24x128xf32>, i32 -> vector<24x128xf32>
    %c9_139 = arith.constant 9 : index
    %463 = memref.load %arg5[%c9_139] : memref<36xf32, #tpu.memory_space<smem>>
    %464 = vector.broadcast %463 : f32 to vector<24x128xf32>
    %465 = arith.mulf %464, %462 : vector<24x128xf32>
    %466 = arith.addf %455, %465 : vector<24x128xf32>
    %c27_140 = arith.constant 27 : index
    %467 = memref.load %arg5[%c27_140] : memref<36xf32, #tpu.memory_space<smem>>
    %468 = vector.broadcast %467 : f32 to vector<24x128xf32>
    %469 = arith.mulf %468, %462 : vector<24x128xf32>
    %470 = arith.addf %459, %469 : vector<24x128xf32>
    %c10_141 = arith.constant 10 : index
    %471 = memref.load %arg5[%c10_141] : memref<36xf32, #tpu.memory_space<smem>>
    %472 = vector.broadcast %471 : f32 to vector<24x128xf32>
    %473 = arith.mulf %472, %461 : vector<24x128xf32>
    %474 = arith.addf %466, %473 : vector<24x128xf32>
    %c28_142 = arith.constant 28 : index
    %475 = memref.load %arg5[%c28_142] : memref<36xf32, #tpu.memory_space<smem>>
    %476 = vector.broadcast %475 : f32 to vector<24x128xf32>
    %477 = arith.mulf %476, %461 : vector<24x128xf32>
    %478 = arith.addf %470, %477 : vector<24x128xf32>
    %c126_i32_143 = arith.constant 126 : i32
    %479 = tpu.dynamic_rotate %461 by %c126_i32_143 dim 1 : vector<24x128xf32>, i32 -> vector<24x128xf32>
    %c11_144 = arith.constant 11 : index
    %480 = memref.load %arg5[%c11_144] : memref<36xf32, #tpu.memory_space<smem>>
    %481 = vector.broadcast %480 : f32 to vector<24x128xf32>
    %482 = arith.mulf %481, %479 : vector<24x128xf32>
    %483 = arith.addf %474, %482 : vector<24x128xf32>
    %c29_145 = arith.constant 29 : index
    %484 = memref.load %arg5[%c29_145] : memref<36xf32, #tpu.memory_space<smem>>
    %485 = vector.broadcast %484 : f32 to vector<24x128xf32>
    %486 = arith.mulf %485, %479 : vector<24x128xf32>
    %487 = arith.addf %478, %486 : vector<24x128xf32>
    %c1_146 = arith.constant 1 : index
    %c2_147 = arith.constant 2 : index
    %c0_148 = arith.constant 0 : index
    %488 = vector.load %arg9[%c1_146, %c2_147, %c0_148] : memref<2x28x128xf32, #tpu.memory_space<vmem>>, vector<1x24x128xf32>
    %489 = vector.shape_cast %488 : vector<1x24x128xf32> to vector<24x128xf32>
    %c2_i32_149 = arith.constant 2 : i32
    %490 = tpu.dynamic_rotate %489 by %c2_i32_149 dim 1 : vector<24x128xf32>, i32 -> vector<24x128xf32>
    %c12_150 = arith.constant 12 : index
    %491 = memref.load %arg5[%c12_150] : memref<36xf32, #tpu.memory_space<smem>>
    %492 = vector.broadcast %491 : f32 to vector<24x128xf32>
    %493 = arith.mulf %492, %490 : vector<24x128xf32>
    %494 = arith.addf %483, %493 : vector<24x128xf32>
    %c30_151 = arith.constant 30 : index
    %495 = memref.load %arg5[%c30_151] : memref<36xf32, #tpu.memory_space<smem>>
    %496 = vector.broadcast %495 : f32 to vector<24x128xf32>
    %497 = arith.mulf %496, %490 : vector<24x128xf32>
    %498 = arith.addf %487, %497 : vector<24x128xf32>
    %c13_152 = arith.constant 13 : index
    %499 = memref.load %arg5[%c13_152] : memref<36xf32, #tpu.memory_space<smem>>
    %500 = vector.broadcast %499 : f32 to vector<24x128xf32>
    %501 = arith.mulf %500, %489 : vector<24x128xf32>
    %502 = arith.addf %494, %501 : vector<24x128xf32>
    %c31_153 = arith.constant 31 : index
    %503 = memref.load %arg5[%c31_153] : memref<36xf32, #tpu.memory_space<smem>>
    %504 = vector.broadcast %503 : f32 to vector<24x128xf32>
    %505 = arith.mulf %504, %489 : vector<24x128xf32>
    %506 = arith.addf %498, %505 : vector<24x128xf32>
    %c126_i32_154 = arith.constant 126 : i32
    %507 = tpu.dynamic_rotate %489 by %c126_i32_154 dim 1 : vector<24x128xf32>, i32 -> vector<24x128xf32>
    %c14_155 = arith.constant 14 : index
    %508 = memref.load %arg5[%c14_155] : memref<36xf32, #tpu.memory_space<smem>>
    %509 = vector.broadcast %508 : f32 to vector<24x128xf32>
    %510 = arith.mulf %509, %507 : vector<24x128xf32>
    %511 = arith.addf %502, %510 : vector<24x128xf32>
    %c32_156 = arith.constant 32 : index
    %512 = memref.load %arg5[%c32_156] : memref<36xf32, #tpu.memory_space<smem>>
    %513 = vector.broadcast %512 : f32 to vector<24x128xf32>
    %514 = arith.mulf %513, %507 : vector<24x128xf32>
    %515 = arith.addf %506, %514 : vector<24x128xf32>
    %c1_157 = arith.constant 1 : index
    %c4_158 = arith.constant 4 : index
    %c0_159 = arith.constant 0 : index
    %516 = vector.load %arg9[%c1_157, %c4_158, %c0_159] : memref<2x28x128xf32, #tpu.memory_space<vmem>>, vector<1x24x128xf32>
    %517 = vector.shape_cast %516 : vector<1x24x128xf32> to vector<24x128xf32>
    %c2_i32_160 = arith.constant 2 : i32
    %518 = tpu.dynamic_rotate %517 by %c2_i32_160 dim 1 : vector<24x128xf32>, i32 -> vector<24x128xf32>
    %c15_161 = arith.constant 15 : index
    %519 = memref.load %arg5[%c15_161] : memref<36xf32, #tpu.memory_space<smem>>
    %520 = vector.broadcast %519 : f32 to vector<24x128xf32>
    %521 = arith.mulf %520, %518 : vector<24x128xf32>
    %522 = arith.addf %511, %521 : vector<24x128xf32>
    %c33_162 = arith.constant 33 : index
    %523 = memref.load %arg5[%c33_162] : memref<36xf32, #tpu.memory_space<smem>>
    %524 = vector.broadcast %523 : f32 to vector<24x128xf32>
    %525 = arith.mulf %524, %518 : vector<24x128xf32>
    %526 = arith.addf %515, %525 : vector<24x128xf32>
    %c16_163 = arith.constant 16 : index
    %527 = memref.load %arg5[%c16_163] : memref<36xf32, #tpu.memory_space<smem>>
    %528 = vector.broadcast %527 : f32 to vector<24x128xf32>
    %529 = arith.mulf %528, %517 : vector<24x128xf32>
    %530 = arith.addf %522, %529 : vector<24x128xf32>
    %c34_164 = arith.constant 34 : index
    %531 = memref.load %arg5[%c34_164] : memref<36xf32, #tpu.memory_space<smem>>
    %532 = vector.broadcast %531 : f32 to vector<24x128xf32>
    %533 = arith.mulf %532, %517 : vector<24x128xf32>
    %534 = arith.addf %526, %533 : vector<24x128xf32>
    %c126_i32_165 = arith.constant 126 : i32
    %535 = tpu.dynamic_rotate %517 by %c126_i32_165 dim 1 : vector<24x128xf32>, i32 -> vector<24x128xf32>
    %c17_166 = arith.constant 17 : index
    %536 = memref.load %arg5[%c17_166] : memref<36xf32, #tpu.memory_space<smem>>
    %537 = vector.broadcast %536 : f32 to vector<24x128xf32>
    %538 = arith.mulf %537, %535 : vector<24x128xf32>
    %539 = arith.addf %530, %538 : vector<24x128xf32>
    %c35_167 = arith.constant 35 : index
    %540 = memref.load %arg5[%c35_167] : memref<36xf32, #tpu.memory_space<smem>>
    %541 = vector.broadcast %540 : f32 to vector<24x128xf32>
    %542 = arith.mulf %541, %535 : vector<24x128xf32>
    %543 = arith.addf %534, %542 : vector<24x128xf32>
    %cst_168 = arith.constant 0.000000e+00 : f32
    %544 = vector.broadcast %cst_168 : f32 to vector<24x128xf32>
    %545 = arith.maximumf %539, %544 : vector<24x128xf32>
    %c0_169 = arith.constant 0 : index
    %c6_170 = arith.constant 6 : index
    %c0_171 = arith.constant 0 : index
    %c0_172 = arith.constant 0 : index
    %546 = vector.load %arg8[%c0_169, %c6_170, %c0_171, %c0_172] : memref<1x8x24x128xf32, #tpu.memory_space<vmem>>, vector<1x1x24x128xf32>
    %547 = vector.shape_cast %546 : vector<1x1x24x128xf32> to vector<24x128xf32>
    %548 = vector.shape_cast %545 : vector<24x128xf32> to vector<1x1x24x128xf32>
    tpu.vector_store %arg8[%c0_169, %c6_170, %c0_171, %c0_172], %548 {strides = array<i32>} : memref<1x8x24x128xf32, #tpu.memory_space<vmem>>, vector<1x1x24x128xf32>,
    %cst_173 = arith.constant 0.000000e+00 : f32
    %549 = vector.broadcast %cst_173 : f32 to vector<24x128xf32>
    %550 = arith.maximumf %543, %549 : vector<24x128xf32>
    %c0_174 = arith.constant 0 : index
    %c7_175 = arith.constant 7 : index
    %c0_176 = arith.constant 0 : index
    %c0_177 = arith.constant 0 : index
    %551 = vector.load %arg8[%c0_174, %c7_175, %c0_176, %c0_177] : memref<1x8x24x128xf32, #tpu.memory_space<vmem>>, vector<1x1x24x128xf32>
    %552 = vector.shape_cast %551 : vector<1x1x24x128xf32> to vector<24x128xf32>
    %553 = vector.shape_cast %550 : vector<24x128xf32> to vector<1x1x24x128xf32>
    tpu.vector_store %arg8[%c0_174, %c7_175, %c0_176, %c0_177], %553 {strides = array<i32>} : memref<1x8x24x128xf32, #tpu.memory_space<vmem>>, vector<1x1x24x128xf32>,
    %c2_178 = arith.constant 2 : index
    %554 = memref.load %arg1[%c2_178] : memref<8xf32, #tpu.memory_space<smem>>
    %555 = vector.broadcast %554 : f32 to vector<24x128xf32>
    %c3_179 = arith.constant 3 : index
    %556 = memref.load %arg1[%c3_179] : memref<8xf32, #tpu.memory_space<smem>>
    %557 = vector.broadcast %556 : f32 to vector<24x128xf32>
    %c0_180 = arith.constant 0 : index
    %c0_181 = arith.constant 0 : index
    %c0_182 = arith.constant 0 : index
    %c0_183 = arith.constant 0 : index
    %558 = vector.load %arg7[%c0_180, %c0_181, %c0_182, %c0_183] : memref<1x4x28x128xf32, #tpu.memory_space<vmem>>, vector<1x1x24x128xf32>
    %559 = vector.shape_cast %558 : vector<1x1x24x128xf32> to vector<24x128xf32>
    %c2_i32_184 = arith.constant 2 : i32
    %560 = tpu.dynamic_rotate %559 by %c2_i32_184 dim 1 : vector<24x128xf32>, i32 -> vector<24x128xf32>
    %c0_185 = arith.constant 0 : index
    %561 = memref.load %arg3[%c0_185] : memref<72xf32, #tpu.memory_space<smem>>
    %562 = vector.broadcast %561 : f32 to vector<24x128xf32>
    %563 = arith.mulf %562, %560 : vector<24x128xf32>
    %564 = arith.addf %555, %563 : vector<24x128xf32>
    %c36_186 = arith.constant 36 : index
    %565 = memref.load %arg3[%c36_186] : memref<72xf32, #tpu.memory_space<smem>>
    %566 = vector.broadcast %565 : f32 to vector<24x128xf32>
    %567 = arith.mulf %566, %560 : vector<24x128xf32>
    %568 = arith.addf %557, %567 : vector<24x128xf32>
    %c1_187 = arith.constant 1 : index
    %569 = memref.load %arg3[%c1_187] : memref<72xf32, #tpu.memory_space<smem>>
    %570 = vector.broadcast %569 : f32 to vector<24x128xf32>
    %571 = arith.mulf %570, %559 : vector<24x128xf32>
    %572 = arith.addf %564, %571 : vector<24x128xf32>
    %c37_188 = arith.constant 37 : index
    %573 = memref.load %arg3[%c37_188] : memref<72xf32, #tpu.memory_space<smem>>
    %574 = vector.broadcast %573 : f32 to vector<24x128xf32>
    %575 = arith.mulf %574, %559 : vector<24x128xf32>
    %576 = arith.addf %568, %575 : vector<24x128xf32>
    %c126_i32_189 = arith.constant 126 : i32
    %577 = tpu.dynamic_rotate %559 by %c126_i32_189 dim 1 : vector<24x128xf32>, i32 -> vector<24x128xf32>
    %c2_190 = arith.constant 2 : index
    %578 = memref.load %arg3[%c2_190] : memref<72xf32, #tpu.memory_space<smem>>
    %579 = vector.broadcast %578 : f32 to vector<24x128xf32>
    %580 = arith.mulf %579, %577 : vector<24x128xf32>
    %581 = arith.addf %572, %580 : vector<24x128xf32>
    %c38_191 = arith.constant 38 : index
    %582 = memref.load %arg3[%c38_191] : memref<72xf32, #tpu.memory_space<smem>>
    %583 = vector.broadcast %582 : f32 to vector<24x128xf32>
    %584 = arith.mulf %583, %577 : vector<24x128xf32>
    %585 = arith.addf %576, %584 : vector<24x128xf32>
    %c0_192 = arith.constant 0 : index
    %c0_193 = arith.constant 0 : index
    %c2_194 = arith.constant 2 : index
    %c0_195 = arith.constant 0 : index
    %586 = vector.load %arg7[%c0_192, %c0_193, %c2_194, %c0_195] : memref<1x4x28x128xf32, #tpu.memory_space<vmem>>, vector<1x1x24x128xf32>
    %587 = vector.shape_cast %586 : vector<1x1x24x128xf32> to vector<24x128xf32>
    %c2_i32_196 = arith.constant 2 : i32
    %588 = tpu.dynamic_rotate %587 by %c2_i32_196 dim 1 : vector<24x128xf32>, i32 -> vector<24x128xf32>
    %c3_197 = arith.constant 3 : index
    %589 = memref.load %arg3[%c3_197] : memref<72xf32, #tpu.memory_space<smem>>
    %590 = vector.broadcast %589 : f32 to vector<24x128xf32>
    %591 = arith.mulf %590, %588 : vector<24x128xf32>
    %592 = arith.addf %581, %591 : vector<24x128xf32>
    %c39_198 = arith.constant 39 : index
    %593 = memref.load %arg3[%c39_198] : memref<72xf32, #tpu.memory_space<smem>>
    %594 = vector.broadcast %593 : f32 to vector<24x128xf32>
    %595 = arith.mulf %594, %588 : vector<24x128xf32>
    %596 = arith.addf %585, %595 : vector<24x128xf32>
    %c4_199 = arith.constant 4 : index
    %597 = memref.load %arg3[%c4_199] : memref<72xf32, #tpu.memory_space<smem>>
    %598 = vector.broadcast %597 : f32 to vector<24x128xf32>
    %599 = arith.mulf %598, %587 : vector<24x128xf32>
    %600 = arith.addf %592, %599 : vector<24x128xf32>
    %c40_200 = arith.constant 40 : index
    %601 = memref.load %arg3[%c40_200] : memref<72xf32, #tpu.memory_space<smem>>
    %602 = vector.broadcast %601 : f32 to vector<24x128xf32>
    %603 = arith.mulf %602, %587 : vector<24x128xf32>
    %604 = arith.addf %596, %603 : vector<24x128xf32>
    %c126_i32_201 = arith.constant 126 : i32
    %605 = tpu.dynamic_rotate %587 by %c126_i32_201 dim 1 : vector<24x128xf32>, i32 -> vector<24x128xf32>
    %c5_202 = arith.constant 5 : index
    %606 = memref.load %arg3[%c5_202] : memref<72xf32, #tpu.memory_space<smem>>
    %607 = vector.broadcast %606 : f32 to vector<24x128xf32>
    %608 = arith.mulf %607, %605 : vector<24x128xf32>
    %609 = arith.addf %600, %608 : vector<24x128xf32>
    %c41_203 = arith.constant 41 : index
    %610 = memref.load %arg3[%c41_203] : memref<72xf32, #tpu.memory_space<smem>>
    %611 = vector.broadcast %610 : f32 to vector<24x128xf32>
    %612 = arith.mulf %611, %605 : vector<24x128xf32>
    %613 = arith.addf %604, %612 : vector<24x128xf32>
    %c0_204 = arith.constant 0 : index
    %c0_205 = arith.constant 0 : index
    %c4_206 = arith.constant 4 : index
    %c0_207 = arith.constant 0 : index
    %614 = vector.load %arg7[%c0_204, %c0_205, %c4_206, %c0_207] : memref<1x4x28x128xf32, #tpu.memory_space<vmem>>, vector<1x1x24x128xf32>
    %615 = vector.shape_cast %614 : vector<1x1x24x128xf32> to vector<24x128xf32>
    %c2_i32_208 = arith.constant 2 : i32
    %616 = tpu.dynamic_rotate %615 by %c2_i32_208 dim 1 : vector<24x128xf32>, i32 -> vector<24x128xf32>
    %c6_209 = arith.constant 6 : index
    %617 = memref.load %arg3[%c6_209] : memref<72xf32, #tpu.memory_space<smem>>
    %618 = vector.broadcast %617 : f32 to vector<24x128xf32>
    %619 = arith.mulf %618, %616 : vector<24x128xf32>
    %620 = arith.addf %609, %619 : vector<24x128xf32>
    %c42_210 = arith.constant 42 : index
    %621 = memref.load %arg3[%c42_210] : memref<72xf32, #tpu.memory_space<smem>>
    %622 = vector.broadcast %621 : f32 to vector<24x128xf32>
    %623 = arith.mulf %622, %616 : vector<24x128xf32>
    %624 = arith.addf %613, %623 : vector<24x128xf32>
    %c7_211 = arith.constant 7 : index
    %625 = memref.load %arg3[%c7_211] : memref<72xf32, #tpu.memory_space<smem>>
    %626 = vector.broadcast %625 : f32 to vector<24x128xf32>
    %627 = arith.mulf %626, %615 : vector<24x128xf32>
    %628 = arith.addf %620, %627 : vector<24x128xf32>
    %c43_212 = arith.constant 43 : index
    %629 = memref.load %arg3[%c43_212] : memref<72xf32, #tpu.memory_space<smem>>
    %630 = vector.broadcast %629 : f32 to vector<24x128xf32>
    %631 = arith.mulf %630, %615 : vector<24x128xf32>
    %632 = arith.addf %624, %631 : vector<24x128xf32>
    %c126_i32_213 = arith.constant 126 : i32
    %633 = tpu.dynamic_rotate %615 by %c126_i32_213 dim 1 : vector<24x128xf32>, i32 -> vector<24x128xf32>
    %c8_214 = arith.constant 8 : index
    %634 = memref.load %arg3[%c8_214] : memref<72xf32, #tpu.memory_space<smem>>
    %635 = vector.broadcast %634 : f32 to vector<24x128xf32>
    %636 = arith.mulf %635, %633 : vector<24x128xf32>
    %637 = arith.addf %628, %636 : vector<24x128xf32>
    %c44_215 = arith.constant 44 : index
    %638 = memref.load %arg3[%c44_215] : memref<72xf32, #tpu.memory_space<smem>>
    %639 = vector.broadcast %638 : f32 to vector<24x128xf32>
    %640 = arith.mulf %639, %633 : vector<24x128xf32>
    %641 = arith.addf %632, %640 : vector<24x128xf32>
    %c0_216 = arith.constant 0 : index
    %c1_217 = arith.constant 1 : index
    %c0_218 = arith.constant 0 : index
    %c0_219 = arith.constant 0 : index
    %642 = vector.load %arg7[%c0_216, %c1_217, %c0_218, %c0_219] : memref<1x4x28x128xf32, #tpu.memory_space<vmem>>, vector<1x1x24x128xf32>
    %643 = vector.shape_cast %642 : vector<1x1x24x128xf32> to vector<24x128xf32>
    %c2_i32_220 = arith.constant 2 : i32
    %644 = tpu.dynamic_rotate %643 by %c2_i32_220 dim 1 : vector<24x128xf32>, i32 -> vector<24x128xf32>
    %c9_221 = arith.constant 9 : index
    %645 = memref.load %arg3[%c9_221] : memref<72xf32, #tpu.memory_space<smem>>
    %646 = vector.broadcast %645 : f32 to vector<24x128xf32>
    %647 = arith.mulf %646, %644 : vector<24x128xf32>
    %648 = arith.addf %637, %647 : vector<24x128xf32>
    %c45_222 = arith.constant 45 : index
    %649 = memref.load %arg3[%c45_222] : memref<72xf32, #tpu.memory_space<smem>>
    %650 = vector.broadcast %649 : f32 to vector<24x128xf32>
    %651 = arith.mulf %650, %644 : vector<24x128xf32>
    %652 = arith.addf %641, %651 : vector<24x128xf32>
    %c10_223 = arith.constant 10 : index
    %653 = memref.load %arg3[%c10_223] : memref<72xf32, #tpu.memory_space<smem>>
    %654 = vector.broadcast %653 : f32 to vector<24x128xf32>
    %655 = arith.mulf %654, %643 : vector<24x128xf32>
    %656 = arith.addf %648, %655 : vector<24x128xf32>
    %c46_224 = arith.constant 46 : index
    %657 = memref.load %arg3[%c46_224] : memref<72xf32, #tpu.memory_space<smem>>
    %658 = vector.broadcast %657 : f32 to vector<24x128xf32>
    %659 = arith.mulf %658, %643 : vector<24x128xf32>
    %660 = arith.addf %652, %659 : vector<24x128xf32>
    %c126_i32_225 = arith.constant 126 : i32
    %661 = tpu.dynamic_rotate %643 by %c126_i32_225 dim 1 : vector<24x128xf32>, i32 -> vector<24x128xf32>
    %c11_226 = arith.constant 11 : index
    %662 = memref.load %arg3[%c11_226] : memref<72xf32, #tpu.memory_space<smem>>
    %663 = vector.broadcast %662 : f32 to vector<24x128xf32>
    %664 = arith.mulf %663, %661 : vector<24x128xf32>
    %665 = arith.addf %656, %664 : vector<24x128xf32>
    %c47_227 = arith.constant 47 : index
    %666 = memref.load %arg3[%c47_227] : memref<72xf32, #tpu.memory_space<smem>>
    %667 = vector.broadcast %666 : f32 to vector<24x128xf32>
    %668 = arith.mulf %667, %661 : vector<24x128xf32>
    %669 = arith.addf %660, %668 : vector<24x128xf32>
    %c0_228 = arith.constant 0 : index
    %c1_229 = arith.constant 1 : index
    %c2_230 = arith.constant 2 : index
    %c0_231 = arith.constant 0 : index
    %670 = vector.load %arg7[%c0_228, %c1_229, %c2_230, %c0_231] : memref<1x4x28x128xf32, #tpu.memory_space<vmem>>, vector<1x1x24x128xf32>
    %671 = vector.shape_cast %670 : vector<1x1x24x128xf32> to vector<24x128xf32>
    %c2_i32_232 = arith.constant 2 : i32
    %672 = tpu.dynamic_rotate %671 by %c2_i32_232 dim 1 : vector<24x128xf32>, i32 -> vector<24x128xf32>
    %c12_233 = arith.constant 12 : index
    %673 = memref.load %arg3[%c12_233] : memref<72xf32, #tpu.memory_space<smem>>
    %674 = vector.broadcast %673 : f32 to vector<24x128xf32>
    %675 = arith.mulf %674, %672 : vector<24x128xf32>
    %676 = arith.addf %665, %675 : vector<24x128xf32>
    %c48_234 = arith.constant 48 : index
    %677 = memref.load %arg3[%c48_234] : memref<72xf32, #tpu.memory_space<smem>>
    %678 = vector.broadcast %677 : f32 to vector<24x128xf32>
    %679 = arith.mulf %678, %672 : vector<24x128xf32>
    %680 = arith.addf %669, %679 : vector<24x128xf32>
    %c13_235 = arith.constant 13 : index
    %681 = memref.load %arg3[%c13_235] : memref<72xf32, #tpu.memory_space<smem>>
    %682 = vector.broadcast %681 : f32 to vector<24x128xf32>
    %683 = arith.mulf %682, %671 : vector<24x128xf32>
    %684 = arith.addf %676, %683 : vector<24x128xf32>
    %c49_236 = arith.constant 49 : index
    %685 = memref.load %arg3[%c49_236] : memref<72xf32, #tpu.memory_space<smem>>
    %686 = vector.broadcast %685 : f32 to vector<24x128xf32>
    %687 = arith.mulf %686, %671 : vector<24x128xf32>
    %688 = arith.addf %680, %687 : vector<24x128xf32>
    %c126_i32_237 = arith.constant 126 : i32
    %689 = tpu.dynamic_rotate %671 by %c126_i32_237 dim 1 : vector<24x128xf32>, i32 -> vector<24x128xf32>
    %c14_238 = arith.constant 14 : index
    %690 = memref.load %arg3[%c14_238] : memref<72xf32, #tpu.memory_space<smem>>
    %691 = vector.broadcast %690 : f32 to vector<24x128xf32>
    %692 = arith.mulf %691, %689 : vector<24x128xf32>
    %693 = arith.addf %684, %692 : vector<24x128xf32>
    %c50_239 = arith.constant 50 : index
    %694 = memref.load %arg3[%c50_239] : memref<72xf32, #tpu.memory_space<smem>>
    %695 = vector.broadcast %694 : f32 to vector<24x128xf32>
    %696 = arith.mulf %695, %689 : vector<24x128xf32>
    %697 = arith.addf %688, %696 : vector<24x128xf32>
    %c0_240 = arith.constant 0 : index
    %c1_241 = arith.constant 1 : index
    %c4_242 = arith.constant 4 : index
    %c0_243 = arith.constant 0 : index
    %698 = vector.load %arg7[%c0_240, %c1_241, %c4_242, %c0_243] : memref<1x4x28x128xf32, #tpu.memory_space<vmem>>, vector<1x1x24x128xf32>
    %699 = vector.shape_cast %698 : vector<1x1x24x128xf32> to vector<24x128xf32>
    %c2_i32_244 = arith.constant 2 : i32
    %700 = tpu.dynamic_rotate %699 by %c2_i32_244 dim 1 : vector<24x128xf32>, i32 -> vector<24x128xf32>
    %c15_245 = arith.constant 15 : index
    %701 = memref.load %arg3[%c15_245] : memref<72xf32, #tpu.memory_space<smem>>
    %702 = vector.broadcast %701 : f32 to vector<24x128xf32>
    %703 = arith.mulf %702, %700 : vector<24x128xf32>
    %704 = arith.addf %693, %703 : vector<24x128xf32>
    %c51_246 = arith.constant 51 : index
    %705 = memref.load %arg3[%c51_246] : memref<72xf32, #tpu.memory_space<smem>>
    %706 = vector.broadcast %705 : f32 to vector<24x128xf32>
    %707 = arith.mulf %706, %700 : vector<24x128xf32>
    %708 = arith.addf %697, %707 : vector<24x128xf32>
    %c16_247 = arith.constant 16 : index
    %709 = memref.load %arg3[%c16_247] : memref<72xf32, #tpu.memory_space<smem>>
    %710 = vector.broadcast %709 : f32 to vector<24x128xf32>
    %711 = arith.mulf %710, %699 : vector<24x128xf32>
    %712 = arith.addf %704, %711 : vector<24x128xf32>
    %c52_248 = arith.constant 52 : index
    %713 = memref.load %arg3[%c52_248] : memref<72xf32, #tpu.memory_space<smem>>
    %714 = vector.broadcast %713 : f32 to vector<24x128xf32>
    %715 = arith.mulf %714, %699 : vector<24x128xf32>
    %716 = arith.addf %708, %715 : vector<24x128xf32>
    %c126_i32_249 = arith.constant 126 : i32
    %717 = tpu.dynamic_rotate %699 by %c126_i32_249 dim 1 : vector<24x128xf32>, i32 -> vector<24x128xf32>
    %c17_250 = arith.constant 17 : index
    %718 = memref.load %arg3[%c17_250] : memref<72xf32, #tpu.memory_space<smem>>
    %719 = vector.broadcast %718 : f32 to vector<24x128xf32>
    %720 = arith.mulf %719, %717 : vector<24x128xf32>
    %721 = arith.addf %712, %720 : vector<24x128xf32>
    %c53_251 = arith.constant 53 : index
    %722 = memref.load %arg3[%c53_251] : memref<72xf32, #tpu.memory_space<smem>>
    %723 = vector.broadcast %722 : f32 to vector<24x128xf32>
    %724 = arith.mulf %723, %717 : vector<24x128xf32>
    %725 = arith.addf %716, %724 : vector<24x128xf32>
    %c0_252 = arith.constant 0 : index
    %c2_253 = arith.constant 2 : index
    %c0_254 = arith.constant 0 : index
    %c0_255 = arith.constant 0 : index
    %726 = vector.load %arg7[%c0_252, %c2_253, %c0_254, %c0_255] : memref<1x4x28x128xf32, #tpu.memory_space<vmem>>, vector<1x1x24x128xf32>
    %727 = vector.shape_cast %726 : vector<1x1x24x128xf32> to vector<24x128xf32>
    %c2_i32_256 = arith.constant 2 : i32
    %728 = tpu.dynamic_rotate %727 by %c2_i32_256 dim 1 : vector<24x128xf32>, i32 -> vector<24x128xf32>
    %c18_257 = arith.constant 18 : index
    %729 = memref.load %arg3[%c18_257] : memref<72xf32, #tpu.memory_space<smem>>
    %730 = vector.broadcast %729 : f32 to vector<24x128xf32>
    %731 = arith.mulf %730, %728 : vector<24x128xf32>
    %732 = arith.addf %721, %731 : vector<24x128xf32>
    %c54_258 = arith.constant 54 : index
    %733 = memref.load %arg3[%c54_258] : memref<72xf32, #tpu.memory_space<smem>>
    %734 = vector.broadcast %733 : f32 to vector<24x128xf32>
    %735 = arith.mulf %734, %728 : vector<24x128xf32>
    %736 = arith.addf %725, %735 : vector<24x128xf32>
    %c19_259 = arith.constant 19 : index
    %737 = memref.load %arg3[%c19_259] : memref<72xf32, #tpu.memory_space<smem>>
    %738 = vector.broadcast %737 : f32 to vector<24x128xf32>
    %739 = arith.mulf %738, %727 : vector<24x128xf32>
    %740 = arith.addf %732, %739 : vector<24x128xf32>
    %c55_260 = arith.constant 55 : index
    %741 = memref.load %arg3[%c55_260] : memref<72xf32, #tpu.memory_space<smem>>
    %742 = vector.broadcast %741 : f32 to vector<24x128xf32>
    %743 = arith.mulf %742, %727 : vector<24x128xf32>
    %744 = arith.addf %736, %743 : vector<24x128xf32>
    %c126_i32_261 = arith.constant 126 : i32
    %745 = tpu.dynamic_rotate %727 by %c126_i32_261 dim 1 : vector<24x128xf32>, i32 -> vector<24x128xf32>
    %c20_262 = arith.constant 20 : index
    %746 = memref.load %arg3[%c20_262] : memref<72xf32, #tpu.memory_space<smem>>
    %747 = vector.broadcast %746 : f32 to vector<24x128xf32>
    %748 = arith.mulf %747, %745 : vector<24x128xf32>
    %749 = arith.addf %740, %748 : vector<24x128xf32>
    %c56_263 = arith.constant 56 : index
    %750 = memref.load %arg3[%c56_263] : memref<72xf32, #tpu.memory_space<smem>>
    %751 = vector.broadcast %750 : f32 to vector<24x128xf32>
    %752 = arith.mulf %751, %745 : vector<24x128xf32>
    %753 = arith.addf %744, %752 : vector<24x128xf32>
    %c0_264 = arith.constant 0 : index
    %c2_265 = arith.constant 2 : index
    %c2_266 = arith.constant 2 : index
    %c0_267 = arith.constant 0 : index
    %754 = vector.load %arg7[%c0_264, %c2_265, %c2_266, %c0_267] : memref<1x4x28x128xf32, #tpu.memory_space<vmem>>, vector<1x1x24x128xf32>
    %755 = vector.shape_cast %754 : vector<1x1x24x128xf32> to vector<24x128xf32>
    %c2_i32_268 = arith.constant 2 : i32
    %756 = tpu.dynamic_rotate %755 by %c2_i32_268 dim 1 : vector<24x128xf32>, i32 -> vector<24x128xf32>
    %c21_269 = arith.constant 21 : index
    %757 = memref.load %arg3[%c21_269] : memref<72xf32, #tpu.memory_space<smem>>
    %758 = vector.broadcast %757 : f32 to vector<24x128xf32>
    %759 = arith.mulf %758, %756 : vector<24x128xf32>
    %760 = arith.addf %749, %759 : vector<24x128xf32>
    %c57_270 = arith.constant 57 : index
    %761 = memref.load %arg3[%c57_270] : memref<72xf32, #tpu.memory_space<smem>>
    %762 = vector.broadcast %761 : f32 to vector<24x128xf32>
    %763 = arith.mulf %762, %756 : vector<24x128xf32>
    %764 = arith.addf %753, %763 : vector<24x128xf32>
    %c22_271 = arith.constant 22 : index
    %765 = memref.load %arg3[%c22_271] : memref<72xf32, #tpu.memory_space<smem>>
    %766 = vector.broadcast %765 : f32 to vector<24x128xf32>
    %767 = arith.mulf %766, %755 : vector<24x128xf32>
    %768 = arith.addf %760, %767 : vector<24x128xf32>
    %c58_272 = arith.constant 58 : index
    %769 = memref.load %arg3[%c58_272] : memref<72xf32, #tpu.memory_space<smem>>
    %770 = vector.broadcast %769 : f32 to vector<24x128xf32>
    %771 = arith.mulf %770, %755 : vector<24x128xf32>
    %772 = arith.addf %764, %771 : vector<24x128xf32>
    %c126_i32_273 = arith.constant 126 : i32
    %773 = tpu.dynamic_rotate %755 by %c126_i32_273 dim 1 : vector<24x128xf32>, i32 -> vector<24x128xf32>
    %c23_274 = arith.constant 23 : index
    %774 = memref.load %arg3[%c23_274] : memref<72xf32, #tpu.memory_space<smem>>
    %775 = vector.broadcast %774 : f32 to vector<24x128xf32>
    %776 = arith.mulf %775, %773 : vector<24x128xf32>
    %777 = arith.addf %768, %776 : vector<24x128xf32>
    %c59_275 = arith.constant 59 : index
    %778 = memref.load %arg3[%c59_275] : memref<72xf32, #tpu.memory_space<smem>>
    %779 = vector.broadcast %778 : f32 to vector<24x128xf32>
    %780 = arith.mulf %779, %773 : vector<24x128xf32>
    %781 = arith.addf %772, %780 : vector<24x128xf32>
    %c0_276 = arith.constant 0 : index
    %c2_277 = arith.constant 2 : index
    %c4_278 = arith.constant 4 : index
    %c0_279 = arith.constant 0 : index
    %782 = vector.load %arg7[%c0_276, %c2_277, %c4_278, %c0_279] : memref<1x4x28x128xf32, #tpu.memory_space<vmem>>, vector<1x1x24x128xf32>
    %783 = vector.shape_cast %782 : vector<1x1x24x128xf32> to vector<24x128xf32>
    %c2_i32_280 = arith.constant 2 : i32
    %784 = tpu.dynamic_rotate %783 by %c2_i32_280 dim 1 : vector<24x128xf32>, i32 -> vector<24x128xf32>
    %c24_281 = arith.constant 24 : index
    %785 = memref.load %arg3[%c24_281] : memref<72xf32, #tpu.memory_space<smem>>
    %786 = vector.broadcast %785 : f32 to vector<24x128xf32>
    %787 = arith.mulf %786, %784 : vector<24x128xf32>
    %788 = arith.addf %777, %787 : vector<24x128xf32>
    %c60_282 = arith.constant 60 : index
    %789 = memref.load %arg3[%c60_282] : memref<72xf32, #tpu.memory_space<smem>>
    %790 = vector.broadcast %789 : f32 to vector<24x128xf32>
    %791 = arith.mulf %790, %784 : vector<24x128xf32>
    %792 = arith.addf %781, %791 : vector<24x128xf32>
    %c25_283 = arith.constant 25 : index
    %793 = memref.load %arg3[%c25_283] : memref<72xf32, #tpu.memory_space<smem>>
    %794 = vector.broadcast %793 : f32 to vector<24x128xf32>
    %795 = arith.mulf %794, %783 : vector<24x128xf32>
    %796 = arith.addf %788, %795 : vector<24x128xf32>
    %c61_284 = arith.constant 61 : index
    %797 = memref.load %arg3[%c61_284] : memref<72xf32, #tpu.memory_space<smem>>
    %798 = vector.broadcast %797 : f32 to vector<24x128xf32>
    %799 = arith.mulf %798, %783 : vector<24x128xf32>
    %800 = arith.addf %792, %799 : vector<24x128xf32>
    %c126_i32_285 = arith.constant 126 : i32
    %801 = tpu.dynamic_rotate %783 by %c126_i32_285 dim 1 : vector<24x128xf32>, i32 -> vector<24x128xf32>
    %c26_286 = arith.constant 26 : index
    %802 = memref.load %arg3[%c26_286] : memref<72xf32, #tpu.memory_space<smem>>
    %803 = vector.broadcast %802 : f32 to vector<24x128xf32>
    %804 = arith.mulf %803, %801 : vector<24x128xf32>
    %805 = arith.addf %796, %804 : vector<24x128xf32>
    %c62_287 = arith.constant 62 : index
    %806 = memref.load %arg3[%c62_287] : memref<72xf32, #tpu.memory_space<smem>>
    %807 = vector.broadcast %806 : f32 to vector<24x128xf32>
    %808 = arith.mulf %807, %801 : vector<24x128xf32>
    %809 = arith.addf %800, %808 : vector<24x128xf32>
    %c0_288 = arith.constant 0 : index
    %c3_289 = arith.constant 3 : index
    %c0_290 = arith.constant 0 : index
    %c0_291 = arith.constant 0 : index
    %810 = vector.load %arg7[%c0_288, %c3_289, %c0_290, %c0_291] : memref<1x4x28x128xf32, #tpu.memory_space<vmem>>, vector<1x1x24x128xf32>
    %811 = vector.shape_cast %810 : vector<1x1x24x128xf32> to vector<24x128xf32>
    %c2_i32_292 = arith.constant 2 : i32
    %812 = tpu.dynamic_rotate %811 by %c2_i32_292 dim 1 : vector<24x128xf32>, i32 -> vector<24x128xf32>
    %c27_293 = arith.constant 27 : index
    %813 = memref.load %arg3[%c27_293] : memref<72xf32, #tpu.memory_space<smem>>
    %814 = vector.broadcast %813 : f32 to vector<24x128xf32>
    %815 = arith.mulf %814, %812 : vector<24x128xf32>
    %816 = arith.addf %805, %815 : vector<24x128xf32>
    %c63_294 = arith.constant 63 : index
    %817 = memref.load %arg3[%c63_294] : memref<72xf32, #tpu.memory_space<smem>>
    %818 = vector.broadcast %817 : f32 to vector<24x128xf32>
    %819 = arith.mulf %818, %812 : vector<24x128xf32>
    %820 = arith.addf %809, %819 : vector<24x128xf32>
    %c28_295 = arith.constant 28 : index
    %821 = memref.load %arg3[%c28_295] : memref<72xf32, #tpu.memory_space<smem>>
    %822 = vector.broadcast %821 : f32 to vector<24x128xf32>
    %823 = arith.mulf %822, %811 : vector<24x128xf32>
    %824 = arith.addf %816, %823 : vector<24x128xf32>
    %c64_296 = arith.constant 64 : index
    %825 = memref.load %arg3[%c64_296] : memref<72xf32, #tpu.memory_space<smem>>
    %826 = vector.broadcast %825 : f32 to vector<24x128xf32>
    %827 = arith.mulf %826, %811 : vector<24x128xf32>
    %828 = arith.addf %820, %827 : vector<24x128xf32>
    %c126_i32_297 = arith.constant 126 : i32
    %829 = tpu.dynamic_rotate %811 by %c126_i32_297 dim 1 : vector<24x128xf32>, i32 -> vector<24x128xf32>
    %c29_298 = arith.constant 29 : index
    %830 = memref.load %arg3[%c29_298] : memref<72xf32, #tpu.memory_space<smem>>
    %831 = vector.broadcast %830 : f32 to vector<24x128xf32>
    %832 = arith.mulf %831, %829 : vector<24x128xf32>
    %833 = arith.addf %824, %832 : vector<24x128xf32>
    %c65_299 = arith.constant 65 : index
    %834 = memref.load %arg3[%c65_299] : memref<72xf32, #tpu.memory_space<smem>>
    %835 = vector.broadcast %834 : f32 to vector<24x128xf32>
    %836 = arith.mulf %835, %829 : vector<24x128xf32>
    %837 = arith.addf %828, %836 : vector<24x128xf32>
    %c0_300 = arith.constant 0 : index
    %c3_301 = arith.constant 3 : index
    %c2_302 = arith.constant 2 : index
    %c0_303 = arith.constant 0 : index
    %838 = vector.load %arg7[%c0_300, %c3_301, %c2_302, %c0_303] : memref<1x4x28x128xf32, #tpu.memory_space<vmem>>, vector<1x1x24x128xf32>
    %839 = vector.shape_cast %838 : vector<1x1x24x128xf32> to vector<24x128xf32>
    %c2_i32_304 = arith.constant 2 : i32
    %840 = tpu.dynamic_rotate %839 by %c2_i32_304 dim 1 : vector<24x128xf32>, i32 -> vector<24x128xf32>
    %c30_305 = arith.constant 30 : index
    %841 = memref.load %arg3[%c30_305] : memref<72xf32, #tpu.memory_space<smem>>
    %842 = vector.broadcast %841 : f32 to vector<24x128xf32>
    %843 = arith.mulf %842, %840 : vector<24x128xf32>
    %844 = arith.addf %833, %843 : vector<24x128xf32>
    %c66_306 = arith.constant 66 : index
    %845 = memref.load %arg3[%c66_306] : memref<72xf32, #tpu.memory_space<smem>>
    %846 = vector.broadcast %845 : f32 to vector<24x128xf32>
    %847 = arith.mulf %846, %840 : vector<24x128xf32>
    %848 = arith.addf %837, %847 : vector<24x128xf32>
    %c31_307 = arith.constant 31 : index
    %849 = memref.load %arg3[%c31_307] : memref<72xf32, #tpu.memory_space<smem>>
    %850 = vector.broadcast %849 : f32 to vector<24x128xf32>
    %851 = arith.mulf %850, %839 : vector<24x128xf32>
    %852 = arith.addf %844, %851 : vector<24x128xf32>
    %c67_308 = arith.constant 67 : index
    %853 = memref.load %arg3[%c67_308] : memref<72xf32, #tpu.memory_space<smem>>
    %854 = vector.broadcast %853 : f32 to vector<24x128xf32>
    %855 = arith.mulf %854, %839 : vector<24x128xf32>
    %856 = arith.addf %848, %855 : vector<24x128xf32>
    %c126_i32_309 = arith.constant 126 : i32
    %857 = tpu.dynamic_rotate %839 by %c126_i32_309 dim 1 : vector<24x128xf32>, i32 -> vector<24x128xf32>
    %c32_310 = arith.constant 32 : index
    %858 = memref.load %arg3[%c32_310] : memref<72xf32, #tpu.memory_space<smem>>
    %859 = vector.broadcast %858 : f32 to vector<24x128xf32>
    %860 = arith.mulf %859, %857 : vector<24x128xf32>
    %861 = arith.addf %852, %860 : vector<24x128xf32>
    %c68_311 = arith.constant 68 : index
    %862 = memref.load %arg3[%c68_311] : memref<72xf32, #tpu.memory_space<smem>>
    %863 = vector.broadcast %862 : f32 to vector<24x128xf32>
    %864 = arith.mulf %863, %857 : vector<24x128xf32>
    %865 = arith.addf %856, %864 : vector<24x128xf32>
    %c0_312 = arith.constant 0 : index
    %c3_313 = arith.constant 3 : index
    %c4_314 = arith.constant 4 : index
    %c0_315 = arith.constant 0 : index
    %866 = vector.load %arg7[%c0_312, %c3_313, %c4_314, %c0_315] : memref<1x4x28x128xf32, #tpu.memory_space<vmem>>, vector<1x1x24x128xf32>
    %867 = vector.shape_cast %866 : vector<1x1x24x128xf32> to vector<24x128xf32>
    %c2_i32_316 = arith.constant 2 : i32
    %868 = tpu.dynamic_rotate %867 by %c2_i32_316 dim 1 : vector<24x128xf32>, i32 -> vector<24x128xf32>
    %c33_317 = arith.constant 33 : index
    %869 = memref.load %arg3[%c33_317] : memref<72xf32, #tpu.memory_space<smem>>
    %870 = vector.broadcast %869 : f32 to vector<24x128xf32>
    %871 = arith.mulf %870, %868 : vector<24x128xf32>
    %872 = arith.addf %861, %871 : vector<24x128xf32>
    %c69_318 = arith.constant 69 : index
    %873 = memref.load %arg3[%c69_318] : memref<72xf32, #tpu.memory_space<smem>>
    %874 = vector.broadcast %873 : f32 to vector<24x128xf32>
    %875 = arith.mulf %874, %868 : vector<24x128xf32>
    %876 = arith.addf %865, %875 : vector<24x128xf32>
    %c34_319 = arith.constant 34 : index
    %877 = memref.load %arg3[%c34_319] : memref<72xf32, #tpu.memory_space<smem>>
    %878 = vector.broadcast %877 : f32 to vector<24x128xf32>
    %879 = arith.mulf %878, %867 : vector<24x128xf32>
    %880 = arith.addf %872, %879 : vector<24x128xf32>
    %c70_320 = arith.constant 70 : index
    %881 = memref.load %arg3[%c70_320] : memref<72xf32, #tpu.memory_space<smem>>
    %882 = vector.broadcast %881 : f32 to vector<24x128xf32>
    %883 = arith.mulf %882, %867 : vector<24x128xf32>
    %884 = arith.addf %876, %883 : vector<24x128xf32>
    %c126_i32_321 = arith.constant 126 : i32
    %885 = tpu.dynamic_rotate %867 by %c126_i32_321 dim 1 : vector<24x128xf32>, i32 -> vector<24x128xf32>
    %c35_322 = arith.constant 35 : index
    %886 = memref.load %arg3[%c35_322] : memref<72xf32, #tpu.memory_space<smem>>
    %887 = vector.broadcast %886 : f32 to vector<24x128xf32>
    %888 = arith.mulf %887, %885 : vector<24x128xf32>
    %889 = arith.addf %880, %888 : vector<24x128xf32>
    %c71_323 = arith.constant 71 : index
    %890 = memref.load %arg3[%c71_323] : memref<72xf32, #tpu.memory_space<smem>>
    %891 = vector.broadcast %890 : f32 to vector<24x128xf32>
    %892 = arith.mulf %891, %885 : vector<24x128xf32>
    %893 = arith.addf %884, %892 : vector<24x128xf32>
    %cst_324 = arith.constant 0.000000e+00 : f32
    %894 = vector.broadcast %cst_324 : f32 to vector<24x128xf32>
    %895 = arith.maximumf %889, %894 : vector<24x128xf32>
    %896 = arith.mulf %895, %0 : vector<24x128xf32>
    %c0_325 = arith.constant 0 : index
    %c2_326 = arith.constant 2 : index
    %c0_327 = arith.constant 0 : index
    %c0_328 = arith.constant 0 : index
    %897 = vector.load %arg8[%c0_325, %c2_326, %c0_327, %c0_328] : memref<1x8x24x128xf32, #tpu.memory_space<vmem>>, vector<1x1x24x128xf32>
    %898 = vector.shape_cast %897 : vector<1x1x24x128xf32> to vector<24x128xf32>
    %899 = vector.shape_cast %896 : vector<24x128xf32> to vector<1x1x24x128xf32>
    tpu.vector_store %arg8[%c0_325, %c2_326, %c0_327, %c0_328], %899 {strides = array<i32>} : memref<1x8x24x128xf32, #tpu.memory_space<vmem>>, vector<1x1x24x128xf32>,
    %c0_329 = arith.constant 0 : index
    %c0_330 = arith.constant 0 : index
    %c0_331 = arith.constant 0 : index
    %900 = vector.load %arg9[%c0_329, %c0_330, %c0_331] : memref<2x28x128xf32, #tpu.memory_space<vmem>>, vector<1x2x128xf32>
    %901 = vector.shape_cast %900 : vector<1x2x128xf32> to vector<2x128xf32>
    %902 = vector.shape_cast %1 : vector<2x128xf32> to vector<1x2x128xf32>
    tpu.vector_store %arg9[%c0_329, %c0_330, %c0_331], %902 {strides = array<i32>} : memref<2x28x128xf32, #tpu.memory_space<vmem>>, vector<1x2x128xf32>,
    %c0_332 = arith.constant 0 : index
    %c2_333 = arith.constant 2 : index
    %c0_334 = arith.constant 0 : index
    %903 = vector.load %arg9[%c0_332, %c2_333, %c0_334] : memref<2x28x128xf32, #tpu.memory_space<vmem>>, vector<1x24x128xf32>
    %904 = vector.shape_cast %903 : vector<1x24x128xf32> to vector<24x128xf32>
    %905 = vector.shape_cast %896 : vector<24x128xf32> to vector<1x24x128xf32>
    tpu.vector_store %arg9[%c0_332, %c2_333, %c0_334], %905 {strides = array<i32>} : memref<2x28x128xf32, #tpu.memory_space<vmem>>, vector<1x24x128xf32>,
    %c0_335 = arith.constant 0 : index
    %c26_336 = arith.constant 26 : index
    %c0_337 = arith.constant 0 : index
    %906 = vector.load %arg9[%c0_335, %c26_336, %c0_337] : memref<2x28x128xf32, #tpu.memory_space<vmem>>, vector<1x2x128xf32>
    %907 = vector.shape_cast %906 : vector<1x2x128xf32> to vector<2x128xf32>
    %908 = vector.shape_cast %1 : vector<2x128xf32> to vector<1x2x128xf32>
    tpu.vector_store %arg9[%c0_335, %c26_336, %c0_337], %908 {strides = array<i32>} : memref<2x28x128xf32, #tpu.memory_space<vmem>>, vector<1x2x128xf32>,
    %cst_338 = arith.constant 0.000000e+00 : f32
    %909 = vector.broadcast %cst_338 : f32 to vector<24x128xf32>
    %910 = arith.maximumf %893, %909 : vector<24x128xf32>
    %911 = arith.mulf %910, %0 : vector<24x128xf32>
    %c0_339 = arith.constant 0 : index
    %c3_340 = arith.constant 3 : index
    %c0_341 = arith.constant 0 : index
    %c0_342 = arith.constant 0 : index
    %912 = vector.load %arg8[%c0_339, %c3_340, %c0_341, %c0_342] : memref<1x8x24x128xf32, #tpu.memory_space<vmem>>, vector<1x1x24x128xf32>
    %913 = vector.shape_cast %912 : vector<1x1x24x128xf32> to vector<24x128xf32>
    %914 = vector.shape_cast %911 : vector<24x128xf32> to vector<1x1x24x128xf32>
    tpu.vector_store %arg8[%c0_339, %c3_340, %c0_341, %c0_342], %914 {strides = array<i32>} : memref<1x8x24x128xf32, #tpu.memory_space<vmem>>, vector<1x1x24x128xf32>,
    %c1_343 = arith.constant 1 : index
    %c0_344 = arith.constant 0 : index
    %c0_345 = arith.constant 0 : index
    %915 = vector.load %arg9[%c1_343, %c0_344, %c0_345] : memref<2x28x128xf32, #tpu.memory_space<vmem>>, vector<1x2x128xf32>
    %916 = vector.shape_cast %915 : vector<1x2x128xf32> to vector<2x128xf32>
    %917 = vector.shape_cast %1 : vector<2x128xf32> to vector<1x2x128xf32>
    tpu.vector_store %arg9[%c1_343, %c0_344, %c0_345], %917 {strides = array<i32>} : memref<2x28x128xf32, #tpu.memory_space<vmem>>, vector<1x2x128xf32>,
    %c1_346 = arith.constant 1 : index
    %c2_347 = arith.constant 2 : index
    %c0_348 = arith.constant 0 : index
    %918 = vector.load %arg9[%c1_346, %c2_347, %c0_348] : memref<2x28x128xf32, #tpu.memory_space<vmem>>, vector<1x24x128xf32>
    %919 = vector.shape_cast %918 : vector<1x24x128xf32> to vector<24x128xf32>
    %920 = vector.shape_cast %911 : vector<24x128xf32> to vector<1x24x128xf32>
    tpu.vector_store %arg9[%c1_346, %c2_347, %c0_348], %920 {strides = array<i32>} : memref<2x28x128xf32, #tpu.memory_space<vmem>>, vector<1x24x128xf32>,
    %c1_349 = arith.constant 1 : index
    %c26_350 = arith.constant 26 : index
    %c0_351 = arith.constant 0 : index
    %921 = vector.load %arg9[%c1_349, %c26_350, %c0_351] : memref<2x28x128xf32, #tpu.memory_space<vmem>>, vector<1x2x128xf32>
    %922 = vector.shape_cast %921 : vector<1x2x128xf32> to vector<2x128xf32>
    %923 = vector.shape_cast %1 : vector<2x128xf32> to vector<1x2x128xf32>
    tpu.vector_store %arg9[%c1_349, %c26_350, %c0_351], %923 {strides = array<i32>} : memref<2x28x128xf32, #tpu.memory_space<vmem>>, vector<1x2x128xf32>,
    %c4_352 = arith.constant 4 : index
    %924 = memref.load %arg1[%c4_352] : memref<8xf32, #tpu.memory_space<smem>>
    %925 = vector.broadcast %924 : f32 to vector<24x128xf32>
    %c5_353 = arith.constant 5 : index
    %926 = memref.load %arg1[%c5_353] : memref<8xf32, #tpu.memory_space<smem>>
    %927 = vector.broadcast %926 : f32 to vector<24x128xf32>
    %c0_354 = arith.constant 0 : index
    %c1_355 = arith.constant 1 : index
    %c0_356 = arith.constant 0 : index
    %928 = vector.load %arg9[%c0_354, %c1_355, %c0_356] : memref<2x28x128xf32, #tpu.memory_space<vmem>>, vector<1x24x128xf32>
    %929 = vector.shape_cast %928 : vector<1x24x128xf32> to vector<24x128xf32>
    %c1_i32_357 = arith.constant 1 : i32
    %930 = tpu.dynamic_rotate %929 by %c1_i32_357 dim 1 : vector<24x128xf32>, i32 -> vector<24x128xf32>
    %c0_358 = arith.constant 0 : index
    %931 = memref.load %arg4[%c0_358] : memref<36xf32, #tpu.memory_space<smem>>
    %932 = vector.broadcast %931 : f32 to vector<24x128xf32>
    %933 = arith.mulf %932, %930 : vector<24x128xf32>
    %934 = arith.addf %925, %933 : vector<24x128xf32>
    %c18_359 = arith.constant 18 : index
    %935 = memref.load %arg4[%c18_359] : memref<36xf32, #tpu.memory_space<smem>>
    %936 = vector.broadcast %935 : f32 to vector<24x128xf32>
    %937 = arith.mulf %936, %930 : vector<24x128xf32>
    %938 = arith.addf %927, %937 : vector<24x128xf32>
    %c1_360 = arith.constant 1 : index
    %939 = memref.load %arg4[%c1_360] : memref<36xf32, #tpu.memory_space<smem>>
    %940 = vector.broadcast %939 : f32 to vector<24x128xf32>
    %941 = arith.mulf %940, %929 : vector<24x128xf32>
    %942 = arith.addf %934, %941 : vector<24x128xf32>
    %c19_361 = arith.constant 19 : index
    %943 = memref.load %arg4[%c19_361] : memref<36xf32, #tpu.memory_space<smem>>
    %944 = vector.broadcast %943 : f32 to vector<24x128xf32>
    %945 = arith.mulf %944, %929 : vector<24x128xf32>
    %946 = arith.addf %938, %945 : vector<24x128xf32>
    %c127_i32_362 = arith.constant 127 : i32
    %947 = tpu.dynamic_rotate %929 by %c127_i32_362 dim 1 : vector<24x128xf32>, i32 -> vector<24x128xf32>
    %c2_363 = arith.constant 2 : index
    %948 = memref.load %arg4[%c2_363] : memref<36xf32, #tpu.memory_space<smem>>
    %949 = vector.broadcast %948 : f32 to vector<24x128xf32>
    %950 = arith.mulf %949, %947 : vector<24x128xf32>
    %951 = arith.addf %942, %950 : vector<24x128xf32>
    %c20_364 = arith.constant 20 : index
    %952 = memref.load %arg4[%c20_364] : memref<36xf32, #tpu.memory_space<smem>>
    %953 = vector.broadcast %952 : f32 to vector<24x128xf32>
    %954 = arith.mulf %953, %947 : vector<24x128xf32>
    %955 = arith.addf %946, %954 : vector<24x128xf32>
    %c0_365 = arith.constant 0 : index
    %c2_366 = arith.constant 2 : index
    %c0_367 = arith.constant 0 : index
    %956 = vector.load %arg9[%c0_365, %c2_366, %c0_367] : memref<2x28x128xf32, #tpu.memory_space<vmem>>, vector<1x24x128xf32>
    %957 = vector.shape_cast %956 : vector<1x24x128xf32> to vector<24x128xf32>
    %c1_i32_368 = arith.constant 1 : i32
    %958 = tpu.dynamic_rotate %957 by %c1_i32_368 dim 1 : vector<24x128xf32>, i32 -> vector<24x128xf32>
    %c3_369 = arith.constant 3 : index
    %959 = memref.load %arg4[%c3_369] : memref<36xf32, #tpu.memory_space<smem>>
    %960 = vector.broadcast %959 : f32 to vector<24x128xf32>
    %961 = arith.mulf %960, %958 : vector<24x128xf32>
    %962 = arith.addf %951, %961 : vector<24x128xf32>
    %c21_370 = arith.constant 21 : index
    %963 = memref.load %arg4[%c21_370] : memref<36xf32, #tpu.memory_space<smem>>
    %964 = vector.broadcast %963 : f32 to vector<24x128xf32>
    %965 = arith.mulf %964, %958 : vector<24x128xf32>
    %966 = arith.addf %955, %965 : vector<24x128xf32>
    %c4_371 = arith.constant 4 : index
    %967 = memref.load %arg4[%c4_371] : memref<36xf32, #tpu.memory_space<smem>>
    %968 = vector.broadcast %967 : f32 to vector<24x128xf32>
    %969 = arith.mulf %968, %957 : vector<24x128xf32>
    %970 = arith.addf %962, %969 : vector<24x128xf32>
    %c22_372 = arith.constant 22 : index
    %971 = memref.load %arg4[%c22_372] : memref<36xf32, #tpu.memory_space<smem>>
    %972 = vector.broadcast %971 : f32 to vector<24x128xf32>
    %973 = arith.mulf %972, %957 : vector<24x128xf32>
    %974 = arith.addf %966, %973 : vector<24x128xf32>
    %c127_i32_373 = arith.constant 127 : i32
    %975 = tpu.dynamic_rotate %957 by %c127_i32_373 dim 1 : vector<24x128xf32>, i32 -> vector<24x128xf32>
    %c5_374 = arith.constant 5 : index
    %976 = memref.load %arg4[%c5_374] : memref<36xf32, #tpu.memory_space<smem>>
    %977 = vector.broadcast %976 : f32 to vector<24x128xf32>
    %978 = arith.mulf %977, %975 : vector<24x128xf32>
    %979 = arith.addf %970, %978 : vector<24x128xf32>
    %c23_375 = arith.constant 23 : index
    %980 = memref.load %arg4[%c23_375] : memref<36xf32, #tpu.memory_space<smem>>
    %981 = vector.broadcast %980 : f32 to vector<24x128xf32>
    %982 = arith.mulf %981, %975 : vector<24x128xf32>
    %983 = arith.addf %974, %982 : vector<24x128xf32>
    %c0_376 = arith.constant 0 : index
    %c3_377 = arith.constant 3 : index
    %c0_378 = arith.constant 0 : index
    %984 = vector.load %arg9[%c0_376, %c3_377, %c0_378] : memref<2x28x128xf32, #tpu.memory_space<vmem>>, vector<1x24x128xf32>
    %985 = vector.shape_cast %984 : vector<1x24x128xf32> to vector<24x128xf32>
    %c1_i32_379 = arith.constant 1 : i32
    %986 = tpu.dynamic_rotate %985 by %c1_i32_379 dim 1 : vector<24x128xf32>, i32 -> vector<24x128xf32>
    %c6_380 = arith.constant 6 : index
    %987 = memref.load %arg4[%c6_380] : memref<36xf32, #tpu.memory_space<smem>>
    %988 = vector.broadcast %987 : f32 to vector<24x128xf32>
    %989 = arith.mulf %988, %986 : vector<24x128xf32>
    %990 = arith.addf %979, %989 : vector<24x128xf32>
    %c24_381 = arith.constant 24 : index
    %991 = memref.load %arg4[%c24_381] : memref<36xf32, #tpu.memory_space<smem>>
    %992 = vector.broadcast %991 : f32 to vector<24x128xf32>
    %993 = arith.mulf %992, %986 : vector<24x128xf32>
    %994 = arith.addf %983, %993 : vector<24x128xf32>
    %c7_382 = arith.constant 7 : index
    %995 = memref.load %arg4[%c7_382] : memref<36xf32, #tpu.memory_space<smem>>
    %996 = vector.broadcast %995 : f32 to vector<24x128xf32>
    %997 = arith.mulf %996, %985 : vector<24x128xf32>
    %998 = arith.addf %990, %997 : vector<24x128xf32>
    %c25_383 = arith.constant 25 : index
    %999 = memref.load %arg4[%c25_383] : memref<36xf32, #tpu.memory_space<smem>>
    %1000 = vector.broadcast %999 : f32 to vector<24x128xf32>
    %1001 = arith.mulf %1000, %985 : vector<24x128xf32>
    %1002 = arith.addf %994, %1001 : vector<24x128xf32>
    %c127_i32_384 = arith.constant 127 : i32
    %1003 = tpu.dynamic_rotate %985 by %c127_i32_384 dim 1 : vector<24x128xf32>, i32 -> vector<24x128xf32>
    %c8_385 = arith.constant 8 : index
    %1004 = memref.load %arg4[%c8_385] : memref<36xf32, #tpu.memory_space<smem>>
    %1005 = vector.broadcast %1004 : f32 to vector<24x128xf32>
    %1006 = arith.mulf %1005, %1003 : vector<24x128xf32>
    %1007 = arith.addf %998, %1006 : vector<24x128xf32>
    %c26_386 = arith.constant 26 : index
    %1008 = memref.load %arg4[%c26_386] : memref<36xf32, #tpu.memory_space<smem>>
    %1009 = vector.broadcast %1008 : f32 to vector<24x128xf32>
    %1010 = arith.mulf %1009, %1003 : vector<24x128xf32>
    %1011 = arith.addf %1002, %1010 : vector<24x128xf32>
    %c1_387 = arith.constant 1 : index
    %c1_388 = arith.constant 1 : index
    %c0_389 = arith.constant 0 : index
    %1012 = vector.load %arg9[%c1_387, %c1_388, %c0_389] : memref<2x28x128xf32, #tpu.memory_space<vmem>>, vector<1x24x128xf32>
    %1013 = vector.shape_cast %1012 : vector<1x24x128xf32> to vector<24x128xf32>
    %c1_i32_390 = arith.constant 1 : i32
    %1014 = tpu.dynamic_rotate %1013 by %c1_i32_390 dim 1 : vector<24x128xf32>, i32 -> vector<24x128xf32>
    %c9_391 = arith.constant 9 : index
    %1015 = memref.load %arg4[%c9_391] : memref<36xf32, #tpu.memory_space<smem>>
    %1016 = vector.broadcast %1015 : f32 to vector<24x128xf32>
    %1017 = arith.mulf %1016, %1014 : vector<24x128xf32>
    %1018 = arith.addf %1007, %1017 : vector<24x128xf32>
    %c27_392 = arith.constant 27 : index
    %1019 = memref.load %arg4[%c27_392] : memref<36xf32, #tpu.memory_space<smem>>
    %1020 = vector.broadcast %1019 : f32 to vector<24x128xf32>
    %1021 = arith.mulf %1020, %1014 : vector<24x128xf32>
    %1022 = arith.addf %1011, %1021 : vector<24x128xf32>
    %c10_393 = arith.constant 10 : index
    %1023 = memref.load %arg4[%c10_393] : memref<36xf32, #tpu.memory_space<smem>>
    %1024 = vector.broadcast %1023 : f32 to vector<24x128xf32>
    %1025 = arith.mulf %1024, %1013 : vector<24x128xf32>
    %1026 = arith.addf %1018, %1025 : vector<24x128xf32>
    %c28_394 = arith.constant 28 : index
    %1027 = memref.load %arg4[%c28_394] : memref<36xf32, #tpu.memory_space<smem>>
    %1028 = vector.broadcast %1027 : f32 to vector<24x128xf32>
    %1029 = arith.mulf %1028, %1013 : vector<24x128xf32>
    %1030 = arith.addf %1022, %1029 : vector<24x128xf32>
    %c127_i32_395 = arith.constant 127 : i32
    %1031 = tpu.dynamic_rotate %1013 by %c127_i32_395 dim 1 : vector<24x128xf32>, i32 -> vector<24x128xf32>
    %c11_396 = arith.constant 11 : index
    %1032 = memref.load %arg4[%c11_396] : memref<36xf32, #tpu.memory_space<smem>>
    %1033 = vector.broadcast %1032 : f32 to vector<24x128xf32>
    %1034 = arith.mulf %1033, %1031 : vector<24x128xf32>
    %1035 = arith.addf %1026, %1034 : vector<24x128xf32>
    %c29_397 = arith.constant 29 : index
    %1036 = memref.load %arg4[%c29_397] : memref<36xf32, #tpu.memory_space<smem>>
    %1037 = vector.broadcast %1036 : f32 to vector<24x128xf32>
    %1038 = arith.mulf %1037, %1031 : vector<24x128xf32>
    %1039 = arith.addf %1030, %1038 : vector<24x128xf32>
    %c1_398 = arith.constant 1 : index
    %c2_399 = arith.constant 2 : index
    %c0_400 = arith.constant 0 : index
    %1040 = vector.load %arg9[%c1_398, %c2_399, %c0_400] : memref<2x28x128xf32, #tpu.memory_space<vmem>>, vector<1x24x128xf32>
    %1041 = vector.shape_cast %1040 : vector<1x24x128xf32> to vector<24x128xf32>
    %c1_i32_401 = arith.constant 1 : i32
    %1042 = tpu.dynamic_rotate %1041 by %c1_i32_401 dim 1 : vector<24x128xf32>, i32 -> vector<24x128xf32>
    %c12_402 = arith.constant 12 : index
    %1043 = memref.load %arg4[%c12_402] : memref<36xf32, #tpu.memory_space<smem>>
    %1044 = vector.broadcast %1043 : f32 to vector<24x128xf32>
    %1045 = arith.mulf %1044, %1042 : vector<24x128xf32>
    %1046 = arith.addf %1035, %1045 : vector<24x128xf32>
    %c30_403 = arith.constant 30 : index
    %1047 = memref.load %arg4[%c30_403] : memref<36xf32, #tpu.memory_space<smem>>
    %1048 = vector.broadcast %1047 : f32 to vector<24x128xf32>
    %1049 = arith.mulf %1048, %1042 : vector<24x128xf32>
    %1050 = arith.addf %1039, %1049 : vector<24x128xf32>
    %c13_404 = arith.constant 13 : index
    %1051 = memref.load %arg4[%c13_404] : memref<36xf32, #tpu.memory_space<smem>>
    %1052 = vector.broadcast %1051 : f32 to vector<24x128xf32>
    %1053 = arith.mulf %1052, %1041 : vector<24x128xf32>
    %1054 = arith.addf %1046, %1053 : vector<24x128xf32>
    %c31_405 = arith.constant 31 : index
    %1055 = memref.load %arg4[%c31_405] : memref<36xf32, #tpu.memory_space<smem>>
    %1056 = vector.broadcast %1055 : f32 to vector<24x128xf32>
    %1057 = arith.mulf %1056, %1041 : vector<24x128xf32>
    %1058 = arith.addf %1050, %1057 : vector<24x128xf32>
    %c127_i32_406 = arith.constant 127 : i32
    %1059 = tpu.dynamic_rotate %1041 by %c127_i32_406 dim 1 : vector<24x128xf32>, i32 -> vector<24x128xf32>
    %c14_407 = arith.constant 14 : index
    %1060 = memref.load %arg4[%c14_407] : memref<36xf32, #tpu.memory_space<smem>>
    %1061 = vector.broadcast %1060 : f32 to vector<24x128xf32>
    %1062 = arith.mulf %1061, %1059 : vector<24x128xf32>
    %1063 = arith.addf %1054, %1062 : vector<24x128xf32>
    %c32_408 = arith.constant 32 : index
    %1064 = memref.load %arg4[%c32_408] : memref<36xf32, #tpu.memory_space<smem>>
    %1065 = vector.broadcast %1064 : f32 to vector<24x128xf32>
    %1066 = arith.mulf %1065, %1059 : vector<24x128xf32>
    %1067 = arith.addf %1058, %1066 : vector<24x128xf32>
    %c1_409 = arith.constant 1 : index
    %c3_410 = arith.constant 3 : index
    %c0_411 = arith.constant 0 : index
    %1068 = vector.load %arg9[%c1_409, %c3_410, %c0_411] : memref<2x28x128xf32, #tpu.memory_space<vmem>>, vector<1x24x128xf32>
    %1069 = vector.shape_cast %1068 : vector<1x24x128xf32> to vector<24x128xf32>
    %c1_i32_412 = arith.constant 1 : i32
    %1070 = tpu.dynamic_rotate %1069 by %c1_i32_412 dim 1 : vector<24x128xf32>, i32 -> vector<24x128xf32>
    %c15_413 = arith.constant 15 : index
    %1071 = memref.load %arg4[%c15_413] : memref<36xf32, #tpu.memory_space<smem>>
    %1072 = vector.broadcast %1071 : f32 to vector<24x128xf32>
    %1073 = arith.mulf %1072, %1070 : vector<24x128xf32>
    %1074 = arith.addf %1063, %1073 : vector<24x128xf32>
    %c33_414 = arith.constant 33 : index
    %1075 = memref.load %arg4[%c33_414] : memref<36xf32, #tpu.memory_space<smem>>
    %1076 = vector.broadcast %1075 : f32 to vector<24x128xf32>
    %1077 = arith.mulf %1076, %1070 : vector<24x128xf32>
    %1078 = arith.addf %1067, %1077 : vector<24x128xf32>
    %c16_415 = arith.constant 16 : index
    %1079 = memref.load %arg4[%c16_415] : memref<36xf32, #tpu.memory_space<smem>>
    %1080 = vector.broadcast %1079 : f32 to vector<24x128xf32>
    %1081 = arith.mulf %1080, %1069 : vector<24x128xf32>
    %1082 = arith.addf %1074, %1081 : vector<24x128xf32>
    %c34_416 = arith.constant 34 : index
    %1083 = memref.load %arg4[%c34_416] : memref<36xf32, #tpu.memory_space<smem>>
    %1084 = vector.broadcast %1083 : f32 to vector<24x128xf32>
    %1085 = arith.mulf %1084, %1069 : vector<24x128xf32>
    %1086 = arith.addf %1078, %1085 : vector<24x128xf32>
    %c127_i32_417 = arith.constant 127 : i32
    %1087 = tpu.dynamic_rotate %1069 by %c127_i32_417 dim 1 : vector<24x128xf32>, i32 -> vector<24x128xf32>
    %c17_418 = arith.constant 17 : index
    %1088 = memref.load %arg4[%c17_418] : memref<36xf32, #tpu.memory_space<smem>>
    %1089 = vector.broadcast %1088 : f32 to vector<24x128xf32>
    %1090 = arith.mulf %1089, %1087 : vector<24x128xf32>
    %1091 = arith.addf %1082, %1090 : vector<24x128xf32>
    %c35_419 = arith.constant 35 : index
    %1092 = memref.load %arg4[%c35_419] : memref<36xf32, #tpu.memory_space<smem>>
    %1093 = vector.broadcast %1092 : f32 to vector<24x128xf32>
    %1094 = arith.mulf %1093, %1087 : vector<24x128xf32>
    %1095 = arith.addf %1086, %1094 : vector<24x128xf32>
    %cst_420 = arith.constant 0.000000e+00 : f32
    %1096 = vector.broadcast %cst_420 : f32 to vector<24x128xf32>
    %1097 = arith.maximumf %1091, %1096 : vector<24x128xf32>
    %c0_421 = arith.constant 0 : index
    %c4_422 = arith.constant 4 : index
    %c0_423 = arith.constant 0 : index
    %c0_424 = arith.constant 0 : index
    %1098 = vector.load %arg8[%c0_421, %c4_422, %c0_423, %c0_424] : memref<1x8x24x128xf32, #tpu.memory_space<vmem>>, vector<1x1x24x128xf32>
    %1099 = vector.shape_cast %1098 : vector<1x1x24x128xf32> to vector<24x128xf32>
    %1100 = vector.shape_cast %1097 : vector<24x128xf32> to vector<1x1x24x128xf32>
    tpu.vector_store %arg8[%c0_421, %c4_422, %c0_423, %c0_424], %1100 {strides = array<i32>} : memref<1x8x24x128xf32, #tpu.memory_space<vmem>>, vector<1x1x24x128xf32>,
    %cst_425 = arith.constant 0.000000e+00 : f32
    %1101 = vector.broadcast %cst_425 : f32 to vector<24x128xf32>
    %1102 = arith.maximumf %1095, %1101 : vector<24x128xf32>
    %c0_426 = arith.constant 0 : index
    %c5_427 = arith.constant 5 : index
    %c0_428 = arith.constant 0 : index
    %c0_429 = arith.constant 0 : index
    %1103 = vector.load %arg8[%c0_426, %c5_427, %c0_428, %c0_429] : memref<1x8x24x128xf32, #tpu.memory_space<vmem>>, vector<1x1x24x128xf32>
    %1104 = vector.shape_cast %1103 : vector<1x1x24x128xf32> to vector<24x128xf32>
    %1105 = vector.shape_cast %1102 : vector<24x128xf32> to vector<1x1x24x128xf32>
    tpu.vector_store %arg8[%c0_426, %c5_427, %c0_428, %c0_429], %1105 {strides = array<i32>} : memref<1x8x24x128xf32, #tpu.memory_space<vmem>>, vector<1x1x24x128xf32>,
    return
  }
  func.func @transform_0(%arg0: i32, %arg1: memref<8xf32, #tpu.memory_space<smem>>, %arg2: memref<72xf32, #tpu.memory_space<smem>>, %arg3: memref<72xf32, #tpu.memory_space<smem>>, %arg4: memref<36xf32, #tpu.memory_space<smem>>, %arg5: memref<36xf32, #tpu.memory_space<smem>>) -> (i32, i32) {
    %c0_i32 = arith.constant 0 : i32
    %c0_i32_0 = arith.constant 0 : i32
    %c0_i32_1 = arith.constant 0 : i32
    return %c0_i32, %c0_i32_0 : i32, i32
  }
  func.func @transform_1(%arg0: i32, %arg1: memref<8xf32, #tpu.memory_space<smem>>, %arg2: memref<72xf32, #tpu.memory_space<smem>>, %arg3: memref<72xf32, #tpu.memory_space<smem>>, %arg4: memref<36xf32, #tpu.memory_space<smem>>, %arg5: memref<36xf32, #tpu.memory_space<smem>>) -> (i32, i32, i32, i32) {
    %c0_i32 = arith.constant 0 : i32
    %c0_i32_0 = arith.constant 0 : i32
    %c0_i32_1 = arith.constant 0 : i32
    %c0_i32_2 = arith.constant 0 : i32
    return %arg0, %c0_i32, %c0_i32_0, %c0_i32_1 : i32, i32, i32, i32
  }
  func.func @transform_2(%arg0: i32, %arg1: memref<8xf32, #tpu.memory_space<smem>>, %arg2: memref<72xf32, #tpu.memory_space<smem>>, %arg3: memref<72xf32, #tpu.memory_space<smem>>, %arg4: memref<36xf32, #tpu.memory_space<smem>>, %arg5: memref<36xf32, #tpu.memory_space<smem>>) -> (i32, i32, i32, i32) {
    %c0_i32 = arith.constant 0 : i32
    %c0_i32_0 = arith.constant 0 : i32
    %c0_i32_1 = arith.constant 0 : i32
    %c0_i32_2 = arith.constant 0 : i32
    return %arg0, %c0_i32, %c0_i32_0, %c0_i32_1 : i32, i32, i32, i32
  }
}

</mosaic_0001>

<bundles_post_ra>
// kernel: tpu_custom_call.1
= control target key start
LH: loop header
LB: loop body
LE: loop exit
PB: predicated region body
PF: predicated region fallthrough
CT: control target
= control target key end

     0   :  { %s5542_s0 = inlined_call_operand.vmem [shape: f32[8], index: 0, kind: input, shape index: {}]   ;;  %s5543_s5 = inlined_call_operand.vmem [shape: f32[24,128], index: 5, kind: input, shape index: {}]   ;;  %s5544_s6 = inlined_call_operand.vmem [shape: f32[1,4,28,128], index: 6, kind: input, shape index: {}]   ;;  %s5545_s7 = inlined_call_operand.hbm [shape: f32[1,8,24,128], index: 7, kind: output, shape index: {}]   ;;  %s5546_s1 = inlined_call_operand.vmem [shape: f32[72], index: 1, kind: input, shape index: {}]   ;;  %s5547_s2 = inlined_call_operand.vmem [shape: f32[72], index: 2, kind: input, shape index: {}]   ;;  %s5548_s3 = inlined_call_operand.vmem [shape: f32[36], index: 3, kind: input, shape index: {}]   ;;  %s5549_s4 = inlined_call_operand.vmem [shape: f32[36], index: 4, kind: input, shape index: {}]  }
   0x1   :  { %s12_s26 = sshll.u32 %s5542_s0, 4  ;;  %s16_s29 = sshll.u32 %s5546_s1, 4  ;;  %s13_s26 = int_to_ptr.vmem [resolvable:$true] %s12_s26  ;;  %s17_s29 = int_to_ptr.vmem [resolvable:$true] %s16_s29 }
   0x2   :  { %s2747_s30 = scalar_lea.vmem %s13_s26, 16  ;;  %p2752_p1 = scmp.lt.s32.totalorder %s13_s26, %s13_s26 }
   0x3   :  { %p2748_p0 = scmp.ne.s32.totalorder %s13_s26, %s2747_s30  ;;  %p2753_p2 = scmp.lt.s32.totalorder %s2747_s30, %s2747_s30 }
   0x5   :  { %p2754_p3 = por %p2753_p2, %p2752_p1 }
   0x7   :  { %p2755_p4 = pnand %p2754_p3, %p2748_p0 }
   0x9   :  { %2758 = shalt.err (!%p2755_p4)  }
   0xa   :  { %s2833_s8 = smov [#allocation4]   ;;  %s2759_s9 = scalar_lea.vmem %s17_s29, 16 }
   0xb   :  { %15 = dma.vmem_to_smem %s13_s26, 16, %s2833_s8, [#allocation3] }
   0xc   :  { %p2760_p5 = scmp.ne.s32.totalorder %s17_s29, %s2759_s9  ;;  %p2764_p6 = scmp.lt.s32.totalorder %s17_s29, %s17_s29 }
   0xd   :  { %p2765_p7 = scmp.lt.s32.totalorder %s2759_s9, %s2759_s9 }
   0xf   :  { %p2766_p8 = por %p2765_p7, %p2764_p6 }
  0x11   :  { %p2767_p9 = pnand %p2766_p8, %p2760_p5 }
  0x13   :  { %2770 = shalt.err (!%p2767_p9)  }
  0x14   :  { %s2834_s0 = smov [#allocation5]   ;;  %s20_s11 = sshll.u32 %s5547_s2, 4  ;;  %s21_s11 = int_to_ptr.vmem [resolvable:$true] %s20_s11 }
  0x15   :  { %19 = dma.vmem_to_smem %s17_s29, 16, %s2834_s0, [#allocation3] }
  0x16   :  { %s24_s14 = sshll.u32 %s5548_s3, 4  ;;  %s2771_s15 = scalar_lea.vmem %s21_s11, 16  ;;  %s25_s14 = int_to_ptr.vmem [resolvable:$true] %s24_s14 }
  0x17   :  { %p2772_p10 = scmp.ne.s32.totalorder %s21_s11, %s2771_s15  ;;  %p2776_p11 = scmp.lt.s32.totalorder %s21_s11, %s21_s11 }
  0x18   :  { %p2777_p12 = scmp.lt.s32.totalorder %s2771_s15, %s2771_s15 }
  0x1a   :  { %p2778_p13 = por %p2777_p12, %p2776_p11 }
  0x1c   :  { %p2779_p0 = pnand %p2778_p13, %p2772_p10 }
  0x1e   :  { %2782 = shalt.err (!%p2779_p0)  }
  0x1f   :  { %s2835_s16 = smov [#allocation6]   ;;  %s2783_s17 = scalar_lea.vmem %s25_s14, 16 }
  0x20   :  { %23 = dma.vmem_to_smem %s21_s11, 16, %s2835_s16, [#allocation3] }
  0x21   :  { %p2784_p1 = scmp.ne.s32.totalorder %s25_s14, %s2783_s17  ;;  %p2788_p2 = scmp.lt.s32.totalorder %s25_s14, %s25_s14 }
  0x22   :  { %p2789_p3 = scmp.lt.s32.totalorder %s2783_s17, %s2783_s17 }
  0x24   :  { %p2790_p4 = por %p2789_p3, %p2788_p2 }
  0x26   :  { %p2791_p5 = pnand %p2790_p4, %p2784_p1 }
  0x28   :  { %2794 = shalt.err (!%p2791_p5)  }
  0x29   :  { %s2836_s2 = smov [#allocation7]   ;;  %s28_s19 = sshll.u32 %s5549_s4, 4  ;;  %s29_s19 = int_to_ptr.vmem [resolvable:$true] %s28_s19 }
  0x2a   :  { %27 = dma.vmem_to_smem %s25_s14, 16, %s2836_s2, [#allocation3] }
  0x2b   :  { %s2795_s20 = scalar_lea.vmem %s29_s19, 16  ;;  %p2800_p7 = scmp.lt.s32.totalorder %s29_s19, %s29_s19 }
  0x2c   :  { %p2796_p6 = scmp.ne.s32.totalorder %s29_s19, %s2795_s20  ;;  %p2801_p8 = scmp.lt.s32.totalorder %s2795_s20, %s2795_s20 }
  0x2e   :  { %p2802_p9 = por %p2801_p8, %p2800_p7 }
  0x30   :  { %p2803_p10 = pnand %p2802_p9, %p2796_p6 }
  0x32   :  { %2806 = shalt.err (!%p2803_p10)  }
  0x33   :  { %s2837_s21 = smov [#allocation8]  }
  0x34   :  { %31 = dma.vmem_to_smem %s29_s19, 16, %s2837_s21, [#allocation3] }
  0x35   :  { %2829 = dma.done.wait [#allocation3], 80 }
  0x36   :  { %2830 = vsyncadd [#allocation3], 4294967216 }
  0x37   :  { %33 = sfence }
  0x38   :  { %v2904_v0 = vld [vmem:[%s5544_s6 + $0x11] sm:$0xff]  ;;  %v2909_v1 = vld [vmem:[%s5544_s6 + $0x1] sm:$0xff]  ;;  %s2838_s25 = smov 1   ;;  %v2918_v2 = vld [vmem:[%s5544_s6 + $0x9] sm:$0xff]  ;;  %s2839_s28 = smov 127  }
  0x39   :  { %53 = vrot.lane.b32.xlu1 %v2904_v0, %s2838_s25  ;;  %49 = vrot.lane.b32.xlu0 %v2909_v1, %s2838_s25  ;;  %v2931_v3 = vld [vmem:[%s5544_s6 + $0xa] sm:$0xff]  ;;  %v2936_v4 = vld [vmem:[%s5544_s6 + $0x2] sm:$0xff] }
  0x3a   :  { %v2945_v5 = vld [vmem:[%s5544_s6 + $0x12] sm:$0xff] }
  0x3d   :  { %87 = vrot.lane.b32.xlu1 %v2909_v1, %s2839_s28  ;;  %51 = vrot.lane.b32.xlu0 %v2918_v2, %s2838_s25 }
  0x41   :  { %91 = vrot.lane.b32.xlu1 %v2904_v0, %s2839_s28  ;;  %89 = vrot.lane.b32.xlu0 %v2918_v2, %s2839_s28 }
  0x45   :  { %114 = vrot.lane.b32.xlu1 %v2931_v3, %s2838_s25  ;;  %112 = vrot.lane.b32.xlu0 %v2936_v4, %s2838_s25 }
  0x49   :  { %150 = vrot.lane.b32.xlu1 %v2936_v4, %s2839_s28  ;;  %116 = vrot.lane.b32.xlu0 %v2945_v5, %s2838_s25 }
  0x4a   :  { %34 = vsyncpa [#allocation10], 0  ;;  %v2958_v6 = vld [vmem:[%s5544_s6 + $0xb] sm:$0xff]  ;;  %v2963_v7 = vld [vmem:[%s5544_s6 + $0x3] sm:$0xff]  ;;  %s55_s24 = sld [smem:[#allocation5]]  ;;  %s2434_s4 = sld [smem:[#allocation5 + $0x24]] }
  0x4b   :  { %v2972_v8 = vld [vmem:[%s5544_s6 + $0x13] sm:$0xff]  ;;  %v2985_v9 = vld [vmem:[%s5544_s6 + $0x29] sm:$0xff]  ;;  %v2990_v10 = vld [vmem:[%s5544_s6 + $0x21] sm:$0xff]  ;;  %s2435_s26 = sld [smem:[#allocation5 + $0x1]]  ;;  %s2436_s27 = sld [smem:[#allocation5 + $0x25]] }
  0x4c   :  { %v2999_v11 = vld [vmem:[%s5544_s6 + $0x31] sm:$0xff]  ;;  %v3017_v13 = vld [vmem:[%s5544_s6 + $0x22] sm:$0xff]  ;;  %s42_s0 = sld [smem:[#allocation4]]  ;;  %s2433_s1 = sld [smem:[#allocation4 + $0x1]] }
  0x4d   :  { %154 = vrot.lane.b32.xlu1 %v2945_v5, %s2839_s28  ;;  %152 = vrot.lane.b32.xlu0 %v2931_v3, %s2839_s28  ;;  %v3012_v12 = vld [vmem:[%s5544_s6 + $0x2a] sm:$0xff]  ;;  %v3026_v14 = vld [vmem:[%s5544_s6 + $0x32] sm:$0xff]  ;;  %s2437_s12 = sld [smem:[#allocation5 + $0x2]]  ;;  %s2438_s13 = sld [smem:[#allocation5 + $0x26]] }
  0x4e   :  { %v3039_v15 = vld [vmem:[%s5544_s6 + $0x2b] sm:$0xff]  ;;  %v3044_v16 = vld [vmem:[%s5544_s6 + $0x23] sm:$0xff]  ;;  %v3053_v17 = vld [vmem:[%s5544_s6 + $0x33] sm:$0xff]  ;;  %s3158_s14 = sld [smem:[#allocation5 + $0x4]]  ;;  %s3162_s15 = sld [smem:[#allocation5 + $0x28]] }
  0x4f   :  { %v3066_v18 = vld [vmem:[%s5544_s6 + $0x49] sm:$0xff]  ;;  %v3071_v19 = vld [vmem:[%s5544_s6 + $0x41] sm:$0xff]  ;;  %v3080_v20 = vld [vmem:[%s5544_s6 + $0x51] sm:$0xff]  ;;  %s3164_s16 = sld [smem:[#allocation5 + $0x3]]  ;;  %s3169_s17 = sld [smem:[#allocation5 + $0x27]] }
  0x50   :  { %v3093_v21 = vld [vmem:[%s5544_s6 + $0x4a] sm:$0xff]  ;;  %v3098_v22 = vld [vmem:[%s5544_s6 + $0x42] sm:$0xff]  ;;  %v3107_v23 = vld [vmem:[%s5544_s6 + $0x52] sm:$0xff]  ;;  %v56_v30 = vstv %s55_s24  ;;  %s3191_s22 = sld [smem:[#allocation5 + $0x5]]  ;;  %s3193_s23 = sld [smem:[#allocation5 + $0x29]] }
  0x51   :  { %177 = vrot.lane.b32.xlu1 %v2958_v6, %s2838_s25  ;;  %175 = vrot.lane.b32.xlu0 %v2963_v7, %s2838_s25  ;;  %v3120_v24 = vld [vmem:[%s5544_s6 + $0x4b] sm:$0xff]  ;;  %v3125_v25 = vld [vmem:[%s5544_s6 + $0x43] sm:$0xff]  ;;  %s3201_s24 = sld [smem:[#allocation5 + $0x7]]  ;;  %s3233_s10 = sld [smem:[#allocation5 + $0x8]] }
  0x52   :  { %v3134_v26 = vld [vmem:[%s5544_s6 + $0x53] sm:$0xff]  ;;  %v3147_v27 = vld [vmem:[%s5544_s6 + $0x69] sm:$0xff]  ;;  %v2505_v28 = vld [vmem:[%s5544_s6 + $0x61] sm:$0xff]  ;;  %v64_v31 = vstv %s2434_s4  ;;  %s3203_s4 = sld [smem:[#allocation5 + $0x2b]]  ;;  %s3235_s11 = sld [smem:[#allocation5 + $0x2c]] }
  0x53   :  { %v2507_v29 = vld [vmem:[%s5544_s6 + $0x71] sm:$0xff]  ;;  %v72_v32 = vstv %s2435_s26  ;;  %v80_v33 = vstv %s2436_s27  ;;  %v43_v35 = vstv %s42_s0  ;;  %s3208_s26 = sld [smem:[#allocation5 + $0x6]]  ;;  %s3210_s27 = sld [smem:[#allocation5 + $0x2a]] }
  0x54   :  { %v45_v36 = vstv %s2433_s1  ;;  %v73_v40 = vmul.f32 %v72_v32, %v2909_v1  ;;  %v81_v41 = vmul.f32 %v80_v33, %v2909_v1  ;;  %v2515_v44 = vld [vmem:[%s5544_s6 + $0x6a] sm:$0xff]  ;;  %v2514_v45 = vld [vmem:[%s5544_s6 + $0x62] sm:$0xff]  ;;  %v75_v46 = vmul.f32 %v72_v32, %v2904_v0  ;;  %v2516_v63 = vld [vmem:[%s5544_s6 + $0x72] sm:$0xff]  ;;  %s2841_s18 = smov 2   ;;  %s3272_s21 = sld [smem:[#allocation5 + $0xb]] }
  0x55   :  { %213 = vrot.lane.b32.xlu1 %v2963_v7, %s2839_s28  ;;  %179 = vrot.lane.b32.xlu0 %v2972_v8, %s2838_s25  ;;  %v74_v47 = vmul.f32 %v72_v32, %v2918_v2  ;;  %v94_v48 = vstv %s2437_s12  ;;  %v102_v49 = vstv %s2438_s13  ;;  %v83_v52 = vmul.f32 %v80_v33, %v2904_v0  ;;  %s3243_s12 = sld [smem:[#allocation5 + $0xa]]  ;;  %s3245_s13 = sld [smem:[#allocation5 + $0x2e]] }
  0x56   :  { %v82_v53 = vmul.f32 %v80_v33, %v2918_v2  ;;  %v135_v54 = vstv %s3158_s14  ;;  %v143_v1 = vstv %s3162_s15  ;;  %s3251_s14 = sld [smem:[#allocation5 + $0x9]]  ;;  %s3253_s15 = sld [smem:[#allocation5 + $0x2d]] }
  0x57   :  { %v137_v0 = vmul.f32 %v135_v54, %v2931_v3  ;;  %s3304_s8 = sld [smem:[#allocation5 + $0xe]]  ;;  %s3306_s9 = sld [smem:[#allocation5 + $0x32]] }
  0x58   :  { %s3312_s0 = sld [smem:[#allocation5 + $0x10]]  ;;  %s3314_s1 = sld [smem:[#allocation5 + $0x34]] }
  0x59   :  { %217 = vrot.lane.b32.xlu1 %v2972_v8, %s2839_s28  ;;  %215 = vrot.lane.b32.xlu0 %v2958_v6, %s2839_s28  ;;  %s2485_s2 = sld [smem:[#allocation5 + $0x14]]  ;;  %s2486_s3 = sld [smem:[#allocation5 + $0x38]] }
  0x5a   :  { %s2492_s19 = sld [smem:[#allocation5 + $0x16]]  ;;  %s2493_s20 = sld [smem:[#allocation5 + $0x3a]] }
  0x5b   :  { %s3364_s29 = sld [smem:[#allocation5 + $0x1c]]  ;;  %s3366_s30 = sld [smem:[#allocation5 + $0x18]] }
  0x5d   :  { %241 = vrot.lane.b32.xlu1 %v2985_v9, %s2838_s25  ;;  %239 = vrot.lane.b32.xlu0 %v2990_v10, %s2838_s25 }
  0x61   :  { %277 = vrot.lane.b32.xlu1 %v2990_v10, %s2839_s28  ;;  %243 = vrot.lane.b32.xlu0 %v2999_v11, %s2838_s25 }
  0x65   :  { %281 = vrot.lane.b32.xlu1 %v2999_v11, %s2839_s28  ;;  %279 = vrot.lane.b32.xlu0 %v2985_v9, %s2839_s28 }
  0x69   :  { %304 = vrot.lane.b32.xlu1 %v3012_v12, %s2838_s25  ;;  %302 = vrot.lane.b32.xlu0 %v3017_v13, %s2838_s25 }
  0x6d   :  { %340 = vrot.lane.b32.xlu1 %v3017_v13, %s2839_s28  ;;  %306 = vrot.lane.b32.xlu0 %v3026_v14, %s2838_s25 }
  0x71   :  { %344 = vrot.lane.b32.xlu1 %v3026_v14, %s2839_s28  ;;  %342 = vrot.lane.b32.xlu0 %v3012_v12, %s2839_s28 }
  0x75   :  { %367 = vrot.lane.b32.xlu1 %v3039_v15, %s2838_s25  ;;  %365 = vrot.lane.b32.xlu0 %v3044_v16, %s2838_s25 }
  0x79   :  { %403 = vrot.lane.b32.xlu1 %v3044_v16, %s2839_s28  ;;  %369 = vrot.lane.b32.xlu0 %v3053_v17, %s2838_s25 }
  0x7d   :  { %407 = vrot.lane.b32.xlu1 %v3053_v17, %s2839_s28  ;;  %405 = vrot.lane.b32.xlu0 %v3039_v15, %s2839_s28 }
  0x81   :  { %431 = vrot.lane.b32.xlu1 %v3066_v18, %s2838_s25  ;;  %429 = vrot.lane.b32.xlu0 %v3071_v19, %s2838_s25 }
  0x85   :  { %467 = vrot.lane.b32.xlu1 %v3071_v19, %s2839_s28  ;;  %433 = vrot.lane.b32.xlu0 %v3080_v20, %s2838_s25 }
  0x89   :  { %471 = vrot.lane.b32.xlu1 %v3080_v20, %s2839_s28  ;;  %469 = vrot.lane.b32.xlu0 %v3066_v18, %s2839_s28 }
  0x8d   :  { %494 = vrot.lane.b32.xlu1 %v3093_v21, %s2838_s25  ;;  %492 = vrot.lane.b32.xlu0 %v3098_v22, %s2838_s25 }
  0x91   :  { %530 = vrot.lane.b32.xlu1 %v3098_v22, %s2839_s28  ;;  %496 = vrot.lane.b32.xlu0 %v3107_v23, %s2838_s25 }
  0x95   :  { %534 = vrot.lane.b32.xlu1 %v3107_v23, %s2839_s28  ;;  %532 = vrot.lane.b32.xlu0 %v3093_v21, %s2839_s28 }
  0x99   :  { %557 = vrot.lane.b32.xlu1 %v3120_v24, %s2838_s25  ;;  %555 = vrot.lane.b32.xlu0 %v3125_v25, %s2838_s25 }
  0x9d   :  { %593 = vrot.lane.b32.xlu1 %v3125_v25, %s2839_s28  ;;  %559 = vrot.lane.b32.xlu0 %v3134_v26, %s2838_s25 }
  0xa1   :  { %597 = vrot.lane.b32.xlu1 %v3134_v26, %s2839_s28  ;;  %595 = vrot.lane.b32.xlu0 %v3120_v24, %s2839_s28 }
  0xa5   :  { %621 = vrot.lane.b32.xlu1 %v3147_v27, %s2838_s25  ;;  %619 = vrot.lane.b32.xlu0 %v2505_v28, %s2838_s25 }
  0xa9   :  { %657 = vrot.lane.b32.xlu1 %v2505_v28, %s2839_s28  ;;  %623 = vrot.lane.b32.xlu0 %v2507_v29, %s2838_s25 }
  0xab   :  { %v54_v34 = vpop.permute.xlu1 %53  ;;  %v50_v37 = vpop.permute.xlu0 %49 }
  0xac   :  { %v57_v38 = vmul.f32 %v56_v30, %v50_v37  ;;  %v65_v39 = vmul.f32 %v64_v31, %v50_v37  ;;  %v59_v55 = vmul.f32 %v56_v30, %v54_v34  ;;  %v67_v56 = vmul.f32 %v64_v31, %v54_v34 }
  0xad   :  { %661 = vrot.lane.b32.xlu1 %v2507_v29, %s2839_s28  ;;  %659 = vrot.lane.b32.xlu0 %v3147_v27, %s2839_s28  ;;  %v119_v34 = vstv %s3164_s16  ;;  %s3342_s16 = sld [smem:[#allocation5 + $0x12]] }
  0xae   :  { %v60_v42 = vadd.f32 %v57_v38, %v43_v35  ;;  %v68_v43 = vadd.f32 %v65_v39, %v45_v36  ;;  %v70_v37 = vadd.f32 %v67_v56, %v45_v36 }
  0xaf   :  { %v88_v50 = vpop.permute.xlu1 %87  ;;  %v52_v51 = vpop.permute.xlu0 %51 }
  0xb0   :  { %v58_v57 = vmul.f32 %v56_v30, %v52_v51  ;;  %v66_v58 = vmul.f32 %v64_v31, %v52_v51  ;;  %v76_v59 = vadd.f32 %v73_v40, %v60_v42  ;;  %v84_v60 = vadd.f32 %v81_v41, %v68_v43 }
  0xb1   :  { %684 = vrot.lane.b32.xlu1 %v2515_v44, %s2838_s25  ;;  %682 = vrot.lane.b32.xlu0 %v2514_v45, %s2838_s25  ;;  %v95_v61 = vmul.f32 %v94_v48, %v88_v50  ;;  %v103_v62 = vmul.f32 %v102_v49, %v88_v50  ;;  %v62_v31 = vadd.f32 %v59_v55, %v43_v35  ;;  %v127_v40 = vstv %s3169_s17  ;;  %s3344_s17 = sld [smem:[#allocation5 + $0x36]] }
  0xb2   :  { %v61_v2 = vadd.f32 %v58_v57, %v43_v35  ;;  %v69_v28 = vadd.f32 %v66_v58, %v45_v36  ;;  %v136_v41 = vmul.f32 %v135_v54, %v2936_v4  ;;  %v144_v42 = vmul.f32 %v143_v1, %v2936_v4 }
  0xb3   :  { %v92_v29 = vpop.permute.xlu1 %91  ;;  %v90_v30 = vpop.permute.xlu0 %89  ;;  %v98_v43 = vadd.f32 %v95_v61, %v76_v59  ;;  %v106_v50 = vadd.f32 %v103_v62, %v84_v60  ;;  %v78_v4 = vadd.f32 %v75_v46, %v62_v31  ;;  %v86_v59 = vadd.f32 %v83_v52, %v70_v37  ;;  %v2524_v62 = vld [vmem:[%s5544_s6 + $0x6b] sm:$0xff] }
  0xb4   :  { %v96_v32 = vmul.f32 %v94_v48, %v90_v30  ;;  %v104_v33 = vmul.f32 %v102_v49, %v90_v30  ;;  %v77_v38 = vadd.f32 %v74_v47, %v61_v2  ;;  %v85_v39 = vadd.f32 %v82_v53, %v69_v28 }
  0xb5   :  { %720 = vrot.lane.b32.xlu1 %v2514_v45, %s2839_s28  ;;  %686 = vrot.lane.b32.xlu0 %v2516_v63, %s2838_s25  ;;  %v97_v35 = vmul.f32 %v94_v48, %v92_v29  ;;  %v105_v51 = vmul.f32 %v102_v49, %v92_v29  ;;  %v145_v2 = vmul.f32 %v143_v1, %v2931_v3  ;;  %v2523_v3 = vld [vmem:[%s5544_s6 + $0x63] sm:$0xff]  ;;  %v157_v52 = vstv %s3191_s22  ;;  %s3274_s22 = sld [smem:[#allocation5 + $0x2f]] }
  0xb6   :  { %v99_v36 = vadd.f32 %v96_v32, %v77_v38  ;;  %v107_v47 = vadd.f32 %v104_v33, %v85_v39  ;;  %v138_v46 = vmul.f32 %v135_v54, %v2945_v5 }
  0xb7   :  { %v115_v53 = vpop.permute.xlu1 %114  ;;  %v113_v55 = vpop.permute.xlu0 %112  ;;  %v100_v30 = vadd.f32 %v97_v35, %v78_v4  ;;  %v108_v31 = vadd.f32 %v105_v51, %v86_v59 }
  0xb8   :  { %v121_v45 = vmul.f32 %v119_v34, %v115_v53  ;;  %v129_v56 = vmul.f32 %v127_v40, %v115_v53  ;;  %v120_v57 = vmul.f32 %v119_v34, %v113_v55  ;;  %v128_v58 = vmul.f32 %v127_v40, %v113_v55 }
  0xb9   :  { %724 = vrot.lane.b32.xlu1 %v2516_v63, %s2839_s28  ;;  %722 = vrot.lane.b32.xlu0 %v2515_v44, %s2839_s28  ;;  %v146_v44 = vmul.f32 %v143_v1, %v2945_v5  ;;  %v165_v63 = vstv %s3193_s23  ;;  %v2525_v1 = vld [vmem:[%s5544_s6 + $0x73] sm:$0xff]  ;;  %s2842_s23 = smov 126  }
  0xba   :  { %v124_v48 = vadd.f32 %v121_v45, %v99_v36  ;;  %v132_v49 = vadd.f32 %v129_v56, %v107_v47  ;;  %v123_v60 = vadd.f32 %v120_v57, %v98_v43  ;;  %v131_v61 = vadd.f32 %v128_v58, %v106_v50 }
  0xbb   :  { %v151_v28 = vpop.permute.xlu1 %150  ;;  %v117_v29 = vpop.permute.xlu0 %116  ;;  %v2840_v50 = vmov 0.0   ;;  %v182_v55 = vstv %s3208_s26  ;;  %v190_v45 = vstv %s3210_s27  ;;  %s3288_s26 = sld [smem:[#allocation5 + $0xc]]  ;;  %s3290_s27 = sld [smem:[#allocation5 + $0x30]] }
  0xbc   :  { %v139_v32 = vadd.f32 %v136_v41, %v123_v60  ;;  %v147_v33 = vadd.f32 %v144_v42, %v131_v61  ;;  %v122_v37 = vmul.f32 %v119_v34, %v117_v29  ;;  %v130_v38 = vmul.f32 %v127_v40, %v117_v29  ;;  %814 = vst [vmem:[#allocation2] sm:$0x3] %v2840_v50 }
  0xbd   :  { %747 = vrot.lane.b32.xlu1 %v2524_v62, %s2838_s25  ;;  %745 = vrot.lane.b32.xlu0 %v2523_v3, %s2838_s25  ;;  %v140_v39 = vadd.f32 %v137_v0, %v124_v48  ;;  %v158_v54 = vmul.f32 %v157_v52, %v151_v28  ;;  %v166_v43 = vmul.f32 %v165_v63, %v151_v28  ;;  %v198_v34 = vstv %s3201_s24  ;;  %s3282_s24 = sld [smem:[#allocation5 + $0xd]] }
  0xbe   :  { %v148_v5 = vadd.f32 %v145_v2, %v132_v49  ;;  %834 = vst [vmem:[#allocation2 + $0x3a] sm:$0x3] %v2840_v50  ;;  %818 = vst [vmem:[#allocation2 + $0x1a] sm:$0x3] %v2840_v50  ;;  %v206_v0 = vstv %s3203_s4  ;;  %v125_v40 = vadd.f32 %v122_v37, %v100_v30  ;;  %v133_v41 = vadd.f32 %v130_v38, %v108_v31  ;;  %s3284_s4 = sld [smem:[#allocation5 + $0x31]] }
  0xbf   :  { %830 = vst [vmem:[#allocation2 + $0x20] sm:$0x3] %v2840_v50  ;;  %v155_v42 = vpop.permute.xlu1 %154  ;;  %v153_v35 = vpop.permute.xlu0 %152  ;;  %v199_v56 = vmul.f32 %v198_v34, %v2963_v7  ;;  %v207_v57 = vmul.f32 %v206_v0, %v2963_v7  ;;  %v161_v58 = vadd.f32 %v158_v54, %v139_v32  ;;  %v169_v2 = vadd.f32 %v166_v43, %v147_v33  ;;  %v1235_v32 = vld [vmem:[%s5544_s6] sm:$0xff]  ;;  %v1236_v54 = vld [vmem:[%s5544_s6 + $0x8] sm:$0xff] }
  0xc0   :  { %v159_v51 = vmul.f32 %v157_v52, %v153_v35  ;;  %v167_v36 = vmul.f32 %v165_v63, %v153_v35  ;;  %v141_v47 = vadd.f32 %v138_v46, %v125_v40  ;;  %v149_v53 = vadd.f32 %v146_v44, %v133_v41 }
  0xc1   :  { %783 = vrot.lane.b32.xlu1 %v2523_v3, %s2839_s28  ;;  %749 = vrot.lane.b32.xlu0 %v2525_v1, %s2838_s25  ;;  %v160_v4 = vmul.f32 %v157_v52, %v155_v42  ;;  %v168_v59 = vmul.f32 %v165_v63, %v155_v42  ;;  %v200_v7 = vmul.f32 %v198_v34, %v2958_v6  ;;  %v220_v37 = vstv %s3233_s10  ;;  %s3318_s10 = sld [smem:[#allocation5 + $0xf]] }
  0xc2   :  { %v162_v48 = vadd.f32 %v159_v51, %v140_v39  ;;  %v170_v49 = vadd.f32 %v167_v36, %v148_v5  ;;  %v208_v29 = vmul.f32 %v206_v0, %v2958_v6  ;;  %v201_v33 = vmul.f32 %v198_v34, %v2972_v8  ;;  %v1237_v51 = vld [vmem:[%s5544_s6 + $0x10] sm:$0xff] }
  0xc3   :  { %v178_v60 = vpop.permute.xlu1 %177  ;;  %v176_v61 = vpop.permute.xlu0 %175  ;;  %v209_v6 = vmul.f32 %v206_v0, %v2972_v8  ;;  %v228_v38 = vstv %s3235_s11  ;;  %v163_v43 = vadd.f32 %v160_v4, %v141_v47  ;;  %v171_v5 = vadd.f32 %v168_v59, %v149_v53  ;;  %s3320_s11 = sld [smem:[#allocation5 + $0x33]] }
  0xc4   :  { %v184_v3 = vmul.f32 %v182_v55, %v178_v60  ;;  %v192_v46 = vmul.f32 %v190_v45, %v178_v60  ;;  %v183_v44 = vmul.f32 %v182_v55, %v176_v61  ;;  %v191_v28 = vmul.f32 %v190_v45, %v176_v61 }
  0xc5   :  { %787 = vrot.lane.b32.xlu1 %v2525_v1, %s2839_s28  ;;  %785 = vrot.lane.b32.xlu0 %v2524_v62, %s2839_s28  ;;  %v262_v36 = vstv %s3243_s12  ;;  %v270_v47 = vstv %s3245_s13  ;;  %s3328_s12 = sld [smem:[#allocation5 + $0x11]]  ;;  %s3330_s13 = sld [smem:[#allocation5 + $0x35]] }
  0xc6   :  { %v187_v52 = vadd.f32 %v184_v3, %v162_v48  ;;  %v195_v63 = vadd.f32 %v192_v46, %v170_v49  ;;  %v186_v30 = vadd.f32 %v183_v44, %v161_v58  ;;  %v194_v31 = vadd.f32 %v191_v28, %v169_v2 }
  0xc7   :  { %v214_v39 = vpop.permute.xlu1 %213  ;;  %v180_v62 = vpop.permute.xlu0 %179  ;;  %v246_v59 = vstv %s3251_s14  ;;  %v254_v48 = vstv %s3253_s15  ;;  %v263_v49 = vmul.f32 %v2990_v10, %v262_v36  ;;  %v271_v60 = vmul.f32 %v2990_v10, %v270_v47  ;;  %s3336_s14 = sld [smem:[#allocation5 + $0x13]]  ;;  %s3338_s15 = sld [smem:[#allocation5 + $0x37]] }
  0xc8   :  { %v202_v1 = vadd.f32 %v199_v56, %v186_v30  ;;  %v210_v40 = vadd.f32 %v207_v57, %v194_v31  ;;  %v185_v41 = vmul.f32 %v182_v55, %v180_v62  ;;  %v193_v42 = vmul.f32 %v190_v45, %v180_v62  ;;  %v1298_v62 = vld [vmem:[%s5544_s6 + $0x2] sm:$0xff] }
  0xc9   :  { %v203_v35 = vadd.f32 %v200_v7, %v187_v52  ;;  %v211_v34 = vadd.f32 %v208_v29, %v195_v63  ;;  %1238 = vrot.lane.b32.xlu1 %v1235_v32, %s2841_s18  ;;  %v221_v8 = vmul.f32 %v220_v37, %v214_v39  ;;  %v229_v0 = vmul.f32 %v228_v38, %v214_v39 }
  0xca   :  { %1240 = vrot.lane.b32.xlu0 %v1236_v54, %s2841_s18  ;;  %v188_v53 = vadd.f32 %v185_v41, %v163_v43  ;;  %v196_v55 = vadd.f32 %v193_v42, %v171_v5  ;;  %v265_v43 = vmul.f32 %v2999_v11, %v262_v36  ;;  %v284_v5 = vstv %s3272_s21  ;;  %s2490_s21 = sld [smem:[#allocation5 + $0x15]] }
  0xcb   :  { %v218_v45 = vpop.permute.xlu1 %217  ;;  %v216_v56 = vpop.permute.xlu0 %215  ;;  %v224_v61 = vadd.f32 %v221_v8, %v202_v1  ;;  %v232_v3 = vadd.f32 %v229_v0, %v210_v40  ;;  %v292_v1 = vstv %s3274_s22  ;;  %s2491_s22 = sld [smem:[#allocation5 + $0x39]] }
  0xcc   :  { %v222_v57 = vmul.f32 %v220_v37, %v216_v56  ;;  %v230_v58 = vmul.f32 %v228_v38, %v216_v56  ;;  %v204_v2 = vadd.f32 %v201_v33, %v188_v53  ;;  %v212_v4 = vadd.f32 %v209_v6, %v196_v55 }
  0xcd   :  { %1242 = vrot.lane.b32.xlu1 %v1237_v51, %s2841_s18  ;;  %v223_v46 = vmul.f32 %v220_v37, %v218_v45  ;;  %v231_v44 = vmul.f32 %v228_v38, %v218_v45  ;;  %v264_v33 = vmul.f32 %v2985_v9, %v262_v36  ;;  %v325_v36 = vstv %s3282_s24  ;;  %s2501_s24 = sld [smem:[#allocation5 + $0x19]] }
  0xce   :  { %1276 = vrot.lane.b32.xlu0 %v1235_v32, %s2842_s23  ;;  %v225_v28 = vadd.f32 %v222_v57, %v203_v35  ;;  %v233_v7 = vadd.f32 %v230_v58, %v211_v34  ;;  %v272_v32 = vmul.f32 %v2985_v9, %v270_v47  ;;  %v273_v9 = vmul.f32 %v2999_v11, %v270_v47 }
  0xcf   :  { %v242_v29 = vpop.permute.xlu1 %241  ;;  %v240_v52 = vpop.permute.xlu0 %239  ;;  %v226_v41 = vadd.f32 %v223_v46, %v204_v2  ;;  %v234_v42 = vadd.f32 %v231_v44, %v212_v4  ;;  %v333_v47 = vstv %s3284_s4  ;;  %s2502_s4 = sld [smem:[#allocation5 + $0x3d]] }
  0xd0   :  { %v248_v63 = vmul.f32 %v246_v59, %v242_v29  ;;  %v256_v30 = vmul.f32 %v254_v48, %v242_v29  ;;  %v247_v31 = vmul.f32 %v246_v59, %v240_v52  ;;  %v255_v10 = vmul.f32 %v254_v48, %v240_v52 }
  0xd1   :  { %1278 = vrot.lane.b32.xlu1 %v1236_v54, %s2842_s23 }
  0xd2   :  { %v251_v6 = vadd.f32 %v248_v63, %v225_v28  ;;  %v259_v37 = vadd.f32 %v256_v30, %v233_v7  ;;  %v250_v38 = vadd.f32 %v247_v31, %v224_v61  ;;  %v258_v39 = vadd.f32 %v255_v10, %v232_v3  ;;  %1280 = vrot.lane.b32.xlu0 %v1237_v51, %s2842_s23 }
  0xd3   :  { %v278_v40 = vpop.permute.xlu1 %277  ;;  %v244_v54 = vpop.permute.xlu0 %243  ;;  %v326_v61 = vmul.f32 %v3017_v13, %v325_v36  ;;  %v334_v3 = vmul.f32 %v3017_v13, %v333_v47  ;;  %v327_v13 = vmul.f32 %v3012_v12, %v325_v36 }
  0xd4   :  { %v266_v35 = vadd.f32 %v263_v49, %v250_v38  ;;  %v274_v34 = vadd.f32 %v271_v60, %v258_v39  ;;  %v249_v8 = vmul.f32 %v246_v59, %v244_v54  ;;  %v257_v0 = vmul.f32 %v254_v48, %v244_v54 }
  0xd5   :  { %v267_v53 = vadd.f32 %v264_v33, %v251_v6  ;;  %v275_v55 = vadd.f32 %v272_v32, %v259_v37  ;;  %1301 = vrot.lane.b32.xlu1 %v1298_v62, %s2841_s18  ;;  %v285_v51 = vmul.f32 %v284_v5, %v278_v40  ;;  %v293_v11 = vmul.f32 %v292_v1, %v278_v40 }
  0xd6   :  { %v252_v45 = vadd.f32 %v249_v8, %v226_v41  ;;  %v260_v56 = vadd.f32 %v257_v0, %v234_v42  ;;  %v309_v49 = vstv %s3288_s26  ;;  %v317_v60 = vstv %s3290_s27  ;;  %s3360_s26 = sld [smem:[#allocation5 + $0x17]]  ;;  %s3362_s27 = sld [smem:[#allocation5 + $0x3b]] }
  0xd7   :  { %v282_v57 = vpop.permute.xlu1 %281  ;;  %v280_v58 = vpop.permute.xlu0 %279  ;;  %v288_v46 = vadd.f32 %v285_v51, %v266_v35  ;;  %v296_v44 = vadd.f32 %v293_v11, %v274_v34  ;;  %v335_v6 = vmul.f32 %v3012_v12, %v333_v47  ;;  %v388_v11 = vstv %s3312_s0  ;;  %s3396_s0 = sld [smem:[#allocation5 + $0x3e]] }
  0xd8   :  { %v286_v2 = vmul.f32 %v284_v5, %v280_v58  ;;  %v294_v4 = vmul.f32 %v292_v1, %v280_v58  ;;  %v268_v59 = vadd.f32 %v265_v43, %v252_v45  ;;  %v276_v48 = vadd.f32 %v273_v9, %v260_v56 }
  0xd9   :  { %v287_v28 = vmul.f32 %v284_v5, %v282_v57  ;;  %v295_v7 = vmul.f32 %v292_v1, %v282_v57  ;;  %v328_v43 = vmul.f32 %v3026_v14, %v325_v36  ;;  %v336_v9 = vmul.f32 %v3026_v14, %v333_v47 }
  0xda   :  { %v289_v29 = vadd.f32 %v286_v2, %v267_v53  ;;  %v297_v52 = vadd.f32 %v294_v4, %v275_v55  ;;  %v347_v5 = vstv %s3304_s8  ;;  %v355_v1 = vstv %s3306_s9  ;;  %s3368_s8 = sld [smem:[#allocation5 + $0x3c]]  ;;  %s3394_s9 = sld [smem:[#allocation5 + $0x1a]] }
  0xdb   :  { %v305_v63 = vpop.permute.xlu1 %304  ;;  %v303_v30 = vpop.permute.xlu0 %302  ;;  %v290_v41 = vadd.f32 %v287_v28, %v268_v59  ;;  %v298_v12 = vadd.f32 %v295_v7, %v276_v48  ;;  %v396_v36 = vstv %s3314_s1  ;;  %v372_v59 = vstv %s3318_s10  ;;  %s3398_s1 = sld [smem:[#allocation5 + $0x40]]  ;;  %s3400_s10 = sld [smem:[#allocation5 + $0x1b]] }
  0xdc   :  { %v311_v31 = vmul.f32 %v309_v49, %v305_v63  ;;  %v319_v10 = vmul.f32 %v317_v60, %v305_v63  ;;  %v310_v33 = vmul.f32 %v309_v49, %v303_v30  ;;  %v318_v32 = vmul.f32 %v317_v60, %v303_v30 }
  0xdd   :  { %v380_v48 = vstv %s3320_s11  ;;  %s3402_s11 = sld [smem:[#allocation5 + $0x3f]] }
  0xde   :  { %v314_v37 = vadd.f32 %v311_v31, %v289_v29  ;;  %v322_v38 = vadd.f32 %v319_v10, %v297_v52  ;;  %v313_v39 = vadd.f32 %v310_v33, %v288_v46  ;;  %v321_v62 = vadd.f32 %v318_v32, %v296_v44 }
  0xdf   :  { %v341_v40 = vpop.permute.xlu1 %340  ;;  %v307_v54 = vpop.permute.xlu0 %306  ;;  %v398_v33 = vmul.f32 %v3039_v15, %v396_v36 }
  0xe0   :  { %v329_v42 = vadd.f32 %v326_v61, %v313_v39  ;;  %v337_v35 = vadd.f32 %v334_v3, %v321_v62  ;;  %v312_v34 = vmul.f32 %v309_v49, %v307_v54  ;;  %v320_v8 = vmul.f32 %v317_v60, %v307_v54 }
  0xe1   :  { %v330_v0 = vadd.f32 %v327_v13, %v314_v37  ;;  %v338_v53 = vadd.f32 %v335_v6, %v322_v38  ;;  %v348_v55 = vmul.f32 %v347_v5, %v341_v40  ;;  %v356_v51 = vmul.f32 %v355_v1, %v341_v40 }
  0xe2   :  { %v315_v14 = vadd.f32 %v312_v34, %v290_v41  ;;  %v323_v47 = vadd.f32 %v320_v8, %v298_v12  ;;  %v389_v49 = vmul.f32 %v3044_v16, %v388_v11  ;;  %v397_v60 = vmul.f32 %v3044_v16, %v396_v36 }
  0xe3   :  { %v345_v45 = vpop.permute.xlu1 %344  ;;  %v343_v56 = vpop.permute.xlu0 %342  ;;  %v351_v61 = vadd.f32 %v348_v55, %v329_v42  ;;  %v359_v3 = vadd.f32 %v356_v51, %v337_v35  ;;  %v390_v16 = vmul.f32 %v3039_v15, %v388_v11  ;;  %v391_v38 = vmul.f32 %v3053_v17, %v388_v11 }
  0xe4   :  { %v349_v57 = vmul.f32 %v347_v5, %v343_v56  ;;  %v357_v58 = vmul.f32 %v355_v1, %v343_v56  ;;  %v331_v2 = vadd.f32 %v328_v43, %v315_v14  ;;  %v339_v4 = vadd.f32 %v336_v9, %v323_v47 }
  0xe5   :  { %v350_v46 = vmul.f32 %v347_v5, %v345_v45  ;;  %v358_v44 = vmul.f32 %v355_v1, %v345_v45  ;;  %v399_v39 = vmul.f32 %v3053_v17, %v396_v36  ;;  %v410_v62 = vstv %s3328_s12  ;;  %s4273_s12 = sld [smem:[#allocation6 + $0x1c]] }
  0xe6   :  { %v352_v28 = vadd.f32 %v349_v57, %v330_v0  ;;  %v360_v7 = vadd.f32 %v357_v58, %v338_v53  ;;  %v418_v43 = vstv %s3330_s13  ;;  %v452_v0 = vstv %s3336_s14  ;;  %s3427_s14 = sld [smem:[#allocation5 + $0x1d]]  ;;  %s4275_s13 = sld [smem:[#allocation6 + $0x40]] }
  0xe7   :  { %v368_v29 = vpop.permute.xlu1 %367  ;;  %v366_v52 = vpop.permute.xlu0 %365  ;;  %v353_v1 = vadd.f32 %v350_v46, %v331_v2  ;;  %v361_v15 = vadd.f32 %v358_v44, %v339_v4  ;;  %v460_v53 = vstv %s3338_s15  ;;  %v436_v56 = vstv %s3342_s16  ;;  %s3429_s15 = sld [smem:[#allocation5 + $0x41]]  ;;  %s3431_s16 = sld [smem:[#allocation5 + $0x1f]] }
  0xe8   :  { %v374_v63 = vmul.f32 %v372_v59, %v368_v29  ;;  %v382_v30 = vmul.f32 %v380_v48, %v368_v29  ;;  %v373_v31 = vmul.f32 %v372_v59, %v366_v52  ;;  %v381_v10 = vmul.f32 %v380_v48, %v366_v52 }
  0xe9   :  { %v444_v57 = vstv %s3344_s17  ;;  %v453_v58 = vmul.f32 %v3071_v19, %v452_v0  ;;  %v461_v2 = vmul.f32 %v3071_v19, %v460_v53  ;;  %v454_v52 = vmul.f32 %v3066_v18, %v452_v0  ;;  %s3433_s17 = sld [smem:[#allocation5 + $0x43]] }
  0xea   :  { %v377_v32 = vadd.f32 %v374_v63, %v352_v28  ;;  %v385_v13 = vadd.f32 %v382_v30, %v360_v7  ;;  %v376_v6 = vadd.f32 %v373_v31, %v351_v61  ;;  %v384_v37 = vadd.f32 %v381_v10, %v359_v3 }
  0xeb   :  { %v404_v9 = vpop.permute.xlu1 %403  ;;  %v370_v5 = vpop.permute.xlu0 %369  ;;  %v462_v63 = vmul.f32 %v3066_v18, %v460_v53 }
  0xec   :  { %v392_v40 = vadd.f32 %v389_v49, %v376_v6  ;;  %v400_v54 = vadd.f32 %v397_v60, %v384_v37  ;;  %v375_v41 = vmul.f32 %v372_v59, %v370_v5  ;;  %v383_v12 = vmul.f32 %v380_v48, %v370_v5 }
  0xed   :  { %v393_v42 = vadd.f32 %v390_v16, %v377_v32  ;;  %v401_v35 = vadd.f32 %v398_v33, %v385_v13  ;;  %v411_v34 = vmul.f32 %v410_v62, %v404_v9  ;;  %v419_v8 = vmul.f32 %v418_v43, %v404_v9 }
  0xee   :  { %v378_v17 = vadd.f32 %v375_v41, %v353_v1  ;;  %v386_v55 = vadd.f32 %v383_v12, %v361_v15  ;;  %v455_v16 = vmul.f32 %v3080_v20, %v452_v0  ;;  %v463_v33 = vmul.f32 %v3080_v20, %v460_v53 }
  0xef   :  { %v408_v51 = vpop.permute.xlu1 %407  ;;  %v406_v11 = vpop.permute.xlu0 %405  ;;  %v414_v4 = vadd.f32 %v411_v34, %v392_v40  ;;  %v422_v59 = vadd.f32 %v419_v8, %v400_v54  ;;  %v515_v34 = vstv %s2492_s19  ;;  %v523_v8 = vstv %s2493_s20  ;;  %s3901_s19 = sld [smem:[#allocation6]]  ;;  %s3903_s20 = sld [smem:[#allocation6 + $0x24]] }
  0xf0   :  { %v412_v36 = vmul.f32 %v410_v62, %v406_v11  ;;  %v420_v14 = vmul.f32 %v418_v43, %v406_v11  ;;  %v394_v47 = vadd.f32 %v391_v38, %v378_v17  ;;  %v402_v45 = vadd.f32 %v399_v39, %v386_v55 }
  0xf1   :  { %v413_v48 = vmul.f32 %v410_v62, %v408_v51  ;;  %v421_v49 = vmul.f32 %v418_v43, %v408_v51  ;;  %v499_v0 = vstv %s2490_s21  ;;  %v507_v53 = vstv %s2491_s22  ;;  %s3445_s21 = sld [smem:[#allocation5 + $0x1e]]  ;;  %s3447_s22 = sld [smem:[#allocation5 + $0x42]] }
  0xf2   :  { %v415_v60 = vadd.f32 %v412_v36, %v393_v42  ;;  %v423_v61 = vadd.f32 %v420_v14, %v401_v35  ;;  %v474_v42 = vstv %s2485_s2  ;;  %v482_v35 = vstv %s2486_s3  ;;  %s3896_s2 = sld [smem:[#allocation6 + $0x7]]  ;;  %s3898_s3 = sld [smem:[#allocation6 + $0x2b]] }
  0xf3   :  { %v432_v3 = vpop.permute.xlu1 %431  ;;  %v430_v46 = vpop.permute.xlu0 %429  ;;  %v416_v6 = vadd.f32 %v413_v48, %v394_v47  ;;  %v424_v37 = vadd.f32 %v421_v49, %v402_v45  ;;  %v578_v17 = vstv %s2501_s24  ;;  %v517_v14 = vmul.f32 %v3093_v21, %v515_v34  ;;  %s3459_s24 = sld [smem:[#allocation5 + $0x20]] }
  0xf4   :  { %v438_v44 = vmul.f32 %v436_v56, %v432_v3  ;;  %v446_v28 = vmul.f32 %v444_v57, %v432_v3  ;;  %v437_v7 = vmul.f32 %v436_v56, %v430_v46  ;;  %v445_v29 = vmul.f32 %v444_v57, %v430_v46 }
  0xf5   :  { %v516_v47 = vmul.f32 %v3098_v22, %v515_v34  ;;  %v3373_v45 = vmul.f32 %v3107_v23, %v515_v34 }
  0xf6   :  { %v441_v30 = vadd.f32 %v438_v44, %v415_v60  ;;  %v449_v31 = vadd.f32 %v446_v28, %v423_v61  ;;  %v440_v10 = vadd.f32 %v437_v7, %v414_v4  ;;  %v448_v19 = vadd.f32 %v445_v29, %v422_v59 }
  0xf7   :  { %v468_v32 = vpop.permute.xlu1 %467  ;;  %v434_v13 = vpop.permute.xlu0 %433  ;;  %v526_v4 = vmul.f32 %v3107_v23, %v523_v8  ;;  %v3379_v59 = vmul.f32 %v3120_v24, %v578_v17  ;;  %v586_v60 = vstv %s2502_s4  ;;  %v3382_v61 = vmul.f32 %v3125_v25, %v578_v17  ;;  %s3461_s4 = sld [smem:[#allocation5 + $0x44]] }
  0xf8   :  { %v456_v38 = vadd.f32 %v453_v58, %v440_v10  ;;  %v464_v39 = vadd.f32 %v461_v2, %v448_v19  ;;  %v439_v62 = vmul.f32 %v436_v56, %v434_v13  ;;  %v447_v18 = vmul.f32 %v444_v57, %v434_v13 }
  0xf9   :  { %v457_v43 = vadd.f32 %v454_v52, %v441_v30  ;;  %v465_v9 = vadd.f32 %v462_v63, %v449_v31  ;;  %v475_v55 = vmul.f32 %v474_v42, %v468_v32  ;;  %v483_v51 = vmul.f32 %v482_v35, %v468_v32 }
  0xfa   :  { %v442_v5 = vadd.f32 %v439_v62, %v416_v6  ;;  %v450_v1 = vadd.f32 %v447_v18, %v424_v37  ;;  %v525_v56 = vmul.f32 %v3093_v21, %v523_v8  ;;  %v524_v57 = vmul.f32 %v3098_v22, %v523_v8 }
  0xfb   :  { %v472_v20 = vpop.permute.xlu1 %471  ;;  %v470_v15 = vpop.permute.xlu0 %469  ;;  %v478_v3 = vadd.f32 %v475_v55, %v456_v38  ;;  %v486_v46 = vadd.f32 %v483_v51, %v464_v39  ;;  %v537_v63 = vstv %s3360_s26  ;;  %v545_v30 = vstv %s3362_s27  ;;  %s3463_s26 = sld [smem:[#allocation5 + $0x22]]  ;;  %s3465_s27 = sld [smem:[#allocation5 + $0x46]] }
  0xfc   :  { %v458_v40 = vadd.f32 %v455_v16, %v442_v5  ;;  %v466_v54 = vadd.f32 %v463_v33, %v450_v1  ;;  %v476_v48 = vmul.f32 %v474_v42, %v470_v15  ;;  %v484_v49 = vmul.f32 %v482_v35, %v470_v15 }
  0xfd   :  { %v477_v44 = vmul.f32 %v474_v42, %v472_v20  ;;  %v485_v23 = vmul.f32 %v482_v35, %v472_v20  ;;  %v3387_v33 = vmul.f32 %v3134_v26, %v578_v17  ;;  %v3390_v32 = vstv %s3364_s29  ;;  %s4153_s29 = sld [smem:[#allocation6 + $0x6]] }
  0xfe   :  { %v479_v31 = vadd.f32 %v476_v48, %v457_v43  ;;  %v487_v10 = vadd.f32 %v484_v49, %v465_v9  ;;  %v562_v13 = vstv %s3366_s30  ;;  %v570_v6 = vstv %s3368_s8  ;;  %s4155_s30 = sld [smem:[#allocation6 + $0x2a]]  ;;  %s4177_s8 = sld [smem:[#allocation6 + $0x19]] }
  0xff   :  { %v495_v41 = vpop.permute.xlu1 %494  ;;  %v493_v12 = vpop.permute.xlu0 %492  ;;  %v480_v39 = vadd.f32 %v477_v44, %v458_v40  ;;  %v488_v62 = vadd.f32 %v485_v23, %v466_v54  ;;  %v3405_v15 = vmul.f32 %v3120_v24, %v586_v60  ;;  %v3409_v40 = vmul.f32 %v3134_v26, %v586_v60 }
 0x100   :  { %v500_v58 = vmul.f32 %v499_v0, %v493_v12  ;;  %v508_v2 = vmul.f32 %v507_v53, %v493_v12  ;;  %v501_v28 = vmul.f32 %v499_v0, %v495_v41  ;;  %v509_v7 = vmul.f32 %v507_v53, %v495_v41 }
 0x101   :  { %v587_v41 = vmul.f32 %v3125_v25, %v586_v60  ;;  %v3413_v54 = vmul.f32 %v3147_v27, %v3390_v32  ;;  %v600_v48 = vstv %s3394_s9  ;;  %v608_v49 = vstv %s3396_s0  ;;  %s3475_s0 = sld [smem:[#allocation5 + $0x21]]  ;;  %s4179_s9 = sld [smem:[#allocation6 + $0x3d]] }
 0x102   :  { %v503_v29 = vadd.f32 %v500_v58, %v478_v3  ;;  %v511_v52 = vadd.f32 %v508_v2, %v486_v46  ;;  %v504_v18 = vadd.f32 %v501_v28, %v479_v31  ;;  %v512_v43 = vadd.f32 %v509_v7, %v487_v10 }
 0x103   :  { %v531_v11 = vpop.permute.xlu1 %530  ;;  %v497_v36 = vpop.permute.xlu0 %496  ;;  %v650_v44 = vstv %s3398_s1  ;;  %v634_v23 = vstv %s3402_s11  ;;  %s3477_s1 = sld [smem:[#allocation5 + $0x45]]  ;;  %s3482_s11 = sld [smem:[#allocation5 + $0x47]] }
 0x104   :  { %v502_v19 = vmul.f32 %v499_v0, %v497_v36  ;;  %v510_v16 = vmul.f32 %v507_v53, %v497_v36  ;;  %v519_v9 = vadd.f32 %v516_v47, %v503_v29  ;;  %v527_v5 = vadd.f32 %v524_v57, %v511_v52 }
 0x105   :  { %v538_v1 = vmul.f32 %v537_v63, %v531_v11  ;;  %v546_v20 = vmul.f32 %v545_v30, %v531_v11  ;;  %v520_v53 = vadd.f32 %v517_v14, %v504_v18  ;;  %v528_v24 = vadd.f32 %v525_v56, %v512_v43 }
 0x106   :  { %v505_v12 = vadd.f32 %v502_v19, %v480_v39  ;;  %v513_v42 = vadd.f32 %v510_v16, %v488_v62 }
 0x107   :  { %v535_v21 = vpop.permute.xlu1 %534  ;;  %v533_v22 = vpop.permute.xlu0 %532  ;;  %v541_v25 = vadd.f32 %v538_v1, %v519_v9  ;;  %v549_v51 = vadd.f32 %v546_v20, %v527_v5 }
 0x108   :  { %v539_v17 = vmul.f32 %v537_v63, %v533_v22  ;;  %v547_v55 = vmul.f32 %v545_v30, %v533_v22  ;;  %v540_v11 = vmul.f32 %v537_v63, %v535_v21  ;;  %v548_v26 = vmul.f32 %v545_v30, %v535_v21 }
 0x109   :  { %v521_v36 = vadd.f32 %v3373_v45, %v505_v12  ;;  %v529_v47 = vadd.f32 %v526_v4, %v513_v42  ;;  %v2719_v45 = vld [vmem:[%s5544_s6 + $0x61] sm:$0xff]  ;;  %v626_v21 = vstv %s3400_s10  ;;  %s3480_s10 = sld [smem:[#allocation5 + $0x23]] }
 0x10a   :  { %v542_v60 = vadd.f32 %v539_v17, %v520_v53  ;;  %v550_v3 = vadd.f32 %v547_v55, %v528_v24  ;;  %v3423_v4 = vmul.f32 %v2719_v45, %v3390_v32  ;;  %v651_v5 = vmul.f32 %v2719_v45, %v650_v44 }
 0x10b   :  { %v558_v37 = vpop.permute.xlu1 %557  ;;  %v556_v38 = vpop.permute.xlu0 %555  ;;  %v543_v28 = vadd.f32 %v540_v11, %v521_v36  ;;  %v551_v7 = vadd.f32 %v548_v26, %v529_v47  ;;  %v672_v11 = vstv %s3429_s15  ;;  %v705_v47 = vstv %s3431_s16  ;;  %s2573_s15 = sld [smem:[#allocation6 + $0x25]]  ;;  %s2578_s16 = sld [smem:[#allocation6 + $0x4]] }
 0x10c   :  { %v563_v35 = vmul.f32 %v562_v13, %v556_v38  ;;  %v571_v34 = vmul.f32 %v570_v6, %v556_v38  ;;  %v564_v27 = vmul.f32 %v562_v13, %v558_v37  ;;  %v572_v57 = vmul.f32 %v570_v6, %v558_v37  ;;  %v2721_v37 = vld [vmem:[%s5544_s6 + $0x71] sm:$0xff] }
 0x10d   :  { %v3443_v38 = vmul.f32 %v2721_v37, %v3390_v32  ;;  %v653_v1 = vmul.f32 %v2721_v37, %v650_v44 }
 0x10e   :  { %v566_v58 = vadd.f32 %v563_v35, %v541_v25  ;;  %v574_v2 = vadd.f32 %v571_v34, %v549_v51  ;;  %v567_v29 = vadd.f32 %v564_v27, %v542_v60  ;;  %v575_v52 = vadd.f32 %v572_v57, %v550_v3 }
 0x10f   :  { %v594_v8 = vpop.permute.xlu1 %593  ;;  %v560_v0 = vpop.permute.xlu0 %559  ;;  %v664_v51 = vstv %s3427_s14  ;;  %v713_v27 = vstv %s3433_s17  ;;  %s2572_s14 = sld [smem:[#allocation6 + $0x1]]  ;;  %s2579_s17 = sld [smem:[#allocation6 + $0x28]] }
 0x110   :  { %v565_v46 = vmul.f32 %v562_v13, %v560_v0  ;;  %v573_v22 = vmul.f32 %v570_v6, %v560_v0  ;;  %v582_v63 = vadd.f32 %v3382_v61, %v566_v58  ;;  %v590_v30 = vadd.f32 %v587_v41, %v574_v2  ;;  %v2720_v13 = vld [vmem:[%s5544_s6 + $0x69] sm:$0xff] }
 0x111   :  { %v601_v31 = vmul.f32 %v600_v48, %v594_v8  ;;  %v609_v10 = vmul.f32 %v608_v49, %v594_v8  ;;  %v652_v6 = vmul.f32 %v2720_v13, %v650_v44  ;;  %v583_v20 = vadd.f32 %v3379_v59, %v567_v29 }
 0x112   :  { %v568_v39 = vadd.f32 %v565_v46, %v543_v28  ;;  %v576_v62 = vadd.f32 %v573_v22, %v551_v7  ;;  %v591_v41 = vadd.f32 %v3405_v15, %v575_v52  ;;  %v2722_v22 = vld [vmem:[%s5544_s6 + $0x6a] sm:$0xff]  ;;  %v2723_v28 = vld [vmem:[%s5544_s6 + $0x62] sm:$0xff] }
 0x113   :  { %v598_v14 = vpop.permute.xlu1 %597  ;;  %v596_v56 = vpop.permute.xlu0 %595  ;;  %v604_v32 = vadd.f32 %v601_v31, %v582_v63  ;;  %v612_v12 = vadd.f32 %v609_v10, %v590_v30  ;;  %v707_v44 = vmul.f32 %v2722_v22, %v705_v47  ;;  %v715_v45 = vmul.f32 %v2722_v22, %v713_v27 }
 0x114   :  { %v602_v61 = vmul.f32 %v600_v48, %v596_v56  ;;  %v610_v18 = vmul.f32 %v608_v49, %v596_v56  ;;  %v584_v0 = vadd.f32 %v3387_v33, %v568_v39  ;;  %v592_v53 = vadd.f32 %v3409_v40, %v576_v62 }
 0x115   :  { %v603_v24 = vmul.f32 %v600_v48, %v598_v14  ;;  %v611_v17 = vmul.f32 %v608_v49, %v598_v14  ;;  %v689_v48 = vstv %s3445_s21  ;;  %v697_v49 = vstv %s3447_s22  ;;  %s3988_s21 = sld [smem:[#allocation6 + $0x2]]  ;;  %s4067_s22 = sld [smem:[#allocation6 + $0x37]] }
 0x116   :  { %v605_v55 = vadd.f32 %v602_v61, %v583_v20  ;;  %v613_v59 = vadd.f32 %v610_v18, %v591_v41  ;;  %v706_v7 = vmul.f32 %v2723_v28, %v705_v47  ;;  %v714_v29 = vmul.f32 %v2723_v28, %v713_v27 }
 0x117   :  { %v622_v19 = vpop.permute.xlu1 %621  ;;  %v620_v16 = vpop.permute.xlu0 %619  ;;  %v606_v56 = vadd.f32 %v603_v24, %v584_v0  ;;  %v614_v40 = vadd.f32 %v611_v17, %v592_v53 }
 0x118   :  { %v627_v43 = vmul.f32 %v626_v21, %v620_v16  ;;  %v635_v9 = vmul.f32 %v634_v23, %v620_v16  ;;  %v628_v42 = vmul.f32 %v626_v21, %v622_v19  ;;  %v636_v35 = vmul.f32 %v634_v23, %v622_v19 }
 0x11a   :  { %v630_v15 = vadd.f32 %v627_v43, %v604_v32  ;;  %v638_v25 = vadd.f32 %v635_v9, %v612_v12  ;;  %v631_v57 = vadd.f32 %v628_v42, %v605_v55  ;;  %v639_v58 = vadd.f32 %v636_v35, %v613_v59  ;;  %v2724_v43 = vld [vmem:[%s5544_s6 + $0x72] sm:$0xff] }
 0x11b   :  { %v658_v34 = vpop.permute.xlu1 %657  ;;  %v624_v8 = vpop.permute.xlu0 %623  ;;  %v708_v9 = vmul.f32 %v2724_v43, %v705_v47  ;;  %v727_v42 = vstv %s3459_s24  ;;  %v735_v35 = vstv %s3461_s4  ;;  %v2725_v47 = vld [vmem:[%s5544_s6 + $0x63] sm:$0xff]  ;;  %s3910_s24 = sld [smem:[#allocation6 + $0xa]]  ;;  %s3912_s4 = sld [smem:[#allocation6 + $0x2e]] }
 0x11c   :  { %v629_v26 = vmul.f32 %v626_v21, %v624_v8  ;;  %v637_v36 = vmul.f32 %v634_v23, %v624_v8  ;;  %v646_v14 = vadd.f32 %v3423_v4, %v630_v15  ;;  %v654_v60 = vadd.f32 %v651_v5, %v638_v25 }
 0x11d   :  { %v665_v3 = vmul.f32 %v664_v51, %v658_v34  ;;  %v673_v46 = vmul.f32 %v672_v11, %v658_v34  ;;  %v647_v52 = vadd.f32 %v3413_v54, %v631_v57  ;;  %v655_v4 = vadd.f32 %v652_v6, %v639_v58 }
 0x11e   :  { %v632_v21 = vadd.f32 %v629_v26, %v606_v56  ;;  %v640_v23 = vadd.f32 %v637_v36, %v614_v40  ;;  %v716_v5 = vmul.f32 %v2724_v43, %v713_v27  ;;  %v768_v34 = vstv %s3463_s26  ;;  %s3919_s26 = sld [smem:[#allocation4 + $0x2]] }
 0x11f   :  { %v662_v2 = vpop.permute.xlu1 %661  ;;  %v660_v33 = vpop.permute.xlu0 %659  ;;  %v668_v13 = vadd.f32 %v665_v3, %v646_v14  ;;  %v676_v37 = vadd.f32 %v673_v46, %v654_v60  ;;  %v776_v8 = vstv %s3465_s27  ;;  %v769_v27 = vmul.f32 %v2725_v47, %v768_v34  ;;  %s3921_s27 = sld [smem:[#allocation4 + $0x3]] }
 0x120   :  { %v666_v31 = vmul.f32 %v664_v51, %v660_v33  ;;  %v674_v10 = vmul.f32 %v672_v11, %v660_v33  ;;  %v667_v39 = vmul.f32 %v664_v51, %v662_v2  ;;  %v675_v62 = vmul.f32 %v672_v11, %v662_v2 }
 0x121   :  { %v648_v61 = vadd.f32 %v3443_v38, %v632_v21  ;;  %v656_v54 = vadd.f32 %v653_v1, %v640_v23  ;;  %v777_v57 = vmul.f32 %v2725_v47, %v776_v8  ;;  %v752_v58 = vstv %s3475_s0  ;;  %s3937_s0 = sld [smem:[#allocation6 + $0xd]] }
 0x122   :  { %v669_v12 = vadd.f32 %v666_v31, %v647_v52  ;;  %v677_v1 = vadd.f32 %v674_v10, %v655_v4  ;;  %v760_v2 = vstv %s3477_s1  ;;  %v790_v60 = vstv %s3480_s10  ;;  %s3939_s1 = sld [smem:[#allocation6 + $0x31]] }
 0x123   :  { %v685_v63 = vpop.permute.xlu1 %684  ;;  %v683_v30 = vpop.permute.xlu0 %682  ;;  %v670_v24 = vadd.f32 %v667_v39, %v648_v61  ;;  %v678_v17 = vadd.f32 %v675_v62, %v656_v54  ;;  %v798_v3 = vstv %s3482_s11  ;;  %v2727_v39 = vld [vmem:[%s5544_s6 + $0x73] sm:$0xff]  ;;  %s4251_s10 = sld [smem:[#allocation6 + $0x9]]  ;;  %s4253_s11 = sld [smem:[#allocation6 + $0x2d]] }
 0x124   :  { %v690_v19 = vmul.f32 %v689_v48, %v683_v30  ;;  %v698_v16 = vmul.f32 %v697_v49, %v683_v30  ;;  %v691_v6 = vmul.f32 %v689_v48, %v685_v63  ;;  %v699_v18 = vmul.f32 %v697_v49, %v685_v63 }
 0x125   :  { %v771_v62 = vmul.f32 %v2727_v39, %v768_v34  ;;  %v779_v61 = vmul.f32 %v2727_v39, %v776_v8  ;;  %v3630_v39 = vld [vmem:[%s5544_s6 + $0x20] sm:$0xff] }
 0x126   :  { %v693_v20 = vadd.f32 %v690_v19, %v668_v13  ;;  %v701_v41 = vadd.f32 %v698_v16, %v676_v37  ;;  %v694_v55 = vadd.f32 %v691_v6, %v669_v12  ;;  %v702_v59 = vadd.f32 %v699_v18, %v677_v1 }
 0x127   :  { %v721_v32 = vpop.permute.xlu1 %720  ;;  %v687_v38 = vpop.permute.xlu0 %686 }
 0x128   :  { %v692_v0 = vmul.f32 %v689_v48, %v687_v38  ;;  %v700_v53 = vmul.f32 %v697_v49, %v687_v38  ;;  %v709_v15 = vadd.f32 %v706_v7, %v693_v20  ;;  %v717_v25 = vadd.f32 %v714_v29, %v701_v41 }
 0x129   :  { %v728_v51 = vmul.f32 %v727_v42, %v721_v32  ;;  %v736_v11 = vmul.f32 %v735_v35, %v721_v32  ;;  %v710_v49 = vadd.f32 %v707_v44, %v694_v55  ;;  %v718_v14 = vadd.f32 %v715_v45, %v702_v59  ;;  %v2726_v44 = vld [vmem:[%s5544_s6 + $0x6b] sm:$0xff] }
 0x12a   :  { %v695_v33 = vadd.f32 %v692_v0, %v670_v24  ;;  %v703_v56 = vadd.f32 %v700_v53, %v678_v17  ;;  %v770_v45 = vmul.f32 %v2726_v44, %v768_v34  ;;  %v778_v16 = vmul.f32 %v2726_v44, %v776_v8  ;;  %v39_v0 = vld [vmem:[%s5543_s5] sm:$0xff]  ;;  %v3585_v44 = vld [vmem:[%s5544_s6 + $0xa] sm:$0xff] }
 0x12b   :  { %v725_v26 = vpop.permute.xlu1 %724  ;;  %v723_v36 = vpop.permute.xlu0 %722  ;;  %v731_v46 = vadd.f32 %v728_v51, %v709_v15  ;;  %v739_v22 = vadd.f32 %v736_v11, %v717_v25 }
 0x12c   :  { %v729_v40 = vmul.f32 %v727_v42, %v723_v36  ;;  %v737_v48 = vmul.f32 %v735_v35, %v723_v36  ;;  %v730_v21 = vmul.f32 %v727_v42, %v725_v26  ;;  %v738_v23 = vmul.f32 %v735_v35, %v725_v26 }
 0x12d   :  { %v711_v30 = vadd.f32 %v708_v9, %v695_v33  ;;  %v719_v31 = vadd.f32 %v716_v5, %v703_v56 }
 0x12e   :  { %v732_v10 = vadd.f32 %v729_v40, %v710_v49  ;;  %v740_v19 = vadd.f32 %v737_v48, %v718_v14  ;;  %v41_v40 = vld [vmem:[%s5543_s5 + $0x10] sm:$0xff]  ;;  %v40_v48 = vld [vmem:[%s5543_s5 + $0x8] sm:$0xff] }
 0x12f   :  { %v748_v28 = vpop.permute.xlu1 %747  ;;  %v746_v7 = vpop.permute.xlu0 %745  ;;  %v733_v32 = vadd.f32 %v730_v21, %v711_v30  ;;  %v741_v38 = vadd.f32 %v738_v23, %v719_v31 }
 0x130   :  { %v754_v29 = vmul.f32 %v752_v58, %v748_v28  ;;  %v762_v52 = vmul.f32 %v760_v2, %v748_v28  ;;  %v753_v4 = vmul.f32 %v752_v58, %v746_v7  ;;  %v761_v63 = vmul.f32 %v760_v2, %v746_v7 }
 0x132   :  { %v756_v13 = vadd.f32 %v753_v4, %v731_v46  ;;  %v764_v37 = vadd.f32 %v761_v63, %v739_v22  ;;  %v757_v54 = vadd.f32 %v754_v29, %v732_v10  ;;  %v765_v6 = vadd.f32 %v762_v52, %v740_v19  ;;  %v3580_v19 = vld [vmem:[%s5544_s6 + $0x12] sm:$0xff] }
 0x133   :  { %v784_v18 = vpop.permute.xlu1 %783  ;;  %v750_v43 = vpop.permute.xlu0 %749 }
 0x134   :  { %v772_v9 = vadd.f32 %v769_v27, %v756_v13  ;;  %v780_v5 = vadd.f32 %v777_v57, %v764_v37  ;;  %v791_v20 = vmul.f32 %v790_v60, %v784_v18  ;;  %v799_v41 = vmul.f32 %v798_v3, %v784_v18  ;;  %v3612_v13 = vld [vmem:[%s5544_s6 + $0x14] sm:$0xff]  ;;  %v3617_v37 = vld [vmem:[%s5544_s6 + $0xc] sm:$0xff] }
 0x135   :  { %v755_v12 = vmul.f32 %v752_v58, %v750_v43  ;;  %v763_v1 = vmul.f32 %v760_v2, %v750_v43  ;;  %v773_v17 = vadd.f32 %v770_v45, %v757_v54  ;;  %v781_v55 = vadd.f32 %v778_v16, %v765_v6  ;;  %v3596_v45 = vld [vmem:[%s5544_s6 + $0x2] sm:$0xff]  ;;  %v3666_v6 = vld [vmem:[%s5544_s6 + $0x32] sm:$0xff]  ;;  %v3671_v18 = vld [vmem:[%s5544_s6 + $0x2a] sm:$0xff] }
 0x136   :  { %v794_v42 = vadd.f32 %v791_v20, %v772_v9  ;;  %v802_v35 = vadd.f32 %v799_v41, %v780_v5  ;;  %v3603_v16 = vld [vmem:[%s5544_s6 + $0x4] sm:$0xff]  ;;  %v3693_v9 = vld [vmem:[%s5544_s6 + $0x34] sm:$0xff]  ;;  %v3698_v5 = vld [vmem:[%s5544_s6 + $0x2c] sm:$0xff] }
 0x137   :  { %v758_v34 = vadd.f32 %v755_v12, %v733_v32  ;;  %v766_v8 = vadd.f32 %v763_v1, %v741_v38  ;;  %v788_v53 = vpop.permute.xlu1 %787  ;;  %v786_v24 = vpop.permute.xlu0 %785  ;;  %v3657_v54 = vld [vmem:[%s5544_s6 + $0x22] sm:$0xff]  ;;  %v3728_v1 = vld [vmem:[%s5544_s6 + $0x50] sm:$0xff] }
 0x138   :  { %v805_v59 = vmax.f32 %v794_v42, 0.0  ;;  %v819_v15 = vmax.f32 %v802_v35, 0.0  ;;  %v793_v25 = vmul.f32 %v790_v60, %v788_v53  ;;  %v801_v51 = vmul.f32 %v798_v3, %v788_v53  ;;  %v3684_v43 = vld [vmem:[%s5544_s6 + $0x24] sm:$0xff] }
 0x139   :  { %v774_v11 = vadd.f32 %v771_v62, %v758_v34  ;;  %v782_v26 = vadd.f32 %v779_v61, %v766_v8  ;;  %v792_v36 = vmul.f32 %v790_v60, %v786_v24  ;;  %v800_v47 = vmul.f32 %v798_v3, %v786_v24  ;;  %v3639_v62 = vld [vmem:[%s5544_s6 + $0x30] sm:$0xff]  ;;  %v3644_v61 = vld [vmem:[%s5544_s6 + $0x28] sm:$0xff]  ;;  %v3715_v32 = vld [vmem:[%s5544_s6 + $0x40] sm:$0xff] }
 0x13a   :  { %v808_v27 = vmul.f32 %v805_v59, %v39_v0  ;;  %v822_v57 = vmul.f32 %v819_v15, %v39_v0  ;;  %v3733_v42 = vld [vmem:[%s5544_s6 + $0x48] sm:$0xff]  ;;  %v3763_v24 = vld [vmem:[%s5544_s6 + $0x52] sm:$0xff] }
 0x13b   :  { %v796_v58 = vadd.f32 %v793_v25, %v774_v11  ;;  %v804_v2 = vadd.f32 %v801_v51, %v782_v26  ;;  %v795_v33 = vadd.f32 %v792_v36, %v773_v17  ;;  %v803_v56 = vadd.f32 %v800_v47, %v781_v55  ;;  %v3702_v41 = vpop.permute.xlu1 %1238  ;;  %v3752_v8 = vld [vmem:[%s5544_s6 + $0x42] sm:$0xff]  ;;  %v3770_v55 = vld [vmem:[%s5544_s6 + $0x4a] sm:$0xff]  ;;  %v3802_v36 = vld [vmem:[%s5544_s6 + $0x54] sm:$0xff] }
 0x13c   :  { %811 = vst [vmem:[#allocation9] sm:$0xff] %v808_v27  ;;  %815 = vst [vmem:[#allocation2 + $0x2] sm:$0xff] %v808_v27  ;;  %v3700_v20 = vpop.permute.xlu0 %1240  ;;  %v3789_v51 = vld [vmem:[%s5544_s6 + $0x44] sm:$0xff] }
 0x13d   :  { %826 = vst [vmem:[#allocation9 + $0x18] sm:$0xff] %v822_v57  ;;  %831 = vst [vmem:[#allocation2 + $0x22] sm:$0xff] %v822_v57  ;;  %v807_v49 = vmax.f32 %v796_v58, 0.0  ;;  %v821_v14 = vmax.f32 %v804_v2, 0.0  ;;  %v806_v60 = vmax.f32 %v795_v33, 0.0  ;;  %v820_v3 = vmax.f32 %v803_v56, 0.0 }
 0x13e   :  { %v3828_v33 = vld [vmem:[%s5544_s6 + $0x60] sm:$0xff] }
 0x13f   :  { %v810_v46 = vmul.f32 %v807_v49, %v41_v40  ;;  %v824_v22 = vmul.f32 %v821_v14, %v41_v40  ;;  %v809_v21 = vmul.f32 %v806_v60, %v40_v48  ;;  %v823_v23 = vmul.f32 %v820_v3, %v40_v48  ;;  %v3719_v12 = vpop.permute.xlu1 %1242  ;;  %5642 = vst [vmem:[#allocation34_spill] sm:$0xff] %v3828_v33  ;;  %v3841_v48 = vld [vmem:[%s5544_s6 + $0x70] sm:$0xff]  ;;  %v3848_v14 = vld [vmem:[%s5544_s6 + $0x68] sm:$0xff] }
 0x140   :  { %v3717_v38 = vpop.permute.xlu0 %1276  ;;  %5645 = vst [vmem:[#allocation37_spill] sm:$0xff] %v3841_v48  ;;  %5647 = vst [vmem:[#allocation39_spill] sm:$0xff] %v3848_v14 }
 0x141   :  { %813 = vst [vmem:[#allocation9 + $0x10] sm:$0xff] %v810_v46  ;;  %817 = vst [vmem:[#allocation2 + $0x12] sm:$0xff] %v810_v46 }
 0x142   :  { %828 = vst [vmem:[#allocation9 + $0x28] sm:$0xff] %v824_v22  ;;  %833 = vst [vmem:[#allocation2 + $0x32] sm:$0xff] %v824_v22  ;;  %v3867_v22 = vld [vmem:[%s5544_s6 + $0x62] sm:$0xff] }
 0x143   :  { %812 = vst [vmem:[#allocation9 + $0x8] sm:$0xff] %v809_v21  ;;  %816 = vst [vmem:[#allocation2 + $0xa] sm:$0xff] %v809_v21  ;;  %v3513_v28 = vld [vmem:[#allocation2] sm:$0xff]  ;;  %v3737_v0 = vpop.permute.xlu1 %1278 }
 0x144   :  { %827 = vst [vmem:[#allocation9 + $0x20] sm:$0xff] %v823_v23  ;;  %832 = vst [vmem:[#allocation2 + $0x2a] sm:$0xff] %v823_v23  ;;  %v3515_v7 = vld [vmem:[#allocation2 + $0x20] sm:$0xff]  ;;  %842 = vrot.lane.b32.xlu0 %v3513_v28, %s2841_s18  ;;  %v3735_v35 = vpop.permute.xlu0 %1280 }
 0x145   :  { %5621 = vst [vmem:[#allocation13_spill] sm:$0xff] %v3513_v28  ;;  %5622 = vst [vmem:[#allocation14_spill] sm:$0xff] %v3515_v7 }
 0x146   :  { %2001 = vst [vmem:[#allocation2] sm:$0x3] %v2840_v50  ;;  %2016 = vst [vmem:[#allocation2 + $0x20] sm:$0x3] %v2840_v50 }
 0x147   :  { %v3754_v53 = vpop.permute.xlu1 %1301  ;;  %5651 = vst [vmem:[#allocation43_spill] sm:$0xff] %v3867_v22 }
 0x148   :  { %v3529_v4 = vld [vmem:[#allocation2 + $0x14] sm:$0xff] }
 0x149   :  { %5625 = vst [vmem:[#allocation17_spill] sm:$0xff] %v3529_v4  ;;  %2005 = vst [vmem:[#allocation2 + $0x1a] sm:$0x3] %v2840_v50  ;;  %v3532_v63 = vld [vmem:[#allocation2 + $0x34] sm:$0xff] }
 0x14a   :  { %v3521_v29 = vld [vmem:[#allocation2 + $0x8] sm:$0xff]  ;;  %v3525_v52 = vld [vmem:[#allocation2 + $0x10] sm:$0xff]  ;;  %5626 = vst [vmem:[#allocation18_spill] sm:$0xff] %v3532_v63  ;;  %2020 = vst [vmem:[#allocation2 + $0x3a] sm:$0x3] %v2840_v50 }
 0x14b   :  { %5623 = vst [vmem:[#allocation15_spill] sm:$0xff] %v3521_v29  ;;  %844 = vrot.lane.b32.xlu1 %v3521_v29, %s2841_s18  ;;  %5624 = vst [vmem:[#allocation16_spill] sm:$0xff] %v3525_v52  ;;  %846 = vrot.lane.b32.xlu0 %v3525_v52, %s2841_s18  ;;  %v3547_v30 = vld [vmem:[#allocation2 + $0x4] sm:$0xff]  ;;  %v3551_v50 = vld [vmem:[#allocation2 + $0xc] sm:$0xff] }
 0x14c   :  { %5627 = vst [vmem:[#allocation19_spill] sm:$0xff] %v3547_v30  ;;  %5628 = vst [vmem:[#allocation20_spill] sm:$0xff] %v3551_v50  ;;  %v3565_v31 = vld [vmem:[#allocation2 + $0x28] sm:$0xff]  ;;  %v3569_v10 = vld [vmem:[#allocation2 + $0x30] sm:$0xff] }
 0x14d   :  { %5629 = vst [vmem:[#allocation21_spill] sm:$0xff] %v3565_v31  ;;  %5630 = vst [vmem:[#allocation22_spill] sm:$0xff] %v3569_v10 }
 0x14f   :  { %880 = vrot.lane.b32.xlu1 %v3513_v28, %s2842_s23  ;;  %882 = vrot.lane.b32.xlu0 %v3521_v29, %s2842_s23  ;;  %v1450_v29 = vstv %s3910_s24  ;;  %s4111_s24 = sld [smem:[#allocation6 + $0x5]] }
 0x153   :  { %884 = vrot.lane.b32.xlu1 %v3525_v52, %s2842_s23  ;;  %905 = vrot.lane.b32.xlu0 %v808_v27, %s2841_s18 }
 0x157   :  { %907 = vrot.lane.b32.xlu1 %v809_v21, %s2841_s18  ;;  %909 = vrot.lane.b32.xlu0 %v810_v46, %s2841_s18 }
 0x15b   :  { %943 = vrot.lane.b32.xlu1 %v808_v27, %s2842_s23  ;;  %945 = vrot.lane.b32.xlu0 %v809_v21, %s2842_s23  ;;  %v3809_v27 = vld [vmem:[%s5544_s6 + $0x4c] sm:$0xff] }
 0x15f   :  { %947 = vrot.lane.b32.xlu1 %v810_v46, %s2842_s23  ;;  %968 = vrot.lane.b32.xlu0 %v3547_v30, %s2841_s18 }
 0x163   :  { %970 = vrot.lane.b32.xlu1 %v3551_v50, %s2841_s18  ;;  %972 = vrot.lane.b32.xlu0 %v3529_v4, %s2841_s18 }
 0x167   :  { %1006 = vrot.lane.b32.xlu1 %v3547_v30, %s2842_s23  ;;  %1008 = vrot.lane.b32.xlu0 %v3551_v50, %s2842_s23 }
 0x16b   :  { %1010 = vrot.lane.b32.xlu1 %v3529_v4, %s2842_s23  ;;  %1031 = vrot.lane.b32.xlu0 %v3515_v7, %s2841_s18 }
 0x16f   :  { %1033 = vrot.lane.b32.xlu1 %v3565_v31, %s2841_s18  ;;  %1035 = vrot.lane.b32.xlu0 %v3569_v10, %s2841_s18 }
 0x173   :  { %1069 = vrot.lane.b32.xlu1 %v3515_v7, %s2842_s23  ;;  %1071 = vrot.lane.b32.xlu0 %v3565_v31, %s2842_s23  ;;  %v2731_v31 = vld [vmem:[%s5544_s6 + $0x8] sm:$0xff] }
 0x177   :  { %1305 = vrot.lane.b32.xlu1 %v3580_v19, %s2841_s18  ;;  %1303 = vrot.lane.b32.xlu0 %v3585_v44, %s2841_s18 }
 0x17b   :  { %1341 = vrot.lane.b32.xlu1 %v3585_v44, %s2842_s23  ;;  %1339 = vrot.lane.b32.xlu0 %v3596_v45, %s2842_s23 }
 0x17f   :  { %1364 = vrot.lane.b32.xlu1 %v3603_v16, %s2841_s18  ;;  %1343 = vrot.lane.b32.xlu0 %v3580_v19, %s2842_s23 }
 0x183   :  { %1368 = vrot.lane.b32.xlu1 %v3612_v13, %s2841_s18  ;;  %1366 = vrot.lane.b32.xlu0 %v3617_v37, %s2841_s18 }
 0x187   :  { %1404 = vrot.lane.b32.xlu1 %v3617_v37, %s2842_s23  ;;  %1402 = vrot.lane.b32.xlu0 %v3603_v16, %s2842_s23 }
 0x18b   :  { %1427 = vrot.lane.b32.xlu1 %v3630_v39, %s2841_s18  ;;  %1406 = vrot.lane.b32.xlu0 %v3612_v13, %s2842_s23 }
 0x18f   :  { %1431 = vrot.lane.b32.xlu1 %v3639_v62, %s2841_s18  ;;  %1429 = vrot.lane.b32.xlu0 %v3644_v61, %s2841_s18 }
 0x193   :  { %1467 = vrot.lane.b32.xlu1 %v3644_v61, %s2842_s23  ;;  %1465 = vrot.lane.b32.xlu0 %v3630_v39, %s2842_s23 }
 0x197   :  { %1490 = vrot.lane.b32.xlu1 %v3657_v54, %s2841_s18  ;;  %1469 = vrot.lane.b32.xlu0 %v3639_v62, %s2842_s23 }
 0x19b   :  { %1494 = vrot.lane.b32.xlu1 %v3666_v6, %s2841_s18  ;;  %1492 = vrot.lane.b32.xlu0 %v3671_v18, %s2841_s18 }
 0x19f   :  { %1530 = vrot.lane.b32.xlu1 %v3671_v18, %s2842_s23  ;;  %1528 = vrot.lane.b32.xlu0 %v3657_v54, %s2842_s23 }
 0x1a3   :  { %1553 = vrot.lane.b32.xlu1 %v3684_v43, %s2841_s18  ;;  %1532 = vrot.lane.b32.xlu0 %v3666_v6, %s2842_s23 }
 0x1a7   :  { %1557 = vrot.lane.b32.xlu1 %v3693_v9, %s2841_s18  ;;  %1555 = vrot.lane.b32.xlu0 %v3698_v5, %s2841_s18 }
 0x1ab   :  { %1593 = vrot.lane.b32.xlu1 %v3698_v5, %s2842_s23  ;;  %1591 = vrot.lane.b32.xlu0 %v3684_v43, %s2842_s23 }
 0x1af   :  { %1616 = vrot.lane.b32.xlu1 %v3715_v32, %s2841_s18  ;;  %1595 = vrot.lane.b32.xlu0 %v3693_v9, %s2842_s23 }
 0x1b3   :  { %1620 = vrot.lane.b32.xlu1 %v3728_v1, %s2841_s18  ;;  %1618 = vrot.lane.b32.xlu0 %v3733_v42, %s2841_s18 }
 0x1b6   :  { %v3747_v34 = vpop.permute.xlu0 %842 }
 0x1b7   :  { %1656 = vrot.lane.b32.xlu1 %v3733_v42, %s2842_s23  ;;  %1654 = vrot.lane.b32.xlu0 %v3715_v32, %s2842_s23  ;;  %5631 = vst [vmem:[#allocation23_spill] sm:$0xff] %v3747_v34  ;;  %v1395_v34 = vstv %s3898_s3  ;;  %s4040_s3 = sld [smem:[#allocation6 + $0x3]] }
 0x1b8   :  { %v4007_v10 = vmul.f32 %v1395_v34, %v3603_v16 }
 0x1bb   :  { %1679 = vrot.lane.b32.xlu1 %v3752_v8, %s2841_s18  ;;  %1658 = vrot.lane.b32.xlu0 %v3728_v1, %s2842_s23 }
 0x1bd   :  { %v3765_v17 = vpop.permute.xlu1 %844  ;;  %v3772_v59 = vpop.permute.xlu0 %846 }
 0x1be   :  { %5632 = vst [vmem:[#allocation24_spill] sm:$0xff] %v3765_v17  ;;  %5633 = vst [vmem:[#allocation25_spill] sm:$0xff] %v3772_v59 }
 0x1bf   :  { %1683 = vrot.lane.b32.xlu1 %v3763_v24, %s2841_s18  ;;  %1681 = vrot.lane.b32.xlu0 %v3770_v55, %s2841_s18 }
 0x1c1   :  { %v3778_v15 = vpop.permute.xlu1 %880  ;;  %v3780_v25 = vpop.permute.xlu0 %882 }
 0x1c2   :  { %5634 = vst [vmem:[#allocation26_spill] sm:$0xff] %v3778_v15  ;;  %5635 = vst [vmem:[#allocation27_spill] sm:$0xff] %v3780_v25  ;;  %v2730_v25 = vld [vmem:[%s5544_s6 + $0x10] sm:$0xff] }
 0x1c3   :  { %1719 = vrot.lane.b32.xlu1 %v3770_v55, %s2842_s23  ;;  %1717 = vrot.lane.b32.xlu0 %v3752_v8, %s2842_s23 }
 0x1c5   :  { %v3791_v11 = vpop.permute.xlu1 %884  ;;  %v3793_v26 = vpop.permute.xlu0 %905 }
 0x1c6   :  { %5636 = vst [vmem:[#allocation28_spill] sm:$0xff] %v3791_v11  ;;  %5637 = vst [vmem:[#allocation29_spill] sm:$0xff] %v3793_v26  ;;  %v2661_v26 = vld [vmem:[%s5544_s6 + $0x6c] sm:$0xff] }
 0x1c7   :  { %1742 = vrot.lane.b32.xlu1 %v3789_v51, %s2841_s18  ;;  %1721 = vrot.lane.b32.xlu0 %v3763_v24, %s2842_s23 }
 0x1c9   :  { %v3804_v47 = vpop.permute.xlu1 %907  ;;  %v3811_v57 = vpop.permute.xlu0 %909 }
 0x1ca   :  { %5638 = vst [vmem:[#allocation30_spill] sm:$0xff] %v3804_v47  ;;  %5639 = vst [vmem:[#allocation31_spill] sm:$0xff] %v3811_v57 }
 0x1cb   :  { %1746 = vrot.lane.b32.xlu1 %v3802_v36, %s2841_s18  ;;  %1744 = vrot.lane.b32.xlu0 %v3809_v27, %s2841_s18 }
 0x1cd   :  { %v3817_v58 = vpop.permute.xlu1 %943  ;;  %v3819_v2 = vpop.permute.xlu0 %945 }
 0x1ce   :  { %5640 = vst [vmem:[#allocation32_spill] sm:$0xff] %v3817_v58  ;;  %5641 = vst [vmem:[#allocation33_spill] sm:$0xff] %v3819_v2  ;;  %v1332_v2 = vstv %s2579_s17  ;;  %v2729_v58 = vld [vmem:[%s5544_s6] sm:$0xff]  ;;  %s3972_s17 = sld [smem:[#allocation6 + $0x34]] }
 0x1cf   :  { %1782 = vrot.lane.b32.xlu1 %v3809_v27, %s2842_s23  ;;  %1780 = vrot.lane.b32.xlu0 %v3789_v51, %s2842_s23  ;;  %v3966_v30 = vmul.f32 %v3596_v45, %v1332_v2  ;;  %v3997_v52 = vmul.f32 %v1332_v2, %v3585_v44 }
 0x1d1   :  { %v3830_v56 = vpop.permute.xlu1 %947  ;;  %v3832_v40 = vpop.permute.xlu0 %968 }
 0x1d2   :  { %5643 = vst [vmem:[#allocation35_spill] sm:$0xff] %v3830_v56  ;;  %5644 = vst [vmem:[#allocation36_spill] sm:$0xff] %v3832_v40  ;;  %v1324_v56 = vstv %s2578_s16  ;;  %v3928_v40 = vld [vmem:[%s5544_s6 + $0x74] sm:$0xff]  ;;  %s3970_s16 = sld [smem:[#allocation6 + $0x10]] }
 0x1d3   :  { %1805 = vrot.lane.b32.xlu1 %v3828_v33, %s2841_s18  ;;  %1784 = vrot.lane.b32.xlu0 %v3802_v36, %s2842_s23  ;;  %v3963_v50 = vmul.f32 %v3596_v45, %v1324_v56  ;;  %v3986_v45 = vstv %s3903_s20  ;;  %v3994_v17 = vmul.f32 %v1324_v56, %v3585_v44  ;;  %s4065_s20 = sld [smem:[#allocation6 + $0x13]] }
 0x1d5   :  { %v3843_v49 = vpop.permute.xlu1 %970  ;;  %v3850_v60 = vpop.permute.xlu0 %972 }
 0x1d6   :  { %5646 = vst [vmem:[#allocation38_spill] sm:$0xff] %v3843_v49  ;;  %5648 = vst [vmem:[#allocation40_spill] sm:$0xff] %v3850_v60  ;;  %v2652_v60 = vld [vmem:[%s5544_s6 + $0x6a] sm:$0xff] }
 0x1d7   :  { %1809 = vrot.lane.b32.xlu1 %v3841_v48, %s2841_s18  ;;  %1807 = vrot.lane.b32.xlu0 %v3848_v14, %s2841_s18 }
 0x1d9   :  { %v3856_v3 = vpop.permute.xlu1 %1006  ;;  %v3858_v46 = vpop.permute.xlu0 %1008 }
 0x1da   :  { %5649 = vst [vmem:[#allocation41_spill] sm:$0xff] %v3856_v3  ;;  %5650 = vst [vmem:[#allocation42_spill] sm:$0xff] %v3858_v46  ;;  %v3880_v46 = vld [vmem:[%s5544_s6 + $0x72] sm:$0xff] }
 0x1db   :  { %1845 = vrot.lane.b32.xlu1 %v3848_v14, %s2842_s23  ;;  %1843 = vrot.lane.b32.xlu0 %v3828_v33, %s2842_s23  ;;  %5654 = vst [vmem:[#allocation46_spill] sm:$0xff] %v3880_v46  ;;  %v1255_v14 = vmul.f32 %v3986_v45, %v3700_v20 }
 0x1dd   :  { %v3869_v21 = vpop.permute.xlu1 %1010  ;;  %v3871_v23 = vpop.permute.xlu0 %1031 }
 0x1de   :  { %5652 = vst [vmem:[#allocation44_spill] sm:$0xff] %v3869_v21  ;;  %5653 = vst [vmem:[#allocation45_spill] sm:$0xff] %v3871_v23 }
 0x1df   :  { %1868 = vrot.lane.b32.xlu1 %v3867_v22, %s2841_s18  ;;  %1847 = vrot.lane.b32.xlu0 %v3841_v48, %s2842_s23 }
 0x1e1   :  { %v3882_v3 = vpop.permute.xlu1 %1033  ;;  %v3887_v23 = vpop.permute.xlu0 %1035 }
 0x1e2   :  { %5655 = vst [vmem:[#allocation47_spill] sm:$0xff] %v3882_v3  ;;  %5656 = vst [vmem:[#allocation48_spill] sm:$0xff] %v3887_v23  ;;  %v2660_v23 = vld [vmem:[%s5544_s6 + $0x64] sm:$0xff]  ;;  %v1269_v3 = vstv %s2573_s15  ;;  %s4303_s15 = sld [smem:[#allocation6 + $0x2f]] }
 0x1e3   :  { %1872 = vrot.lane.b32.xlu1 %v3880_v46, %s2841_s18  ;;  %1870 = vrot.lane.b32.xlu0 %v2652_v60, %s2841_s18  ;;  %v3935_v47 = vmul.f32 %v2729_v58, %v1269_v3  ;;  %v3958_v59 = vmul.f32 %v2731_v31, %v1269_v3 }
 0x1e5   :  { %v3892_v21 = vpop.permute.xlu1 %1069  ;;  %v3894_v49 = vpop.permute.xlu0 %1071 }
 0x1e6   :  { %5657 = vst [vmem:[#allocation49_spill] sm:$0xff] %v3892_v21  ;;  %5658 = vst [vmem:[#allocation50_spill] sm:$0xff] %v3894_v49  ;;  %v1261_v21 = vstv %s2572_s14  ;;  %s4301_s14 = sld [smem:[#allocation6 + $0xb]] }
 0x1e7   :  { %1908 = vrot.lane.b32.xlu1 %v2652_v60, %s2842_s23  ;;  %1906 = vrot.lane.b32.xlu0 %v3867_v22, %s2842_s23  ;;  %v3933_v57 = vmul.f32 %v2729_v58, %v1261_v21  ;;  %v3949_v15 = vmul.f32 %v2730_v25, %v1261_v21  ;;  %v3951_v58 = vmul.f32 %v2730_v25, %v1269_v3  ;;  %v1387_v25 = vstv %s3896_s2  ;;  %s3990_s2 = sld [smem:[#allocation6 + $0x26]] }
 0x1e8   :  { %v3956_v7 = vmul.f32 %v2731_v31, %v1261_v21  ;;  %v3977_v31 = vmul.f32 %v1324_v56, %v3580_v19  ;;  %v3980_v3 = vmul.f32 %v1332_v2, %v3580_v19  ;;  %v3983_v21 = vstv %s3901_s19  ;;  %s4042_s19 = sld [smem:[#allocation6 + $0x27]] }
 0x1e9   :  { %v3914_v49 = vpop.permute.xlu1 %1305  ;;  %v3916_v60 = vpop.permute.xlu0 %1303  ;;  %v1458_v19 = vstv %s3912_s4  ;;  %v4004_v63 = vmul.f32 %v1387_v25, %v3603_v16  ;;  %v4013_v56 = vmul.f32 %v1395_v34, %v3612_v13  ;;  %v4018_v2 = vmul.f32 %v1387_v25, %v3617_v37  ;;  %s4113_s4 = sld [smem:[#allocation6 + $0x29]] }
 0x1ea   :  { %v4021_v22 = vmul.f32 %v1395_v34, %v3617_v37  ;;  %v1247_v16 = vmul.f32 %v3983_v21, %v3700_v20  ;;  %v4032_v48 = vmul.f32 %v3630_v39, %v1458_v19  ;;  %v4046_v37 = vmul.f32 %v3639_v62, %v1450_v29 }
 0x1eb   :  { %1931 = vrot.lane.b32.xlu1 %v2660_v23, %s2841_s18  ;;  %1910 = vrot.lane.b32.xlu0 %v3880_v46, %s2842_s23  ;;  %v4010_v46 = vmul.f32 %v1387_v25, %v3612_v13  ;;  %5660 = vst [vmem:[#allocation52_spill] sm:$0xff] %v4013_v56  ;;  %v4029_v13 = vmul.f32 %v3630_v39, %v1450_v29  ;;  %v4035_v56 = vstv %s3919_s26  ;;  %v4038_v25 = vstv %s3921_s27  ;;  %s4123_s26 = sld [smem:[#allocation6 + $0x16]]  ;;  %s4125_s27 = sld [smem:[#allocation6 + $0x3a]] }
 0x1ec   :  { %5662 = vst [vmem:[#allocation54_spill] sm:$0xff] %v4032_v48  ;;  %5663 = vst [vmem:[#allocation55_spill] sm:$0xff] %v4046_v37  ;;  %v4049_v20 = vmul.f32 %v3639_v62, %v1458_v19  ;;  %v1513_v39 = vstv %s3937_s0  ;;  %v1521_v34 = vstv %s3939_s1  ;;  %v4056_v48 = vmul.f32 %v3644_v61, %v1450_v29  ;;  %s4205_s0 = sld [smem:[#allocation6 + $0x8]]  ;;  %s4207_s1 = sld [smem:[#allocation6 + $0x2c]] }
 0x1ed   :  { %v3941_v11 = vpop.permute.xlu1 %1341  ;;  %v3960_v4 = vpop.permute.xlu0 %1339  ;;  %5659 = vst [vmem:[#allocation51_spill] sm:$0xff] %v4010_v46  ;;  %5661 = vst [vmem:[#allocation53_spill] sm:$0xff] %v4029_v13  ;;  %v4059_v13 = vmul.f32 %v3644_v61, %v1458_v19  ;;  %v1254_v37 = vmul.f32 %v3986_v45, %v3702_v41  ;;  %v1584_v46 = vstv %s3972_s17  ;;  %v1250_v29 = vadd.f32 %v1247_v16, %v4035_v56  ;;  %s4335_s17 = sld [smem:[#allocation6 + $0x30]] }
 0x1ee   :  { %5664 = vst [vmem:[#allocation56_spill] sm:$0xff] %v4049_v20  ;;  %5665 = vst [vmem:[#allocation57_spill] sm:$0xff] %v4056_v48  ;;  %v1576_v20 = vstv %s3970_s16  ;;  %v1258_v33 = vadd.f32 %v1255_v14, %v4038_v25  ;;  %v4076_v61 = vmul.f32 %v3657_v54, %v1513_v39  ;;  %v4079_v19 = vmul.f32 %v3657_v54, %v1521_v34  ;;  %s4333_s16 = sld [smem:[#allocation6 + $0xc]] }
 0x1ef   :  { %1935 = vrot.lane.b32.xlu1 %v3928_v40, %s2841_s18  ;;  %1933 = vrot.lane.b32.xlu0 %v2661_v26, %s2841_s18  ;;  %5666 = vst [vmem:[#allocation58_spill] sm:$0xff] %v4059_v13  ;;  %v4082_v13 = vstv %s3988_s21  ;;  %v4090_v48 = vmul.f32 %v3666_v6, %v1513_v39  ;;  %v4093_v16 = vmul.f32 %v3666_v6, %v1521_v34  ;;  %s4369_s21 = sld [smem:[#allocation6 + $0xe]] }
 0x1f0   :  { %5667 = vst [vmem:[#allocation59_spill] sm:$0xff] %v4076_v61  ;;  %5668 = vst [vmem:[#allocation60_spill] sm:$0xff] %v4079_v19  ;;  %v4096_v14 = vmul.f32 %v3671_v18, %v1513_v39  ;;  %v4099_v61 = vmul.f32 %v3671_v18, %v1521_v34  ;;  %v4104_v19 = vmul.f32 %v3684_v43, %v1576_v20 }
 0x1f1   :  { %v4001_v28 = vpop.permute.xlu1 %1364  ;;  %v4015_v44 = vpop.permute.xlu0 %1343  ;;  %5669 = vst [vmem:[#allocation61_spill] sm:$0xff] %v4090_v48  ;;  %5670 = vst [vmem:[#allocation62_spill] sm:$0xff] %v4093_v16  ;;  %v1257_v6 = vadd.f32 %v1254_v37, %v4038_v25  ;;  %v1266_v39 = vadd.f32 %v3956_v7, %v1250_v29  ;;  %v1274_v34 = vadd.f32 %v3958_v59, %v1258_v33  ;;  %v4132_v7 = vstv %s4040_s3  ;;  %s4407_s3 = sld [smem:[#allocation6 + $0xf]] }
 0x1f2   :  { %5671 = vst [vmem:[#allocation63_spill] sm:$0xff] %v4096_v14  ;;  %5672 = vst [vmem:[#allocation64_spill] sm:$0xff] %v4099_v61  ;;  %v1248_v37 = vmul.f32 %v3983_v21, %v3719_v12  ;;  %v4135_v29 = vstv %s4042_s19  ;;  %v4138_v59 = vmul.f32 %v3693_v9, %v1576_v20  ;;  %v4141_v33 = vmul.f32 %v3693_v9, %v1584_v46  ;;  %s4409_s19 = sld [smem:[#allocation6 + $0x33]] }
 0x1f3   :  { %1971 = vrot.lane.b32.xlu1 %v2661_v26, %s2842_s23  ;;  %1969 = vrot.lane.b32.xlu0 %v2660_v23, %s2842_s23  ;;  %v1246_v23 = vmul.f32 %v3983_v21, %v3702_v41  ;;  %v4085_v41 = vstv %s3990_s2  ;;  %5673 = vst [vmem:[#allocation65_spill] sm:$0xff] %v4104_v19  ;;  %v1318_v19 = vmul.f32 %v4135_v29, %v3916_v60  ;;  %v1639_v16 = vstv %s4065_s20  ;;  %s4371_s2 = sld [smem:[#allocation6 + $0x32]]  ;;  %s4431_s20 = sld [smem:[#allocation6 + $0x11]] }
 0x1f4   :  { %5675 = vst [vmem:[#allocation67_spill] sm:$0xff] %v4138_v59  ;;  %5676 = vst [vmem:[#allocation68_spill] sm:$0xff] %v4141_v33  ;;  %v1273_v61 = vadd.f32 %v3935_v47, %v1257_v6  ;;  %v1292_v14 = vmul.f32 %v4085_v41, %v3717_v38  ;;  %v4167_v47 = vmul.f32 %v3698_v5, %v1584_v46 }
 0x1f5   :  { %v4053_v26 = vpop.permute.xlu1 %1368  ;;  %v4069_v62 = vpop.permute.xlu0 %1366  ;;  %v1249_v48 = vadd.f32 %v1246_v23, %v4035_v56  ;;  %v1293_v23 = vmul.f32 %v4085_v41, %v3737_v0 }
 0x1f7   :  { %1973 = vrot.lane.b32.xlu0 %v3928_v40, %s2842_s23  ;;  %v4107_v40 = vmul.f32 %v3684_v43, %v1584_v46  ;;  %v1285_v43 = vmul.f32 %v4082_v13, %v3737_v0  ;;  %v1310_v0 = vmul.f32 %v4132_v7, %v3916_v60  ;;  %v1296_v59 = vadd.f32 %v1293_v23, %v1274_v34 }
 0x1f8   :  { %v1284_v60 = vmul.f32 %v4082_v13, %v3717_v38  ;;  %v4184_v46 = vmul.f32 %v3728_v1, %v1639_v16  ;;  %v1295_v23 = vadd.f32 %v1292_v14, %v1273_v61 }
 0x1f9   :  { %v4101_v54 = vpop.permute.xlu1 %1404  ;;  %5674 = vst [vmem:[#allocation66_spill] sm:$0xff] %v4107_v40  ;;  %v4115_v18 = vpop.permute.xlu0 %1402  ;;  %v1256_v40 = vmul.f32 %v3986_v45, %v3719_v12  ;;  %v1647_v12 = vstv %s4067_s22  ;;  %v1265_v45 = vadd.f32 %v3933_v57, %v1249_v48  ;;  %v1288_v33 = vadd.f32 %v1285_v43, %v1266_v39  ;;  %s4433_s22 = sld [smem:[#allocation6 + $0x35]] }
 0x1fa   :  { %v4164_v57 = vmul.f32 %v3698_v5, %v1576_v20  ;;  %v1251_v48 = vadd.f32 %v1248_v37, %v4035_v56  ;;  %v4172_v39 = vmul.f32 %v3715_v32, %v1639_v16  ;;  %v4175_v34 = vmul.f32 %v3715_v32, %v1647_v12  ;;  %5679 = vst [vmem:[#allocation71_spill] sm:$0xff] %v4184_v46 }
 0x1fb   :  { %v1259_v6 = vadd.f32 %v1256_v40, %v4038_v25  ;;  %v1313_v38 = vadd.f32 %v1310_v0, %v1288_v33  ;;  %v1321_v20 = vadd.f32 %v1318_v19, %v1296_v59  ;;  %v4187_v56 = vmul.f32 %v3728_v1, %v1647_v12 }
 0x1fc   :  { %5677 = vst [vmem:[#allocation69_spill] sm:$0xff] %v4172_v39  ;;  %5678 = vst [vmem:[#allocation70_spill] sm:$0xff] %v4175_v34  ;;  %v4190_v25 = vstv %s4111_s24  ;;  %v4193_v40 = vstv %s4113_s4  ;;  %v1287_v43 = vadd.f32 %v1284_v60, %v1265_v45  ;;  %v1702_v37 = vstv %s4123_s26  ;;  %s4469_s24 = sld [smem:[#allocation6 + $0x12]]  ;;  %s4471_s4 = sld [smem:[#allocation6 + $0x36]] }
 0x1fd   :  { %v4147_v21 = vpop.permute.xlu1 %1427  ;;  %v4157_v9 = vpop.permute.xlu0 %1406  ;;  %5680 = vst [vmem:[#allocation72_spill] sm:$0xff] %v4187_v56  ;;  %v1710_v19 = vstv %s4125_s27  ;;  %v1267_v59 = vadd.f32 %v3949_v15, %v1251_v48  ;;  %v1275_v33 = vadd.f32 %v3951_v58, %v1259_v6  ;;  %v1286_v1 = vmul.f32 %v4082_v13, %v3735_v35  ;;  %s4503_s26 = sld [smem:[#allocation6 + $0x14]]  ;;  %s4505_s27 = sld [smem:[#allocation6 + $0x38]] }
 0x1fe   :  { %v1294_v0 = vmul.f32 %v4085_v41, %v3735_v35  ;;  %v1329_v61 = vadd.f32 %v3994_v17, %v1313_v38  ;;  %v1337_v14 = vadd.f32 %v3997_v52, %v1321_v20  ;;  %v1348_v45 = vmul.f32 %v4190_v25, %v3941_v11 }
 0x1ff   :  { %v1356_v15 = vmul.f32 %v4193_v40, %v3941_v11  ;;  %v1309_v35 = vmul.f32 %v4132_v7, %v3754_v53  ;;  %v1317_v13 = vmul.f32 %v4135_v29, %v3754_v53  ;;  %v4222_v41 = vstv %s4153_s29  ;;  %s4507_s29 = sld [smem:[#allocation6 + $0x1f]] }
 0x200   :  { %v4225_v17 = vstv %s4155_s30  ;;  %v4230_v60 = vmul.f32 %v3733_v42, %v1639_v16  ;;  %v4233_v11 = vmul.f32 %v3733_v42, %v1647_v12  ;;  %v1373_v48 = vmul.f32 %v4222_v41, %v4069_v62  ;;  %s4509_s30 = sld [smem:[#allocation6 + $0x43]] }
 0x201   :  { %v4181_v5 = vpop.permute.xlu1 %1431  ;;  %v4195_v32 = vpop.permute.xlu0 %1429  ;;  %v1381_v6 = vmul.f32 %v4225_v17, %v4069_v62  ;;  %v4240_v53 = vmul.f32 %v3752_v8, %v1702_v37  ;;  %v4243_v38 = vmul.f32 %v3752_v8, %v1710_v19  ;;  %v4246_v20 = vmul.f32 %v3763_v24, %v1702_v37 }
 0x202   :  { %5681 = vst [vmem:[#allocation73_spill] sm:$0xff] %v4233_v11  ;;  %v4249_v16 = vmul.f32 %v3763_v24, %v1710_v19  ;;  %v1765_v42 = vstv %s4177_s8  ;;  %v1773_v12 = vstv %s4179_s9  ;;  %v1351_v56 = vadd.f32 %v1348_v45, %v1329_v61  ;;  %s4521_s8 = sld [smem:[#allocation6 + $0x15]]  ;;  %s4523_s9 = sld [smem:[#allocation6 + $0x39]] }
 0x203   :  { %5682 = vst [vmem:[#allocation74_spill] sm:$0xff] %v4240_v53  ;;  %5683 = vst [vmem:[#allocation75_spill] sm:$0xff] %v4243_v38  ;;  %v1359_v62 = vadd.f32 %v1356_v15, %v1337_v14  ;;  %v1312_v8 = vadd.f32 %v1309_v35, %v1287_v43  ;;  %v1320_v38 = vadd.f32 %v1317_v13, %v1295_v23  ;;  %v4278_v43 = vstv %s4205_s0  ;;  %s4559_s0 = sld [smem:[#allocation6 + $0x17]] }
 0x204   :  { %5684 = vst [vmem:[#allocation76_spill] sm:$0xff] %v4246_v20  ;;  %5685 = vst [vmem:[#allocation77_spill] sm:$0xff] %v4249_v16  ;;  %v1289_v46 = vadd.f32 %v1286_v1, %v1267_v59  ;;  %v1297_v34 = vadd.f32 %v1294_v0, %v1275_v33  ;;  %v4262_v24 = vmul.f32 %v3770_v55, %v1702_v37  ;;  %v4281_v23 = vstv %s4207_s1  ;;  %s4561_s1 = sld [smem:[#allocation6 + $0x3b]] }
 0x205   :  { %v4215_v58 = vpop.permute.xlu1 %1467  ;;  %v4227_v52 = vpop.permute.xlu0 %1465  ;;  %v4265_v16 = vmul.f32 %v3770_v55, %v1710_v19  ;;  %v1376_v39 = vadd.f32 %v1373_v48, %v1351_v56  ;;  %v1384_v11 = vadd.f32 %v1381_v6, %v1359_v62  ;;  %v4268_v61 = vmul.f32 %v3789_v51, %v1765_v42 }
 0x206   :  { %v4271_v14 = vmul.f32 %v3789_v51, %v1773_v12  ;;  %v4284_v37 = vmul.f32 %v3802_v36, %v1765_v42  ;;  %v4287_v55 = vmul.f32 %v3802_v36, %v1773_v12  ;;  %v1311_v56 = vmul.f32 %v4132_v7, %v3914_v49 }
 0x207   :  { %v1319_v51 = vmul.f32 %v4135_v29, %v3914_v49  ;;  %v1328_v59 = vadd.f32 %v3963_v50, %v1312_v8  ;;  %v1336_v33 = vadd.f32 %v3966_v30, %v1320_v38  ;;  %v1347_v1 = vmul.f32 %v4190_v25, %v3960_v4 }
 0x208   :  { %v1355_v36 = vmul.f32 %v4193_v40, %v3960_v4  ;;  %v1392_v49 = vadd.f32 %v4018_v2, %v1376_v39  ;;  %v1400_v29 = vadd.f32 %v4021_v22, %v1384_v11  ;;  %v1411_v50 = vmul.f32 %v4278_v43, %v4101_v54 }
 0x209   :  { %v4257_v53 = vpop.permute.xlu1 %1490  ;;  %v4259_v20 = vpop.permute.xlu0 %1469  ;;  %v1419_v30 = vmul.f32 %v4281_v23, %v4101_v54  ;;  %v1372_v0 = vmul.f32 %v4222_v41, %v4001_v28  ;;  %v1380_v4 = vmul.f32 %v4225_v17, %v4001_v28  ;;  %v4316_v45 = vstv %s4251_s10  ;;  %s4567_s10 = sld [smem:[#allocation6 + $0x18]] }
 0x20a   :  { %v4319_v15 = vstv %s4253_s11  ;;  %v1314_v35 = vadd.f32 %v1311_v56, %v1289_v46  ;;  %v1322_v2 = vadd.f32 %v1319_v51, %v1297_v34  ;;  %v1436_v22 = vmul.f32 %v4316_v45, %v4195_v32  ;;  %s4569_s11 = sld [smem:[#allocation6 + $0x3c]] }
 0x20b   :  { %v1444_v54 = vmul.f32 %v4319_v15, %v4195_v32  ;;  %v4328_v13 = vmul.f32 %v3809_v27, %v1765_v42  ;;  %v4331_v28 = vmul.f32 %v3809_v27, %v1773_v12  ;;  %v1350_v11 = vadd.f32 %v1347_v1, %v1328_v59 }
 0x20c   :  { %v1358_v48 = vadd.f32 %v1355_v36, %v1336_v33  ;;  %v1349_v46 = vmul.f32 %v4190_v25, %v4015_v44  ;;  %v1357_v32 = vmul.f32 %v4193_v40, %v4015_v44  ;;  %v1414_v6 = vadd.f32 %v1411_v50, %v1392_v49 }
 0x20d   :  { %v4293_v19 = vpop.permute.xlu1 %1494  ;;  %v1493_v7 = vpop.permute.xlu0 %1492  ;;  %v1422_v38 = vadd.f32 %v1419_v30, %v1400_v29  ;;  %v4344_v27 = vstv %s4273_s12  ;;  %v4347_v42 = vstv %s4275_s13  ;;  %v1375_v12 = vadd.f32 %v1372_v0, %v1350_v11  ;;  %v5686_v30 = vld [vmem:[#allocation57_spill] sm:$0xff]  ;;  %s4595_s12 = sld [smem:[#allocation6 + $0x1a]]  ;;  %s4597_s13 = sld [smem:[#allocation6 + $0x3e]] }
 0x20e   :  { %v1383_v62 = vadd.f32 %v1380_v4, %v1358_v48  ;;  %v1330_v8 = vadd.f32 %v3977_v31, %v1314_v35  ;;  %v1338_v56 = vadd.f32 %v3980_v3, %v1322_v2  ;;  %v1439_v51 = vadd.f32 %v1436_v22, %v1414_v6  ;;  %v5687_v4 = vld [vmem:[#allocation58_spill] sm:$0xff] }
 0x20f   :  { %v1447_v59 = vadd.f32 %v1444_v54, %v1422_v38  ;;  %v1374_v25 = vmul.f32 %v4222_v41, %v4053_v26  ;;  %v1382_v44 = vmul.f32 %v4225_v17, %v4053_v26  ;;  %v4358_v40 = vstv %s4301_s14  ;;  %v5688_v38 = vld [vmem:[#allocation34_spill] sm:$0xff]  ;;  %s4605_s14 = sld [smem:[#allocation6 + $0x1b]] }
 0x210   :  { %v4361_v1 = vstv %s4303_s15  ;;  %v1352_v49 = vadd.f32 %v1349_v46, %v1330_v8  ;;  %v1360_v31 = vadd.f32 %v1357_v32, %v1338_v56  ;;  %v1410_v3 = vmul.f32 %v4278_v43, %v4115_v18  ;;  %s4607_s15 = sld [smem:[#allocation6 + $0x3f]] }
 0x211   :  { %v4325_v39 = vpop.permute.xlu1 %1530  ;;  %v4337_v34 = vpop.permute.xlu0 %1528  ;;  %v1418_v29 = vmul.f32 %v4281_v23, %v4115_v18  ;;  %v1391_v26 = vadd.f32 %v4004_v63, %v1375_v12  ;;  %v1399_v41 = vadd.f32 %v4007_v10, %v1383_v62  ;;  %v1435_v17 = vmul.f32 %v4316_v45, %v4147_v21 }
 0x212   :  { %v1443_v50 = vmul.f32 %v4319_v15, %v4147_v21  ;;  %v1455_v0 = vadd.f32 %v5686_v30, %v1439_v51  ;;  %v1463_v35 = vadd.f32 %v5687_v4, %v1447_v59  ;;  %v1474_v18 = vmul.f32 %v4358_v40, %v4215_v58 }
 0x213   :  { %v1482_v2 = vmul.f32 %v4361_v1, %v4215_v58  ;;  %v1377_v63 = vadd.f32 %v1374_v25, %v1352_v49  ;;  %v1385_v10 = vadd.f32 %v1382_v44, %v1360_v31  ;;  %v4388_v54 = vstv %s4333_s16  ;;  %v5689_v44 = vld [vmem:[#allocation51_spill] sm:$0xff]  ;;  %v5690_v31 = vld [vmem:[#allocation52_spill] sm:$0xff]  ;;  %s4623_s16 = sld [smem:[#allocation6 + $0x1d]] }
 0x214   :  { %v4391_v11 = vstv %s4335_s17  ;;  %v1413_v21 = vadd.f32 %v1410_v3, %v1391_v26  ;;  %v1421_v46 = vadd.f32 %v1418_v29, %v1399_v41  ;;  %v1499_v32 = vmul.f32 %v4388_v54, %v1493_v7  ;;  %s4625_s17 = sld [smem:[#allocation6 + $0x41]] }
 0x215   :  { %v4351_v33 = vpop.permute.xlu1 %1553  ;;  %v4363_v36 = vpop.permute.xlu0 %1532  ;;  %v1507_v6 = vmul.f32 %v4391_v11, %v1493_v7  ;;  %v4397_v12 = vmul.f32 %v5688_v38, %v4344_v27  ;;  %v4401_v58 = vmul.f32 %v5688_v38, %v4347_v42  ;;  %v1412_v62 = vmul.f32 %v4278_v43, %v4157_v9  ;;  %v5694_v38 = vld [vmem:[#allocation63_spill] sm:$0xff] }
 0x216   :  { %v1420_v8 = vmul.f32 %v4281_v23, %v4157_v9  ;;  %v1438_v7 = vadd.f32 %v1435_v17, %v1413_v21  ;;  %v1446_v56 = vadd.f32 %v1443_v50, %v1421_v46  ;;  %v1477_v51 = vadd.f32 %v1474_v18, %v1455_v0 }
 0x217   :  { %v1485_v59 = vadd.f32 %v1482_v2, %v1463_v35  ;;  %v1393_v49 = vadd.f32 %v5689_v44, %v1377_v63  ;;  %v1401_v3 = vadd.f32 %v5690_v31, %v1385_v10  ;;  %v1437_v43 = vmul.f32 %v4316_v45, %v4181_v5  ;;  %v5692_v35 = vld [vmem:[#allocation53_spill] sm:$0xff]  ;;  %v5693_v2 = vld [vmem:[#allocation54_spill] sm:$0xff] }
 0x218   :  { %v1445_v9 = vmul.f32 %v4319_v15, %v4181_v5  ;;  %v1502_v29 = vadd.f32 %v1499_v32, %v1477_v51  ;;  %v4422_v41 = vstv %s4369_s21  ;;  %v4425_v17 = vstv %s4371_s2  ;;  %v5691_v5 = vld [vmem:[#allocation37_spill] sm:$0xff]  ;;  %s4629_s21 = sld [smem:[#allocation6 + $0x1e]]  ;;  %s4631_s2 = sld [smem:[#allocation6 + $0x42]] }
 0x219   :  { %v4385_v22 = vpop.permute.xlu1 %1557  ;;  %v1556_v48 = vpop.permute.xlu0 %1555  ;;  %v1510_v26 = vadd.f32 %v1507_v6, %v1485_v59  ;;  %v1415_v50 = vadd.f32 %v1412_v62, %v1393_v49  ;;  %v1423_v30 = vadd.f32 %v1420_v8, %v1401_v3  ;;  %v1473_v0 = vmul.f32 %v4358_v40, %v4227_v52  ;;  %v5695_v8 = vld [vmem:[#allocation64_spill] sm:$0xff] }
 0x21a   :  { %v1481_v4 = vmul.f32 %v4361_v1, %v4227_v52  ;;  %v4437_v45 = vmul.f32 %v5691_v5, %v4344_v27  ;;  %v4441_v15 = vmul.f32 %v5691_v5, %v4347_v42  ;;  %v1454_v18 = vadd.f32 %v5692_v35, %v1438_v7 }
 0x21b   :  { %v1462_v63 = vadd.f32 %v5693_v2, %v1446_v56  ;;  %v1440_v52 = vadd.f32 %v1437_v43, %v1415_v50  ;;  %v1448_v21 = vadd.f32 %v1445_v9, %v1423_v30  ;;  %v1498_v46 = vmul.f32 %v4388_v54, %v4257_v53  ;;  %v5696_v30 = vld [vmem:[#allocation55_spill] sm:$0xff] }
 0x21c   :  { %v1506_v32 = vmul.f32 %v4391_v11, %v4257_v53  ;;  %v1518_v62 = vadd.f32 %v5694_v38, %v1502_v29  ;;  %v1526_v51 = vadd.f32 %v5695_v8, %v1510_v26  ;;  %v1537_v7 = vmul.f32 %v4422_v41, %v4325_v39  ;;  %v5698_v38 = vld [vmem:[#allocation59_spill] sm:$0xff] }
 0x21d   :  { %v4411_v25 = vpop.permute.xlu1 %1593  ;;  %v4419_v23 = vpop.permute.xlu0 %1591  ;;  %v1545_v56 = vmul.f32 %v4425_v17, %v4325_v39  ;;  %v1476_v59 = vadd.f32 %v1473_v0, %v1454_v18  ;;  %v1484_v44 = vadd.f32 %v1481_v4, %v1462_v63  ;;  %v1560_v49 = vstv %s4407_s3  ;;  %v5697_v0 = vld [vmem:[#allocation56_spill] sm:$0xff]  ;;  %s2559_s3 = sld [smem:[#allocation8 + $0xd]] }
 0x21e   :  { %v1568_v31 = vstv %s4409_s19  ;;  %v1475_v3 = vmul.f32 %v4358_v40, %v4259_v20  ;;  %v1483_v53 = vmul.f32 %v4361_v1, %v4259_v20  ;;  %v1562_v43 = vmul.f32 %v1560_v49, %v1556_v48  ;;  %s2560_s19 = sld [smem:[#allocation8 + $0x1f]] }
 0x21f   :  { %v1570_v9 = vmul.f32 %v1568_v31, %v1556_v48  ;;  %v1501_v26 = vadd.f32 %v1498_v46, %v1476_v59  ;;  %v1509_v50 = vadd.f32 %v1506_v32, %v1484_v44  ;;  %v1456_v39 = vadd.f32 %v5696_v30, %v1440_v52 }
 0x220   :  { %v1464_v4 = vadd.f32 %v5697_v0, %v1448_v21  ;;  %v1500_v20 = vmul.f32 %v4388_v54, %v4293_v19  ;;  %v1508_v1 = vmul.f32 %v4391_v11, %v4293_v19  ;;  %v1540_v48 = vadd.f32 %v1537_v7, %v1518_v62  ;;  %v5699_v11 = vld [vmem:[#allocation60_spill] sm:$0xff] }
 0x221   :  { %v4445_v10 = vpop.permute.xlu1 %1616  ;;  %v4451_v6 = vpop.permute.xlu0 %1595  ;;  %v1548_v5 = vadd.f32 %v1545_v56, %v1526_v51  ;;  %v1536_v35 = vmul.f32 %v4422_v41, %v4337_v34  ;;  %v1544_v18 = vmul.f32 %v4425_v17, %v4337_v34  ;;  %v4482_v2 = vstv %s4431_s20  ;;  %v5700_v34 = vld [vmem:[#allocation39_spill] sm:$0xff]  ;;  %s4646_s20 = sld [smem:[#allocation6 + $0x22]] }
 0x222   :  { %v4485_v63 = vstv %s4433_s22  ;;  %v1478_v52 = vadd.f32 %v1475_v3, %v1456_v39  ;;  %v1486_v21 = vadd.f32 %v1483_v53, %v1464_v4  ;;  %v1565_v46 = vadd.f32 %v1562_v43, %v1540_v48  ;;  %v5702_v4 = vld [vmem:[#allocation62_spill] sm:$0xff]  ;;  %s4648_s22 = sld [smem:[#allocation6 + $0x46]] }
 0x223   :  { %v1573_v32 = vadd.f32 %v1570_v9, %v1548_v5  ;;  %v1517_v19 = vadd.f32 %v5698_v38, %v1501_v26  ;;  %v1525_v62 = vadd.f32 %v5699_v11, %v1509_v50  ;;  %v1561_v8 = vmul.f32 %v1560_v49, %v4351_v33 }
 0x224   :  { %v1569_v51 = vmul.f32 %v1568_v31, %v4351_v33  ;;  %v4497_v56 = vmul.f32 %v5700_v34, %v4344_v27  ;;  %v4501_v59 = vmul.f32 %v5700_v34, %v4347_v42  ;;  %v1503_v44 = vadd.f32 %v1500_v20, %v1478_v52 }
 0x225   :  { %v4465_v29 = vpop.permute.xlu1 %1620  ;;  %v1619_v40 = vpop.permute.xlu0 %1618  ;;  %v1511_v3 = vadd.f32 %v1508_v1, %v1486_v21  ;;  %v1539_v33 = vadd.f32 %v1536_v35, %v1517_v19  ;;  %v1547_v53 = vadd.f32 %v1544_v18, %v1525_v62  ;;  %v1538_v27 = vmul.f32 %v4422_v41, %v4363_v36  ;;  %v5704_v19 = vld [vmem:[#allocation66_spill] sm:$0xff] }
 0x226   :  { %v1546_v42 = vmul.f32 %v4425_v17, %v4363_v36  ;;  %v1581_v43 = vadd.f32 %v4164_v57, %v1565_v46  ;;  %v1589_v9 = vadd.f32 %v4167_v47, %v1573_v32  ;;  %v1600_v26 = vmul.f32 %v4482_v2, %v4411_v25  ;;  %v5701_v57 = vld [vmem:[#allocation61_spill] sm:$0xff] }
 0x227   :  { %v1608_v50 = vmul.f32 %v4485_v63, %v4411_v25  ;;  %v1564_v41 = vadd.f32 %v1561_v8, %v1539_v33  ;;  %v1572_v39 = vadd.f32 %v1569_v51, %v1547_v53  ;;  %v1623_v0 = vstv %s4469_s24  ;;  %s4652_s24 = sld [smem:[#allocation6 + $0x20]] }
 0x228   :  { %v1631_v36 = vstv %s4471_s4  ;;  %v1519_v47 = vadd.f32 %v5701_v57, %v1503_v44  ;;  %v1527_v20 = vadd.f32 %v5702_v4, %v1511_v3  ;;  %v1625_v1 = vmul.f32 %v1623_v0, %v1619_v40  ;;  %v5705_v4 = vld [vmem:[#allocation73_spill] sm:$0xff]  ;;  %s4654_s4 = sld [smem:[#allocation6 + $0x44]] }
 0x229   :  { %v4487_v54 = vpop.permute.xlu1 %1656  ;;  %v4493_v7 = vpop.permute.xlu0 %1654  ;;  %v1633_v48 = vmul.f32 %v1631_v36, %v1619_v40  ;;  %v1563_v25 = vmul.f32 %v1560_v49, %v4385_v22  ;;  %v1571_v5 = vmul.f32 %v1568_v31, %v4385_v22  ;;  %v1599_v35 = vmul.f32 %v4482_v2, %v4419_v23  ;;  %v5703_v40 = vld [vmem:[#allocation65_spill] sm:$0xff] }
 0x22a   :  { %v1607_v18 = vmul.f32 %v4485_v63, %v4419_v23  ;;  %v1541_v52 = vadd.f32 %v1538_v27, %v1519_v47  ;;  %v1549_v21 = vadd.f32 %v1546_v42, %v1527_v20  ;;  %v1603_v46 = vadd.f32 %v1600_v26, %v1581_v43 }
 0x22b   :  { %v1611_v32 = vadd.f32 %v1608_v50, %v1589_v9  ;;  %v1580_v49 = vadd.f32 %v5703_v40, %v1564_v41  ;;  %v1588_v22 = vadd.f32 %v5704_v19, %v1572_v39  ;;  %v1624_v31 = vmul.f32 %v1623_v0, %v4445_v10  ;;  %v5708_v40 = vld [vmem:[#allocation69_spill] sm:$0xff]  ;;  %v5709_v19 = vld [vmem:[#allocation70_spill] sm:$0xff] }
 0x22c   :  { %v1632_v11 = vmul.f32 %v1631_v36, %v4445_v10  ;;  %v1628_v23 = vadd.f32 %v1625_v1, %v1603_v46  ;;  %v1661_v51 = vstv %s4503_s26  ;;  %v1669_v34 = vstv %s4505_s27  ;;  %s4660_s26 = sld [smem:[#allocation6 + $0x21]]  ;;  %s4662_s27 = sld [smem:[#allocation6 + $0x45]] }
 0x22d   :  { %v4525_v30 = vpop.permute.xlu1 %1679  ;;  %v4529_v17 = vpop.permute.xlu0 %1658  ;;  %v1636_v8 = vadd.f32 %v1633_v48, %v1611_v32  ;;  %v1566_v44 = vadd.f32 %v1563_v25, %v1541_v52  ;;  %v1574_v3 = vadd.f32 %v1571_v5, %v1549_v21  ;;  %v1602_v33 = vadd.f32 %v1599_v35, %v1580_v49 }
 0x22e   :  { %v1610_v53 = vadd.f32 %v1607_v18, %v1588_v22  ;;  %v4548_v27 = vstv %s4507_s29  ;;  %v4551_v42 = vstv %s4509_s30  ;;  %v1686_v43 = vstv %s4521_s8  ;;  %s4676_s29 = sld [smem:[#allocation6 + $0x23]]  ;;  %s4678_s30 = sld [smem:[#allocation6 + $0x47]] }
 0x22f   :  { %v1694_v9 = vstv %s4523_s9  ;;  %v1627_v50 = vadd.f32 %v1624_v31, %v1602_v33  ;;  %v1601_v10 = vmul.f32 %v4482_v2, %v4451_v6  ;;  %v1609_v39 = vmul.f32 %v4485_v63, %v4451_v6  ;;  %v5706_v2 = vld [vmem:[#allocation67_spill] sm:$0xff]  ;;  %v5707_v6 = vld [vmem:[#allocation68_spill] sm:$0xff]  ;;  %s2532_s8 = sld [smem:[#allocation4 + $0x6]]  ;;  %s2533_s9 = sld [smem:[#allocation4 + $0x7]] }
 0x230   :  { %v1635_v41 = vadd.f32 %v1632_v11, %v1610_v53  ;;  %v1644_v47 = vadd.f32 %v4230_v60, %v1628_v23  ;;  %v1652_v20 = vadd.f32 %v5705_v4, %v1636_v8  ;;  %v1663_v1 = vmul.f32 %v1661_v51, %v4487_v54 }
 0x231   :  { %v4539_v38 = vpop.permute.xlu1 %1683  ;;  %v1682_v62 = vpop.permute.xlu0 %1681  ;;  %v1671_v48 = vmul.f32 %v1669_v34, %v4487_v54  ;;  %v1582_v25 = vadd.f32 %v5706_v2, %v1566_v44  ;;  %v1590_v63 = vadd.f32 %v5707_v6, %v1574_v3  ;;  %v1626_v5 = vmul.f32 %v1623_v0, %v4465_v29 }
 0x232   :  { %v1634_v35 = vmul.f32 %v1631_v36, %v4465_v29  ;;  %v1662_v60 = vmul.f32 %v1661_v51, %v4493_v7  ;;  %v1670_v18 = vmul.f32 %v1669_v34, %v4493_v7  ;;  %v1688_v52 = vmul.f32 %v1686_v43, %v1682_v62  ;;  %v5710_v7 = vld [vmem:[#allocation43_spill] sm:$0xff] }
 0x233   :  { %v1696_v21 = vmul.f32 %v1694_v9, %v1682_v62  ;;  %v1604_v54 = vadd.f32 %v1601_v10, %v1582_v25  ;;  %v1612_v32 = vadd.f32 %v1609_v39, %v1590_v63  ;;  %v1643_v49 = vadd.f32 %v5708_v40, %v1627_v50  ;;  %v5711_v25 = vld [vmem:[#allocation71_spill] sm:$0xff]  ;;  %v5712_v63 = vld [vmem:[#allocation72_spill] sm:$0xff] }
 0x234   :  { %v1651_v22 = vadd.f32 %v5709_v19, %v1635_v41  ;;  %v1666_v11 = vadd.f32 %v1663_v1, %v1644_v47  ;;  %v1674_v0 = vadd.f32 %v1671_v48, %v1652_v20  ;;  %v1687_v29 = vmul.f32 %v1686_v43, %v4525_v30  ;;  %v5713_v19 = vld [vmem:[#allocation74_spill] sm:$0xff] }
 0x235   :  { %v1720_v26 = vpop.permute.xlu1 %1719  ;;  %v1718_v57 = vpop.permute.xlu0 %1717  ;;  %v1695_v36 = vmul.f32 %v1694_v9, %v4525_v30  ;;  %v4583_v23 = vmul.f32 %v5710_v7, %v4548_v27  ;;  %v4587_v62 = vmul.f32 %v5710_v7, %v4551_v42  ;;  %v1629_v8 = vadd.f32 %v1626_v5, %v1604_v54 }
 0x236   :  { %v1637_v44 = vadd.f32 %v1634_v35, %v1612_v32  ;;  %v1665_v3 = vadd.f32 %v1662_v60, %v1643_v49  ;;  %v1673_v33 = vadd.f32 %v1670_v18, %v1651_v22  ;;  %v1691_v53 = vadd.f32 %v1688_v52, %v1666_v11  ;;  %v5714_v22 = vld [vmem:[#allocation75_spill] sm:$0xff] }
 0x237   :  { %v1699_v50 = vadd.f32 %v1696_v21, %v1674_v0  ;;  %v1664_v10 = vmul.f32 %v1661_v51, %v4529_v17  ;;  %v1672_v30 = vmul.f32 %v1669_v34, %v4529_v17  ;;  %v1724_v39 = vstv %s4559_s0  ;;  %s2537_s0 = sld [smem:[#allocation8 + $0x2]] }
 0x238   :  { %v1732_v47 = vstv %s4561_s1  ;;  %v1690_v20 = vadd.f32 %v1687_v29, %v1665_v3  ;;  %v1698_v1 = vadd.f32 %v1695_v36, %v1673_v33  ;;  %v1749_v48 = vstv %s4567_s10  ;;  %v5715_v29 = vld [vmem:[#allocation46_spill] sm:$0xff]  ;;  %s2538_s1 = sld [smem:[#allocation8 + $0x14]]  ;;  %s4854_s10 = sld [smem:[#allocation8 + $0x3]] }
 0x239   :  { %v1743_v46 = vpop.permute.xlu1 %1742  ;;  %v1722_v31 = vpop.permute.xlu0 %1721  ;;  %v1757_v2 = vstv %s4569_s11  ;;  %v1645_v6 = vadd.f32 %v5711_v25, %v1629_v8  ;;  %v1653_v5 = vadd.f32 %v5712_v63, %v1637_v44  ;;  %v1689_v35 = vmul.f32 %v1686_v43, %v4539_v38  ;;  %s4856_s11 = sld [smem:[#allocation8 + $0x15]] }
 0x23a   :  { %v1697_v51 = vmul.f32 %v1694_v9, %v4539_v38  ;;  %v1707_v17 = vadd.f32 %v4262_v24, %v1691_v53  ;;  %v1715_v34 = vadd.f32 %v4265_v16, %v1699_v50  ;;  %v1726_v60 = vmul.f32 %v1724_v39, %v1720_v26 }
 0x23b   :  { %v1734_v18 = vmul.f32 %v1732_v47, %v1720_v26  ;;  %v1667_v21 = vadd.f32 %v1664_v10, %v1645_v6  ;;  %v1675_v54 = vadd.f32 %v1672_v30, %v1653_v5  ;;  %v1725_v32 = vmul.f32 %v1724_v39, %v1718_v57  ;;  %v5716_v6 = vld [vmem:[#allocation76_spill] sm:$0xff]  ;;  %v5717_v5 = vld [vmem:[#allocation77_spill] sm:$0xff] }
 0x23c   :  { %v1733_v40 = vmul.f32 %v1732_v47, %v1718_v57  ;;  %v1706_v43 = vadd.f32 %v5713_v19, %v1690_v20  ;;  %v1714_v38 = vadd.f32 %v5714_v22, %v1698_v1  ;;  %v1750_v26 = vmul.f32 %v1749_v48, %v1743_v46 }
 0x23d   :  { %v1747_v41 = vpop.permute.xlu1 %1746  ;;  %v1745_v4 = vpop.permute.xlu0 %1744  ;;  %v1692_v11 = vadd.f32 %v1689_v35, %v1667_v21  ;;  %v1700_v16 = vadd.f32 %v1697_v51, %v1675_v54  ;;  %v1758_v0 = vmul.f32 %v1757_v2, %v1743_v46  ;;  %v4613_v36 = vmul.f32 %v5715_v29, %v4548_v27 }
 0x23e   :  { %v1751_v9 = vmul.f32 %v1749_v48, %v1745_v4  ;;  %v1759_v24 = vmul.f32 %v1757_v2, %v1745_v4  ;;  %v4617_v57 = vmul.f32 %v5715_v29, %v4551_v42  ;;  %v1729_v7 = vadd.f32 %v1726_v60, %v1707_v17 }
 0x23f   :  { %v1737_v8 = vadd.f32 %v1734_v18, %v1715_v34  ;;  %v1728_v3 = vadd.f32 %v1725_v32, %v1706_v43  ;;  %v1736_v33 = vadd.f32 %v1733_v40, %v1714_v38  ;;  %v1727_v53 = vmul.f32 %v1724_v39, %v1722_v31 }
 0x240   :  { %v1735_v50 = vmul.f32 %v1732_v47, %v1722_v31  ;;  %v1754_v30 = vadd.f32 %v1751_v9, %v1729_v7  ;;  %v1787_v4 = vstv %s4595_s12  ;;  %v1795_v20 = vstv %s4597_s13  ;;  %s4994_s12 = sld [smem:[#allocation8 + $0x1a]]  ;;  %s5014_s13 = sld [smem:[#allocation8 + $0x9]] }
 0x241   :  { %v1783_v52 = vpop.permute.xlu1 %1782  ;;  %v1781_v49 = vpop.permute.xlu0 %1780  ;;  %v1762_v46 = vadd.f32 %v1759_v24, %v1737_v8  ;;  %v1753_v1 = vadd.f32 %v1750_v26, %v1728_v3  ;;  %v1761_v25 = vadd.f32 %v1758_v0, %v1736_v33  ;;  %v1708_v63 = vadd.f32 %v5716_v6, %v1692_v11 }
 0x242   :  { %v1716_v35 = vadd.f32 %v5717_v5, %v1700_v16  ;;  %v1752_v51 = vmul.f32 %v1749_v48, %v1747_v41  ;;  %v1760_v17 = vmul.f32 %v1757_v2, %v1747_v41  ;;  %v1812_v39 = vstv %s4605_s14  ;;  %s5016_s14 = sld [smem:[#allocation8 + $0x1b]] }
 0x243   :  { %v1820_v34 = vstv %s4607_s15  ;;  %v1730_v47 = vadd.f32 %v1727_v53, %v1708_v63  ;;  %v1788_v18 = vmul.f32 %v1787_v4, %v1781_v49  ;;  %v1796_v21 = vmul.f32 %v1795_v20, %v1781_v49  ;;  %s5020_s15 = sld [smem:[#allocation7]] }
 0x244   :  { %v1738_v60 = vadd.f32 %v1735_v50, %v1716_v35  ;;  %v1770_v32 = vadd.f32 %v4328_v13, %v1754_v30  ;;  %v1778_v40 = vadd.f32 %v4331_v28, %v1762_v46  ;;  %v1789_v19 = vmul.f32 %v1787_v4, %v1783_v52  ;;  %v2732_v13 = vld [vmem:[%s5544_s6 + $0x6a] sm:$0xff] }
 0x245   :  { %v1806_v44 = vpop.permute.xlu1 %1805  ;;  %v1785_v10 = vpop.permute.xlu0 %1784  ;;  %v1797_v43 = vmul.f32 %v1795_v20, %v1783_v52  ;;  %v1769_v41 = vadd.f32 %v4268_v61, %v1753_v1  ;;  %v1777_v48 = vadd.f32 %v4271_v14, %v1761_v25  ;;  %v1755_v38 = vadd.f32 %v1752_v51, %v1730_v47 }
 0x246   :  { %v1813_v2 = vmul.f32 %v1812_v39, %v1806_v44  ;;  %v1821_v22 = vmul.f32 %v1820_v34, %v1806_v44  ;;  %v1763_v9 = vadd.f32 %v1760_v17, %v1738_v60  ;;  %v4641_v28 = vmul.f32 %v2732_v13, %v4548_v27 }
 0x247   :  { %v4644_v61 = vmul.f32 %v2732_v13, %v4551_v42  ;;  %v1791_v14 = vadd.f32 %v1788_v18, %v1769_v41  ;;  %v1799_v52 = vadd.f32 %v1796_v21, %v1777_v48  ;;  %v1792_v26 = vadd.f32 %v1789_v19, %v1770_v32 }
 0x248   :  { %v1800_v0 = vadd.f32 %v1797_v43, %v1778_v40  ;;  %v1790_v29 = vmul.f32 %v1787_v4, %v1785_v10  ;;  %v1798_v7 = vmul.f32 %v1795_v20, %v1785_v10  ;;  %v1850_v27 = vstv %s4623_s16  ;;  %s5022_s16 = sld [smem:[#allocation7 + $0x12]] }
 0x249   :  { %v1810_v31 = vpop.permute.xlu1 %1809  ;;  %v1808_v54 = vpop.permute.xlu0 %1807  ;;  %v1816_v8 = vadd.f32 %v1813_v2, %v1791_v14  ;;  %v1824_v44 = vadd.f32 %v1821_v22, %v1799_v52  ;;  %v1858_v3 = vstv %s4625_s17  ;;  %v1771_v42 = vadd.f32 %v4284_v37, %v1755_v38  ;;  %s2541_s17 = sld [smem:[#allocation8 + $0x4]] }
 0x24a   :  { %v1814_v49 = vmul.f32 %v1812_v39, %v1808_v54  ;;  %v1822_v24 = vmul.f32 %v1820_v34, %v1808_v54  ;;  %v1779_v33 = vadd.f32 %v4287_v55, %v1763_v9  ;;  %v1815_v46 = vmul.f32 %v1812_v39, %v1810_v31 }
 0x24b   :  { %v1823_v1 = vmul.f32 %v1820_v34, %v1810_v31  ;;  %v1875_v4 = vstv %s4629_s21  ;;  %v1883_v25 = vstv %s4631_s2  ;;  %v1793_v20 = vadd.f32 %v1790_v29, %v1771_v42  ;;  %s2536_s21 = sld [smem:[#allocation8 + $0x13]]  ;;  %s2542_s2 = sld [smem:[#allocation8 + $0x16]] }
 0x24c   :  { %v1817_v53 = vadd.f32 %v1814_v49, %v1792_v26  ;;  %v1825_v50 = vadd.f32 %v1822_v24, %v1800_v0  ;;  %v1801_v6 = vadd.f32 %v1798_v7, %v1779_v33  ;;  %v1832_v35 = vadd.f32 %v4397_v12, %v1816_v8 }
 0x24d   :  { %v1846_v11 = vpop.permute.xlu1 %1845  ;;  %v1844_v16 = vpop.permute.xlu0 %1843  ;;  %v1840_v51 = vadd.f32 %v4401_v58, %v1824_v44  ;;  %v4669_v60 = vstv %s4646_s20  ;;  %v4672_v18 = vstv %s4648_s22  ;;  %v1818_v21 = vadd.f32 %v1815_v46, %v1793_v20  ;;  %s2553_s20 = sld [smem:[#allocation8 + $0xa]]  ;;  %s4838_s22 = sld [smem:[#allocation8 + $0x1c]] }
 0x24e   :  { %v1851_v63 = vmul.f32 %v1850_v27, %v1844_v16  ;;  %v1859_v5 = vmul.f32 %v1858_v3, %v1844_v16  ;;  %v1852_v37 = vmul.f32 %v1850_v27, %v1846_v11  ;;  %v1860_v55 = vmul.f32 %v1858_v3, %v1846_v11 }
 0x24f   :  { %v1833_v17 = vadd.f32 %v4497_v56, %v1817_v53  ;;  %v1841_v39 = vadd.f32 %v4501_v59, %v1825_v50  ;;  %v1826_v54 = vadd.f32 %v1823_v1, %v1801_v6  ;;  %v1913_v41 = vstv %s4652_s24  ;;  %s2547_s24 = sld [smem:[#allocation8 + $0x7]] }
 0x250   :  { %v1854_v40 = vadd.f32 %v1851_v63, %v1832_v35  ;;  %v1862_v12 = vadd.f32 %v1859_v5, %v1840_v51  ;;  %v1921_v59 = vstv %s4654_s4  ;;  %v1834_v49 = vadd.f32 %v4437_v45, %v1818_v21  ;;  %s2548_s4 = sld [smem:[#allocation8 + $0x19]] }
 0x251   :  { %v1869_v30 = vpop.permute.xlu1 %1868  ;;  %v1848_v10 = vpop.permute.xlu0 %1847  ;;  %v1855_v48 = vadd.f32 %v1852_v37, %v1833_v17  ;;  %v1863_v2 = vadd.f32 %v1860_v55, %v1841_v39  ;;  %v1842_v24 = vadd.f32 %v4441_v15, %v1826_v54  ;;  %v1938_v26 = vstv %s4660_s26  ;;  %s4842_s26 = sld [smem:[#allocation8 + $0x10]] }
 0x252   :  { %v1876_v34 = vmul.f32 %v1875_v4, %v1869_v30  ;;  %v1884_v31 = vmul.f32 %v1883_v25, %v1869_v30  ;;  %v1853_v43 = vmul.f32 %v1850_v27, %v1848_v10  ;;  %v1861_v56 = vmul.f32 %v1858_v3, %v1848_v10  ;;  %v2733_v27 = vld [vmem:[%s5544_s6 + $0x64] sm:$0xff] }
 0x253   :  { %v1946_v0 = vstv %s4662_s27  ;;  %v1955_v3 = vmul.f32 %v2733_v27, %v4669_v60  ;;  %v1963_v45 = vmul.f32 %v2733_v27, %v4672_v18  ;;  %v1976_v51 = vstv %s4676_s29  ;;  %s4844_s27 = sld [smem:[#allocation8 + $0x22]]  ;;  %s848_s29 = sld [smem:[#allocation8]] }
 0x254   :  { %v1879_v22 = vadd.f32 %v1876_v34, %v1854_v40  ;;  %v1887_v38 = vadd.f32 %v1884_v31, %v1862_v12  ;;  %v1856_v29 = vadd.f32 %v1853_v43, %v1834_v49  ;;  %v1864_v7 = vadd.f32 %v1861_v56, %v1842_v24  ;;  %v2735_v24 = vld [vmem:[%s5544_s6 + $0x74] sm:$0xff] }
 0x255   :  { %v1873_v47 = vpop.permute.xlu1 %1872  ;;  %v1871_v32 = vpop.permute.xlu0 %1870  ;;  %v1984_v17 = vstv %s4678_s30  ;;  %s2534_s30 = sld [smem:[#allocation8 + $0x12]] }
 0x256   :  { %v1877_v19 = vmul.f32 %v1875_v4, %v1871_v32  ;;  %v1885_v58 = vmul.f32 %v1883_v25, %v1871_v32  ;;  %v1878_v11 = vmul.f32 %v1875_v4, %v1873_v47  ;;  %v1886_v13 = vmul.f32 %v1883_v25, %v1873_v47 }
 0x257   :  { %v1895_v15 = vadd.f32 %v4583_v23, %v1879_v22  ;;  %v1903_v42 = vadd.f32 %v4587_v62, %v1887_v38  ;;  %v2734_v23 = vld [vmem:[%s5544_s6 + $0x6c] sm:$0xff]  ;;  %s4882_s6 = sld [smem:[#allocation8 + $0x17]] }
 0x258   :  { %v1880_v52 = vadd.f32 %v1877_v19, %v1855_v48  ;;  %v1888_v16 = vadd.f32 %v1885_v58, %v1863_v2  ;;  %v1881_v53 = vadd.f32 %v1878_v11, %v1856_v29  ;;  %v1889_v50 = vadd.f32 %v1886_v13, %v1864_v7 }
 0x259   :  { %v1909_v9 = vpop.permute.xlu1 %1908  ;;  %v1907_v14 = vpop.permute.xlu0 %1906  ;;  %v1956_v62 = vmul.f32 %v2734_v23, %v4669_v60  ;;  %v1964_v6 = vmul.f32 %v2734_v23, %v4672_v18  ;;  %v1957_v11 = vmul.f32 %v2735_v24, %v4669_v60  ;;  %v1965_v13 = vmul.f32 %v2735_v24, %v4672_v18  ;;  %v2736_v60 = vld [vmem:[%s5543_s5 + $0x8] sm:$0xff] }
 0x25a   :  { %v1914_v8 = vmul.f32 %v1913_v41, %v1907_v14  ;;  %v1922_v44 = vmul.f32 %v1921_v59, %v1907_v14  ;;  %v1896_v4 = vadd.f32 %v4641_v28, %v1880_v52  ;;  %v1904_v25 = vadd.f32 %v4644_v61, %v1888_v16 }
 0x25b   :  { %v1915_v10 = vmul.f32 %v1913_v41, %v1909_v9  ;;  %v1923_v20 = vmul.f32 %v1921_v59, %v1909_v9  ;;  %v1897_v61 = vadd.f32 %v4613_v36, %v1881_v53  ;;  %v1905_v34 = vadd.f32 %v4617_v57, %v1889_v50  ;;  %v2737_v50 = vld [vmem:[%s5543_s5] sm:$0xff] }
 0x25c   :  { %v1917_v63 = vadd.f32 %v1914_v8, %v1895_v15  ;;  %v1925_v5 = vadd.f32 %v1922_v44, %v1903_v42  ;;  %v836_v24 = vstv %s2532_s8  ;;  %s5146_s8 = sld [smem:[#allocation7 + $0x7]] }
 0x25d   :  { %v1932_v33 = vpop.permute.xlu1 %1931  ;;  %v1911_v1 = vpop.permute.xlu0 %1910  ;;  %v1918_v47 = vadd.f32 %v1915_v10, %v1896_v4  ;;  %v1926_v21 = vadd.f32 %v1923_v20, %v1904_v25  ;;  %v4723_v4 = vld [vmem:[#allocation2 + $0x2c] sm:$0xff]  ;;  %v4725_v25 = vld [vmem:[#allocation2 + $0x22] sm:$0xff] }
 0x25e   :  { %v1939_v30 = vmul.f32 %v1938_v26, %v1932_v33  ;;  %v1947_v46 = vmul.f32 %v1946_v0, %v1932_v33  ;;  %v1916_v37 = vmul.f32 %v1913_v41, %v1911_v1  ;;  %v1924_v55 = vmul.f32 %v1921_v59, %v1911_v1  ;;  %v4721_v1 = vld [vmem:[#allocation2 + $0x24] sm:$0xff]  ;;  %5719 = vst [vmem:[#allocation58_spill] sm:$0xff] %v4723_v4 }
 0x25f   :  { %5718 = vst [vmem:[#allocation57_spill] sm:$0xff] %v4721_v1 }
 0x260   :  { %v1942_v28 = vadd.f32 %v1939_v30, %v1917_v63  ;;  %v1950_v39 = vadd.f32 %v1947_v46, %v1925_v5  ;;  %v1919_v19 = vadd.f32 %v1916_v37, %v1897_v61  ;;  %v1927_v58 = vadd.f32 %v1924_v55, %v1905_v34  ;;  %v4740_v37 = vld [vmem:[#allocation2 + $0x32] sm:$0xff] }
 0x261   :  { %v1936_v35 = vpop.permute.xlu1 %1935  ;;  %v1934_v31 = vpop.permute.xlu0 %1933 }
 0x262   :  { %v1940_v54 = vmul.f32 %v1938_v26, %v1934_v31  ;;  %v1948_v32 = vmul.f32 %v1946_v0, %v1934_v31  ;;  %v1941_v40 = vmul.f32 %v1938_v26, %v1936_v35  ;;  %v1949_v12 = vmul.f32 %v1946_v0, %v1936_v35  ;;  %v5720_v31 = vld [vmem:[#allocation22_spill] sm:$0xff] }
 0x263   :  { %v1958_v2 = vadd.f32 %v1955_v3, %v1942_v28  ;;  %v1966_v22 = vadd.f32 %v1963_v45, %v1950_v39 }
 0x264   :  { %v1943_v43 = vadd.f32 %v1940_v54, %v1918_v47  ;;  %v1951_v56 = vadd.f32 %v1948_v32, %v1926_v21  ;;  %v1944_v14 = vadd.f32 %v1941_v40, %v1919_v19  ;;  %v1952_v52 = vadd.f32 %v1949_v12, %v1927_v58  ;;  %v4816_v21 = vld [vmem:[#allocation9 + $0x20] sm:$0xff]  ;;  %v5721_v54 = vld [vmem:[#allocation18_spill] sm:$0xff] }
 0x265   :  { %v1972_v41 = vpop.permute.xlu1 %1971  ;;  %v1970_v38 = vpop.permute.xlu0 %1969  ;;  %v873_v19 = vstv %s2536_s21  ;;  %v928_v58 = vstv %s2541_s17  ;;  %s5026_s17 = sld [smem:[#allocation8 + $0x1d]]  ;;  %s5050_s21 = sld [smem:[#allocation4 + $0x4]] }
 0x266   :  { %v1978_v59 = vmul.f32 %v1976_v51, %v1972_v41  ;;  %v1986_v48 = vmul.f32 %v1984_v17, %v1972_v41  ;;  %v1959_v36 = vadd.f32 %v1956_v62, %v1943_v43  ;;  %v1967_v9 = vadd.f32 %v1964_v6, %v1951_v56  ;;  %v2738_v6 = vld [vmem:[%s5543_s5 + $0x10] sm:$0xff]  ;;  %s2535_s5 = sld [smem:[#allocation8 + $0x1]] }
 0x267   :  { %v1977_v57 = vmul.f32 %v1976_v51, %v1970_v38  ;;  %v1985_v49 = vmul.f32 %v1984_v17, %v1970_v38  ;;  %v1960_v45 = vadd.f32 %v1957_v11, %v1944_v14  ;;  %v1968_v15 = vadd.f32 %v1965_v13, %v1952_v52  ;;  %v5726_v52 = vld [vmem:[#allocation13_spill] sm:$0xff] }
 0x268   :  { %v1981_v16 = vadd.f32 %v1978_v59, %v1959_v36  ;;  %v1989_v26 = vadd.f32 %v1986_v48, %v1967_v9  ;;  %v936_v43 = vstv %s2542_s2  ;;  %v4860_v56 = vstv %s2553_s20  ;;  %s5052_s2 = sld [smem:[#allocation4 + $0x5]]  ;;  %s5068_s20 = sld [smem:[#allocation7 + $0x4]] }
 0x269   :  { %v1980_v0 = vadd.f32 %v1977_v57, %v1958_v2  ;;  %v1988_v29 = vadd.f32 %v1985_v49, %v1966_v22  ;;  %v1974_v7 = vpop.permute.xlu0 %1973  ;;  %v4864_v59 = vstv %s2559_s3  ;;  %v4866_v48 = vstv %s2560_s19  ;;  %s5060_s3 = sld [smem:[#allocation7 + $0x1]]  ;;  %s5062_s19 = sld [smem:[#allocation7 + $0x13]] }
 0x26a   :  { %v1992_v8 = vmax.f32 %v1981_v16, 0.0  ;;  %v2007_v44 = vmax.f32 %v1989_v26, 0.0  ;;  %v1979_v42 = vmul.f32 %v1976_v51, %v1974_v7  ;;  %v1987_v33 = vmul.f32 %v1984_v17, %v1974_v7 }
 0x26b   :  { %v1991_v27 = vmax.f32 %v1980_v0, 0.0  ;;  %v2006_v3 = vmax.f32 %v1988_v29, 0.0  ;;  %v991_v2 = vstv %s2547_s24  ;;  %v999_v22 = vstv %s2548_s4  ;;  %v5727_v0 = vld [vmem:[#allocation15_spill] sm:$0xff]  ;;  %s5080_s24 = sld [smem:[#allocation7 + $0x2]]  ;;  %s5082_s4 = sld [smem:[#allocation7 + $0x14]] }
 0x26c   :  { %v4710_v18 = vmul.f32 %v2736_v60, %v1992_v8  ;;  %v4712_v53 = vmul.f32 %v2736_v60, %v2007_v44  ;;  %v1982_v10 = vadd.f32 %v1979_v42, %v1960_v45  ;;  %v1990_v20 = vadd.f32 %v1987_v33, %v1968_v15  ;;  %v5728_v8 = vld [vmem:[#allocation16_spill] sm:$0xff]  ;;  %v2740_v15 = vld [vmem:[#allocation9] sm:$0xff]  ;;  %v2741_v60 = vld [vmem:[#allocation9 + $0x8] sm:$0xff] }
 0x26d   :  { %v4717_v30 = vmul.f32 %v2737_v50, %v1991_v27  ;;  %v4719_v46 = vmul.f32 %v2737_v50, %v2006_v3  ;;  %v865_v12 = vstv %s2535_s5  ;;  %v1062_v38 = vstv %s4838_s22  ;;  %s5024_s5 = sld [smem:[#allocation8 + $0xb]]  ;;  %s5070_s22 = sld [smem:[#allocation7 + $0x16]] }
 0x26e   :  { %1999 = vst [vmem:[#allocation9 + $0x38] sm:$0xff] %v4710_v18  ;;  %2003 = vst [vmem:[#allocation2 + $0xa] sm:$0xff] %v4710_v18  ;;  %v1993_v23 = vmax.f32 %v1982_v10, 0.0  ;;  %v2008_v62 = vmax.f32 %v1990_v20, 0.0  ;;  %v849_v36 = vstv %s848_s29  ;;  %v857_v9 = vstv %s2534_s30  ;;  %s5136_s29 = sld [smem:[#allocation7 + $0x5]]  ;;  %s5138_s30 = sld [smem:[#allocation7 + $0x17]] }
 0x26f   :  { %2014 = vst [vmem:[#allocation9 + $0x50] sm:$0xff] %v4712_v53  ;;  %2018 = vst [vmem:[#allocation2 + $0x2a] sm:$0xff] %v4712_v53  ;;  %v4871_v57 = vstv %s4842_s26  ;;  %v4874_v49 = vstv %s4844_s27  ;;  %v838_v11 = vstv %s2533_s9  ;;  %v4876_v13 = vstv %s2537_s0  ;;  %s5098_s26 = sld [smem:[#allocation7 + $0x3]]  ;;  %s5100_s27 = sld [smem:[#allocation7 + $0x15]] }
 0x270   :  { %1998 = vst [vmem:[#allocation9 + $0x30] sm:$0xff] %v4717_v30  ;;  %2002 = vst [vmem:[#allocation2 + $0x2] sm:$0xff] %v4717_v30  ;;  %v4738_v63 = vmul.f32 %v2738_v6, %v1993_v23  ;;  %v2011_v5 = vmul.f32 %v2738_v6, %v2008_v62  ;;  %v4878_v14 = vstv %s2538_s1  ;;  %v866_v16 = vmul.f32 %v865_v12, %v5726_v52  ;;  %v2742_v23 = vld [vmem:[#allocation9 + $0x10] sm:$0xff]  ;;  %s5148_s9 = sld [smem:[#allocation7 + $0x19]]  ;;  %s5150_s0 = sld [smem:[#allocation7 + $0x6]] }
 0x271   :  { %2013 = vst [vmem:[#allocation9 + $0x48] sm:$0xff] %v4719_v46  ;;  %2017 = vst [vmem:[#allocation2 + $0x22] sm:$0xff] %v4719_v46  ;;  %v874_v26 = vmul.f32 %v873_v19, %v5726_v52  ;;  %v867_v29 = vmul.f32 %v865_v12, %v5727_v0  ;;  %v875_v7 = vmul.f32 %v873_v19, %v5727_v0  ;;  %v4897_v3 = vstv %s4854_s10  ;;  %v5731_v52 = vld [vmem:[#allocation19_spill] sm:$0xff]  ;;  %s5152_s1 = sld [smem:[#allocation7 + $0x18]] }
 0x272   :  { %2000 = vst [vmem:[#allocation9 + $0x40] sm:$0xff] %v4738_v63  ;;  %2004 = vst [vmem:[#allocation2 + $0x12] sm:$0xff] %v4738_v63  ;;  %v4891_v44 = vmul.f32 %v865_v12, %v5728_v8  ;;  %v4894_v27 = vmul.f32 %v873_v19, %v5728_v8  ;;  %v4900_v45 = vstv %s4856_s11  ;;  %v4904_v42 = vmul.f32 %v2740_v15, %v928_v58  ;;  %s5170_s10 = sld [smem:[#allocation7 + $0x8]]  ;;  %s5172_s11 = sld [smem:[#allocation7 + $0x1a]] }
 0x273   :  { %2015 = vst [vmem:[#allocation9 + $0x58] sm:$0xff] %v2011_v5  ;;  %2019 = vst [vmem:[#allocation2 + $0x32] sm:$0xff] %v2011_v5  ;;  %v4906_v33 = vmul.f32 %v2740_v15, %v936_v43  ;;  %v4910_v50 = vmul.f32 %v2741_v60, %v936_v43  ;;  %v4914_v62 = vmul.f32 %v2742_v23, %v928_v58  ;;  %v5732_v15 = vld [vmem:[#allocation20_spill] sm:$0xff] }
 0x274   :  { %5724 = vst [vmem:[#allocation52_spill] sm:$0xff] %v4871_v57  ;;  %5725 = vst [vmem:[#allocation37_spill] sm:$0xff] %v4874_v49  ;;  %v4916_v6 = vmul.f32 %v2742_v23, %v936_v43  ;;  %v4921_v0 = vmul.f32 %v991_v2, %v5731_v52  ;;  %v4924_v8 = vmul.f32 %v999_v22, %v5731_v52 }
 0x275   :  { %v4932_v43 = vmul.f32 %v999_v22, %v5732_v15 }
 0x277   :  { %v4744_v55 = vld [vmem:[#allocation2 + $0x9] sm:$0xff]  ;;  %v4746_v35 = vld [vmem:[#allocation2 + $0x1] sm:$0xff] }
 0x278   :  { %2030 = vrot.lane.b32.xlu0 %v4744_v55, %s2838_s25  ;;  %2028 = vrot.lane.b32.xlu1 %v4746_v35, %s2838_s25  ;;  %v4778_v28 = vld [vmem:[#allocation2 + $0x3] sm:$0xff] }
 0x279   :  { %v4754_v51 = vld [vmem:[#allocation2 + $0x11] sm:$0xff]  ;;  %v4792_v61 = vld [vmem:[#allocation2 + $0x29] sm:$0xff]  ;;  %v4796_v34 = vld [vmem:[#allocation2 + $0x21] sm:$0xff] }
 0x27a   :  { %v4774_v17 = vld [vmem:[#allocation2 + $0xb] sm:$0xff]  ;;  %v4784_v39 = vld [vmem:[#allocation2 + $0x13] sm:$0xff]  ;;  %v4852_v40 = vld [vmem:[#allocation2 + $0x23] sm:$0xff] }
 0x27b   :  { %v4802_v47 = vld [vmem:[#allocation2 + $0x31] sm:$0xff]  ;;  %5723 = vst [vmem:[#allocation51_spill] sm:$0xff] %v4852_v40 }
 0x27c   :  { %2066 = vrot.lane.b32.xlu0 %v4746_v35, %s2839_s28  ;;  %2032 = vrot.lane.b32.xlu1 %v4754_v51, %s2838_s25  ;;  %v4848_v32 = vld [vmem:[#allocation2 + $0x2b] sm:$0xff]  ;;  %v2342_v41 = vld [vmem:[#allocation2 + $0x33] sm:$0xff] }
 0x27d   :  { %5722 = vst [vmem:[#allocation34_spill] sm:$0xff] %v4848_v32 }
 0x280   :  { %2070 = vrot.lane.b32.xlu0 %v4754_v51, %s2839_s28  ;;  %2068 = vrot.lane.b32.xlu1 %v4744_v55, %s2839_s28 }
 0x284   :  { %2093 = vrot.lane.b32.xlu0 %v4710_v18, %s2838_s25  ;;  %2091 = vrot.lane.b32.xlu1 %v4717_v30, %s2838_s25 }
 0x288   :  { %2129 = vrot.lane.b32.xlu0 %v4717_v30, %s2839_s28  ;;  %2095 = vrot.lane.b32.xlu1 %v4738_v63, %s2838_s25 }
 0x28c   :  { %2133 = vrot.lane.b32.xlu0 %v4738_v63, %s2839_s28  ;;  %2131 = vrot.lane.b32.xlu1 %v4710_v18, %s2839_s28 }
 0x290   :  { %2156 = vrot.lane.b32.xlu0 %v4774_v17, %s2838_s25  ;;  %2154 = vrot.lane.b32.xlu1 %v4778_v28, %s2838_s25 }
 0x294   :  { %2192 = vrot.lane.b32.xlu0 %v4778_v28, %s2839_s28  ;;  %2158 = vrot.lane.b32.xlu1 %v4784_v39, %s2838_s25 }
 0x298   :  { %2196 = vrot.lane.b32.xlu0 %v4784_v39, %s2839_s28  ;;  %2194 = vrot.lane.b32.xlu1 %v4774_v17, %s2839_s28 }
 0x29c   :  { %2219 = vrot.lane.b32.xlu0 %v4792_v61, %s2838_s25  ;;  %2217 = vrot.lane.b32.xlu1 %v4796_v34, %s2838_s25 }
 0x2a0   :  { %1073 = vrot.lane.b32.xlu0 %v5720_v31, %s2842_s23  ;;  %2221 = vrot.lane.b32.xlu1 %v4802_v47, %s2838_s25 }
 0x2a4   :  { %2257 = vrot.lane.b32.xlu0 %v4792_v61, %s2839_s28  ;;  %2255 = vrot.lane.b32.xlu1 %v4796_v34, %s2839_s28 }
 0x2a8   :  { %1094 = vrot.lane.b32.xlu0 %v4725_v25, %s2841_s18  ;;  %2259 = vrot.lane.b32.xlu1 %v4802_v47, %s2839_s28 }
 0x2ac   :  { %1098 = vrot.lane.b32.xlu0 %v4740_v37, %s2841_s18  ;;  %1096 = vrot.lane.b32.xlu1 %v4816_v21, %s2841_s18 }
 0x2b0   :  { %2282 = vrot.lane.b32.xlu0 %v4712_v53, %s2838_s25  ;;  %2280 = vrot.lane.b32.xlu1 %v4719_v46, %s2838_s25 }
 0x2b4   :  { %1132 = vrot.lane.b32.xlu0 %v4725_v25, %s2842_s23  ;;  %2284 = vrot.lane.b32.xlu1 %v2011_v5, %s2838_s25 }
 0x2b8   :  { %1136 = vrot.lane.b32.xlu0 %v4740_v37, %s2842_s23  ;;  %1134 = vrot.lane.b32.xlu1 %v4816_v21, %s2842_s23 }
 0x2bc   :  { %2320 = vrot.lane.b32.xlu0 %v4712_v53, %s2839_s28  ;;  %2318 = vrot.lane.b32.xlu1 %v4719_v46, %s2839_s28  ;;  %v4908_v53 = vmul.f32 %v2741_v60, %v928_v58  ;;  %v5729_v46 = vld [vmem:[#allocation24_spill] sm:$0xff]  ;;  %v4929_v58 = vmul.f32 %v991_v2, %v5732_v15  ;;  %v5733_v60 = vld [vmem:[#allocation17_spill] sm:$0xff] }
 0x2bd   :  { %v851_v10 = vmul.f32 %v849_v36, %v5729_v46  ;;  %v859_v20 = vmul.f32 %v857_v9, %v5729_v46  ;;  %v4935_v46 = vmul.f32 %v991_v2, %v5733_v60  ;;  %v4938_v23 = vmul.f32 %v999_v22, %v5733_v60 }
 0x2be   :  { %v4955_v22 = vstv %s4882_s6  ;;  %s5192_s6 = sld [smem:[#allocation7 + $0x1b]] }
 0x2bf   :  { %v854_v49 = vadd.f32 %v851_v10, %v836_v24  ;;  %v862_v2 = vadd.f32 %v859_v20, %v838_v11  ;;  %v4974_v10 = vmul.f32 %v1062_v38, %v5720_v31  ;;  %v4978_v20 = vmul.f32 %v4864_v59, %v4725_v25 }
 0x2c0   :  { %1157 = vrot.lane.b32.xlu0 %v4721_v1, %s2841_s18  ;;  %2322 = vrot.lane.b32.xlu1 %v2011_v5, %s2839_s28  ;;  %v5730_v5 = vld [vmem:[#allocation23_spill] sm:$0xff] }
 0x2c1   :  { %v850_v12 = vmul.f32 %v849_v36, %v5730_v5  ;;  %v858_v19 = vmul.f32 %v857_v9, %v5730_v5  ;;  %v5734_v5 = vld [vmem:[#allocation25_spill] sm:$0xff]  ;;  %5742 = vst [vmem:[#allocation56_spill] sm:$0xff] %v4974_v10  ;;  %5743 = vst [vmem:[#allocation59_spill] sm:$0xff] %v4978_v20 }
 0x2c2   :  { %v852_v52 = vmul.f32 %v849_v36, %v5734_v5  ;;  %v5738_v36 = vld [vmem:[#allocation21_spill] sm:$0xff] }
 0x2c3   :  { %v853_v60 = vadd.f32 %v850_v12, %v836_v24  ;;  %v4982_v12 = vmul.f32 %v4866_v48, %v4725_v25 }
 0x2c4   :  { %1161 = vrot.lane.b32.xlu0 %v5721_v54, %s2841_s18  ;;  %1159 = vrot.lane.b32.xlu1 %v4723_v4, %s2841_s18  ;;  %s4880_s18 = sld [smem:[#allocation8 + $0x5]] }
 0x2c5   :  { %5744 = vst [vmem:[#allocation60_spill] sm:$0xff] %v4982_v12  ;;  %v869_v25 = vadd.f32 %v866_v16, %v853_v60 }
 0x2c8   :  { %2345 = vrot.lane.b32.xlu0 %v4848_v32, %s2838_s25  ;;  %2343 = vrot.lane.b32.xlu1 %v4852_v40, %s2838_s25 }
 0x2ca   :  { %v4952_v57 = vstv %s4880_s18  ;;  %s5190_s18 = sld [smem:[#allocation7 + $0x9]] }
 0x2cc   :  { %1195 = vrot.lane.b32.xlu0 %v4721_v1, %s2842_s23  ;;  %2347 = vrot.lane.b32.xlu1 %v2342_v41, %s2838_s25  ;;  %v861_v1 = vadd.f32 %v858_v19, %v838_v11  ;;  %s4957_s25 = sld [smem:[#allocation8 + $0x6]]  ;;  %v855_v19 = vadd.f32 %v852_v52, %v836_v24  ;;  %v5747_v24 = vld [vmem:[#allocation29_spill] sm:$0xff]  ;;  %v5749_v52 = vld [vmem:[#allocation30_spill] sm:$0xff] }
 0x2ce   :  { %v871_v60 = vadd.f32 %v4891_v44, %v855_v19  ;;  %v5034_v19 = vmul.f32 %v4864_v59, %v4740_v37 }
 0x2d0   :  { %1199 = vrot.lane.b32.xlu0 %v5721_v54, %s2842_s23  ;;  %1197 = vrot.lane.b32.xlu1 %v4723_v4, %s2842_s23  ;;  %v860_v4 = vmul.f32 %v857_v9, %v5734_v5  ;;  %s4959_s23 = sld [smem:[#allocation8 + $0x18]]  ;;  %v4963_v9 = vmul.f32 %v4860_v56, %v5738_v36  ;;  %v4966_v5 = vmul.f32 %v1062_v38, %v5738_v36 }
 0x2d1   :  { %5752 = vst [vmem:[#allocation39_spill] sm:$0xff] %v5034_v19 }
 0x2d2   :  { %5739 = vst [vmem:[#allocation63_spill] sm:$0xff] %v4963_v9  ;;  %5740 = vst [vmem:[#allocation64_spill] sm:$0xff] %v4966_v5  ;;  %v863_v36 = vadd.f32 %v860_v4, %v838_v11  ;;  %v877_v4 = vadd.f32 %v874_v26, %v861_v1  ;;  %v913_v11 = vmul.f32 %v4897_v3, %v5747_v24 }
 0x2d3   :  { %v922_v1 = vmul.f32 %v4900_v45, %v5749_v52 }
 0x2d4   :  { %2383 = vrot.lane.b32.xlu0 %v4848_v32, %s2839_s28  ;;  %2381 = vrot.lane.b32.xlu1 %v4852_v40, %s2839_s28  ;;  %v5735_v32 = vld [vmem:[#allocation14_spill] sm:$0xff] }
 0x2d5   :  { %v4946_v54 = vmul.f32 %v4860_v56, %v5735_v32  ;;  %v4949_v15 = vmul.f32 %v1062_v38, %v5735_v32  ;;  %v4971_v32 = vmul.f32 %v4860_v56, %v5720_v31  ;;  %v5745_v40 = vld [vmem:[#allocation26_spill] sm:$0xff]  ;;  %v5746_v31 = vld [vmem:[#allocation27_spill] sm:$0xff] }
 0x2d6   :  { %v896_v56 = vmul.f32 %v4878_v14, %v5745_v40  ;;  %v889_v38 = vmul.f32 %v4876_v13, %v5746_v31  ;;  %v897_v20 = vmul.f32 %v4878_v14, %v5746_v31  ;;  %v879_v31 = vadd.f32 %v4894_v27, %v863_v36 }
 0x2d7   :  { %5736 = vst [vmem:[#allocation53_spill] sm:$0xff] %v4946_v54  ;;  %5737 = vst [vmem:[#allocation54_spill] sm:$0xff] %v4949_v15  ;;  %v878_v15 = vadd.f32 %v875_v7, %v862_v2  ;;  %v914_v2 = vmul.f32 %v4897_v3, %v5749_v52  ;;  %v5038_v36 = vmul.f32 %v4866_v48, %v4740_v37  ;;  %v2106_v54 = vstv %s5100_s27  ;;  %s5350_s27 = sld [smem:[#allocation7 + $0x21]] }
 0x2d8   :  { %2385 = vrot.lane.b32.xlu1 %v2342_v41, %s2839_s28  ;;  %5741 = vst [vmem:[#allocation55_spill] sm:$0xff] %v4971_v32  ;;  %v888_v41 = vmul.f32 %v4876_v13, %v5745_v40  ;;  %v870_v32 = vadd.f32 %v867_v29, %v854_v49  ;;  %s4992_s28 = sld [smem:[#allocation8 + $0x8]]  ;;  %v921_v40 = vmul.f32 %v4900_v45, %v5747_v24  ;;  %v5748_v49 = vld [vmem:[#allocation28_spill] sm:$0xff] }
 0x2d9   :  { %v890_v29 = vmul.f32 %v4876_v13, %v5748_v49  ;;  %v898_v7 = vmul.f32 %v4878_v14, %v5748_v49  ;;  %v899_v26 = vadd.f32 %v896_v56, %v877_v4  ;;  %v900_v12 = vadd.f32 %v897_v20, %v878_v15  ;;  %v5750_v13 = vld [vmem:[#allocation31_spill] sm:$0xff]  ;;  %5753 = vst [vmem:[#allocation61_spill] sm:$0xff] %v5038_v36 }
 0x2da   :  { %v891_v16 = vadd.f32 %v888_v41, %v869_v25  ;;  %v892_v24 = vadd.f32 %v889_v38, %v870_v32  ;;  %v915_v10 = vmul.f32 %v4897_v3, %v5750_v13  ;;  %v923_v14 = vmul.f32 %v4900_v45, %v5750_v13  ;;  %v5751_v45 = vld [vmem:[#allocation32_spill] sm:$0xff] }
 0x2db   :  { %v924_v52 = vadd.f32 %v921_v40, %v899_v26  ;;  %v975_v41 = vstv %s4957_s25  ;;  %v983_v56 = vstv %s4959_s23  ;;  %v893_v44 = vadd.f32 %v890_v29, %v871_v60  ;;  %v5754_v29 = vld [vmem:[#allocation36_spill] sm:$0xff]  ;;  %v5756_v60 = vld [vmem:[#allocation35_spill] sm:$0xff]  ;;  %s5196_s25 = sld [smem:[#allocation7 + $0xa]]  ;;  %s5198_s23 = sld [smem:[#allocation7 + $0x1c]] }
 0x2dc   :  { %v916_v49 = vadd.f32 %v913_v11, %v891_v16  ;;  %v901_v27 = vadd.f32 %v898_v7, %v879_v31  ;;  %v917_v3 = vadd.f32 %v914_v2, %v892_v24  ;;  %v925_v15 = vadd.f32 %v922_v1, %v900_v12  ;;  %v5755_v1 = vld [vmem:[#allocation33_spill] sm:$0xff] }
 0x2dd   :  { %v951_v32 = vmul.f32 %v4952_v57, %v5751_v45  ;;  %v959_v20 = vmul.f32 %v4955_v22, %v5751_v45  ;;  %v918_v38 = vadd.f32 %v915_v10, %v893_v44  ;;  %v5044_v4 = vstv %s4994_s12  ;;  %v5759_v45 = vld [vmem:[#allocation38_spill] sm:$0xff]  ;;  %s5248_s12 = sld [smem:[#allocation7 + $0x1f]] }
 0x2de   :  { %v926_v12 = vadd.f32 %v923_v14, %v901_v27  ;;  %v5041_v25 = vstv %s4992_s28  ;;  %v932_v11 = vadd.f32 %v4904_v42, %v916_v49  ;;  %v940_v40 = vadd.f32 %v4906_v33, %v924_v52  ;;  %s5246_s28 = sld [smem:[#allocation7 + $0xd]] }
 0x2df   :  { %v976_v7 = vmul.f32 %v975_v41, %v5754_v29  ;;  %v984_v2 = vmul.f32 %v983_v56, %v5754_v29  ;;  %v933_v37 = vadd.f32 %v4908_v53, %v917_v3  ;;  %v941_v10 = vadd.f32 %v4910_v50, %v925_v15 }
 0x2e0   :  { %v952_v16 = vmul.f32 %v4952_v57, %v5755_v1  ;;  %v960_v42 = vmul.f32 %v4955_v22, %v5755_v1  ;;  %v954_v33 = vadd.f32 %v951_v32, %v932_v11  ;;  %v962_v26 = vadd.f32 %v959_v20, %v940_v40  ;;  %v5760_v11 = vld [vmem:[#allocation40_spill] sm:$0xff] }
 0x2e1   :  { %v953_v31 = vmul.f32 %v4952_v57, %v5756_v60  ;;  %v961_v53 = vmul.f32 %v4955_v22, %v5756_v60  ;;  %v934_v50 = vadd.f32 %v4914_v62, %v918_v38  ;;  %v942_v24 = vadd.f32 %v4916_v6, %v926_v12 }
 0x2e2   :  { %v5075_v13 = vstv %s5014_s13  ;;  %v5078_v14 = vstv %s5016_s14  ;;  %v979_v57 = vadd.f32 %v976_v7, %v954_v33  ;;  %v987_v49 = vadd.f32 %v984_v2, %v962_v26  ;;  %s5260_s13 = sld [smem:[#allocation7 + $0x10]]  ;;  %s5262_s14 = sld [smem:[#allocation7 + $0x22]] }
 0x2e3   :  { %v2035_v22 = vstv %s5020_s15  ;;  %v2043_v52 = vstv %s5022_s16  ;;  %v955_v44 = vadd.f32 %v952_v16, %v933_v37  ;;  %v963_v27 = vadd.f32 %v960_v42, %v941_v10  ;;  %s5266_s15 = sld [smem:[#allocation7 + $0xb]]  ;;  %s5268_s16 = sld [smem:[#allocation7 + $0x1d]] }
 0x2e4   :  { %v5087_v3 = vstv %s5024_s5  ;;  %v5090_v62 = vstv %s5026_s17  ;;  %v5092_v6 = vadd.f32 %v953_v31, %v934_v50  ;;  %v5094_v15 = vadd.f32 %v961_v53, %v942_v24  ;;  %s5276_s5 = sld [smem:[#allocation8 + $0xc]]  ;;  %s5278_s17 = sld [smem:[#allocation8 + $0x1e]] }
 0x2e5   :  { %5757 = vst [vmem:[#allocation62_spill] sm:$0xff] %v5087_v3  ;;  %5758 = vst [vmem:[#allocation65_spill] sm:$0xff] %v5090_v62  ;;  %v977_v32 = vmul.f32 %v975_v41, %v5759_v45  ;;  %v985_v20 = vmul.f32 %v983_v56, %v5759_v45  ;;  %v5103_v40 = vmul.f32 %v975_v41, %v5760_v11  ;;  %v2022_v1 = vstv %s5050_s21  ;;  %s5290_s21 = sld [smem:[#allocation7 + $0xc]] }
 0x2e6   :  { %v5106_v29 = vmul.f32 %v983_v56, %v5760_v11  ;;  %v5109_v37 = vadd.f32 %v4921_v0, %v979_v57  ;;  %v5112_v10 = vadd.f32 %v4924_v8, %v987_v49  ;;  %v2024_v16 = vstv %s5052_s2  ;;  %s5292_s2 = sld [smem:[#allocation7 + $0x1e]] }
 0x2e7   :  { %v2051_v42 = vstv %s5060_s3  ;;  %v2059_v33 = vstv %s5062_s19  ;;  %v5118_v60 = vadd.f32 %v977_v32, %v955_v44  ;;  %v5120_v56 = vadd.f32 %v985_v20, %v963_v27  ;;  %s5308_s3 = sld [smem:[#allocation8 + $0xe]]  ;;  %s5310_s19 = sld [smem:[#allocation8 + $0x20]] }
 0x2e8   :  { %v5123_v31 = vstv %s5068_s20  ;;  %v5126_v53 = vstv %s5070_s22  ;;  %v2073_v8 = vstv %s5080_s24  ;;  %v2081_v57 = vstv %s5082_s4  ;;  %s5318_s20 = sld [smem:[#allocation7 + $0xe]]  ;;  %s5320_s22 = sld [smem:[#allocation7 + $0x20]] }
 0x2e9   :  { %v2053_v45 = vmul.f32 %v2051_v42, %v4744_v55  ;;  %v2052_v27 = vmul.f32 %v2051_v42, %v4746_v35  ;;  %v2060_v20 = vmul.f32 %v2059_v33, %v4746_v35  ;;  %v2054_v5 = vmul.f32 %v2051_v42, %v4754_v51  ;;  %s5322_s24 = sld [smem:[#allocation8 + $0xf]]  ;;  %s5324_s4 = sld [smem:[#allocation8 + $0x21]] }
 0x2ea   :  { %v2031_v38 = vpop.permute.xlu0 %2030  ;;  %v2029_v12 = vpop.permute.xlu1 %2028 }
 0x2eb   :  { %v2036_v7 = vmul.f32 %v2035_v22, %v2029_v12  ;;  %v2044_v2 = vmul.f32 %v2043_v52, %v2029_v12  ;;  %v2037_v26 = vmul.f32 %v2035_v22, %v2031_v38  ;;  %v2045_v41 = vmul.f32 %v2043_v52, %v2031_v38 }
 0x2ec   :  { %v2061_v38 = vmul.f32 %v2059_v33, %v4744_v55  ;;  %v2062_v55 = vmul.f32 %v2059_v33, %v4754_v51 }
 0x2ed   :  { %v2039_v50 = vadd.f32 %v2036_v7, %v2022_v1  ;;  %v2047_v24 = vadd.f32 %v2044_v2, %v2024_v16  ;;  %v2040_v12 = vadd.f32 %v2037_v26, %v2022_v1  ;;  %v2048_v11 = vadd.f32 %v2045_v41, %v2024_v16 }
 0x2ee   :  { %v2067_v0 = vpop.permute.xlu0 %2066  ;;  %v2033_v49 = vpop.permute.xlu1 %2032  ;;  %v2098_v2 = vstv %s5098_s26  ;;  %s5348_s26 = sld [smem:[#allocation7 + $0xf]] }
 0x2ef   :  { %v2038_v44 = vmul.f32 %v2035_v22, %v2033_v49  ;;  %v2046_v32 = vmul.f32 %v2043_v52, %v2033_v49  ;;  %v2055_v22 = vadd.f32 %v2052_v27, %v2039_v50  ;;  %v2063_v52 = vadd.f32 %v2060_v20, %v2047_v24 }
 0x2f0   :  { %v2074_v9 = vmul.f32 %v2073_v8, %v2067_v0  ;;  %v2082_v35 = vmul.f32 %v2081_v57, %v2067_v0  ;;  %v2056_v42 = vadd.f32 %v2053_v45, %v2040_v12 }
 0x2f1   :  { %v2041_v36 = vadd.f32 %v2038_v44, %v2022_v1  ;;  %v2049_v7 = vadd.f32 %v2046_v32, %v2024_v16  ;;  %v2116_v1 = vmul.f32 %v5123_v31, %v4710_v18  ;;  %v2124_v16 = vmul.f32 %v5126_v53, %v4710_v18 }
 0x2f2   :  { %v2071_v19 = vpop.permute.xlu0 %2070  ;;  %v2069_v49 = vpop.permute.xlu1 %2068  ;;  %v2064_v44 = vadd.f32 %v2061_v38, %v2048_v11  ;;  %v2077_v18 = vadd.f32 %v2074_v9, %v2055_v22  ;;  %v2085_v3 = vadd.f32 %v2082_v35, %v2063_v52  ;;  %v2136_v11 = vstv %s5136_s29  ;;  %s5360_s29 = sld [smem:[#allocation8 + $0x11]] }
 0x2f3   :  { %v2075_v26 = vmul.f32 %v2073_v8, %v2069_v49  ;;  %v2083_v41 = vmul.f32 %v2081_v57, %v2069_v49  ;;  %v2057_v51 = vadd.f32 %v2054_v5, %v2041_v36  ;;  %v2065_v33 = vadd.f32 %v2062_v55, %v2049_v7 }
 0x2f4   :  { %v2076_v50 = vmul.f32 %v2073_v8, %v2071_v19  ;;  %v2084_v24 = vmul.f32 %v2081_v57, %v2071_v19  ;;  %v2115_v5 = vmul.f32 %v5123_v31, %v4717_v30  ;;  %v2123_v19 = vmul.f32 %v5126_v53, %v4717_v30 }
 0x2f5   :  { %v2078_v0 = vadd.f32 %v2075_v26, %v2056_v42  ;;  %v2086_v27 = vadd.f32 %v2083_v41, %v2064_v44  ;;  %v2144_v7 = vstv %s5138_s30  ;;  %v981_v30 = vadd.f32 %v5103_v40, %v5092_v6  ;;  %s5362_s30 = sld [smem:[#allocation8 + $0x23]] }
 0x2f6   :  { %v2094_v32 = vpop.permute.xlu0 %2093  ;;  %v2092_v62 = vpop.permute.xlu1 %2091  ;;  %v2079_v26 = vadd.f32 %v2076_v50, %v2057_v51  ;;  %v2087_v9 = vadd.f32 %v2084_v24, %v2065_v33  ;;  %v2117_v51 = vmul.f32 %v5123_v31, %v4738_v63  ;;  %v2161_v50 = vstv %s5150_s0  ;;  %v5761_v31 = vld [vmem:[#allocation41_spill] sm:$0xff]  ;;  %s2843_s0 = smov [#allocation9]  }
 0x2f7   :  { %v2100_v20 = vmul.f32 %v2098_v2, %v2094_v32  ;;  %v2108_v49 = vmul.f32 %v2106_v54, %v2094_v32  ;;  %v2099_v45 = vmul.f32 %v2098_v2, %v2092_v62  ;;  %v2107_v38 = vmul.f32 %v2106_v54, %v2092_v62 }
 0x2f8   :  { %v2177_v32 = vstv %s5146_s8  ;;  %s5372_s8 = sld [smem:[#allocation7 + $0x11]] }
 0x2f9   :  { %v2103_v36 = vadd.f32 %v2100_v20, %v2078_v0  ;;  %v2111_v8 = vadd.f32 %v2108_v49, %v2086_v27  ;;  %v2102_v57 = vadd.f32 %v2099_v45, %v2077_v18  ;;  %v2110_v12 = vadd.f32 %v2107_v38, %v2085_v3 }
 0x2fa   :  { %v2130_v55 = vpop.permute.xlu0 %2129  ;;  %v2096_v22 = vpop.permute.xlu1 %2095  ;;  %v989_v3 = vadd.f32 %v5106_v29, %v5094_v15  ;;  %v2185_v0 = vstv %s5148_s9  ;;  %v2169_v15 = vstv %s5152_s1  ;;  %v5178_v49 = vmul.f32 %v5041_v25, %v5761_v31  ;;  %s5374_s9 = sld [smem:[#allocation7 + $0x23]]  ;;  %s2422_s1 = sshll.u32 %s2843_s0, 4  ;;  %s2423_s1 = int_to_ptr.vmem [resolvable:$true] %s2422_s1 }
 0x2fb   :  { %v2119_v52 = vadd.f32 %v2116_v1, %v2103_v36  ;;  %v2127_v62 = vadd.f32 %v2124_v16, %v2111_v8  ;;  %v2118_v35 = vadd.f32 %v2115_v5, %v2102_v57  ;;  %v2126_v41 = vadd.f32 %v2123_v19, %v2110_v12  ;;  %p2812_p12 = scmp.lt.s32.totalorder %s2423_s1, %s2423_s1 }
 0x2fc   :  { %v2101_v42 = vmul.f32 %v2098_v2, %v2096_v22  ;;  %v2109_v44 = vmul.f32 %v2106_v54, %v2096_v22  ;;  %v2125_v1 = vmul.f32 %v5126_v53, %v4738_v63  ;;  %v2137_v54 = vmul.f32 %v2136_v11, %v2130_v55 }
 0x2fd   :  { %v2145_v6 = vmul.f32 %v2144_v7, %v2130_v55  ;;  %v5182_v63 = vmul.f32 %v5044_v4, %v5761_v31  ;;  %v996_v53 = vadd.f32 %v4929_v58, %v5118_v60  ;;  %v1004_v18 = vadd.f32 %v4932_v43, %v5120_v56 }
 0x2fe   :  { %v2104_v16 = vadd.f32 %v2101_v42, %v2079_v26  ;;  %v2112_v33 = vadd.f32 %v2109_v44, %v2087_v9  ;;  %v2134_v2 = vpop.permute.xlu0 %2133  ;;  %v2132_v40 = vpop.permute.xlu1 %2131  ;;  %v2178_v45 = vmul.f32 %v2177_v32, %v4778_v28  ;;  %v2186_v38 = vmul.f32 %v2185_v0, %v4778_v28 }
 0x2ff   :  { %v2138_v27 = vmul.f32 %v2136_v11, %v2132_v40  ;;  %v2146_v20 = vmul.f32 %v2144_v7, %v2132_v40  ;;  %v2139_v5 = vmul.f32 %v2136_v11, %v2134_v2  ;;  %v2147_v19 = vmul.f32 %v2144_v7, %v2134_v2 }
 0x300   :  { %v2120_v29 = vadd.f32 %v2117_v51, %v2104_v16  ;;  %v2128_v24 = vadd.f32 %v2125_v1, %v2112_v33  ;;  %v2140_v58 = vadd.f32 %v2137_v54, %v2118_v35  ;;  %v2148_v43 = vadd.f32 %v2145_v6, %v2126_v41  ;;  %v5762_v6 = vld [vmem:[#allocation42_spill] sm:$0xff] }
 0x301   :  { %v2141_v8 = vadd.f32 %v2138_v27, %v2119_v52  ;;  %v2149_v57 = vadd.f32 %v2146_v20, %v2127_v62  ;;  %v2179_v28 = vmul.f32 %v2177_v32, %v4774_v17  ;;  %v2187_v11 = vmul.f32 %v2185_v0, %v4774_v17 }
 0x302   :  { %v2157_v36 = vpop.permute.xlu0 %2156  ;;  %v2155_v26 = vpop.permute.xlu1 %2154  ;;  %v2199_v62 = vstv %s5170_s10  ;;  %v2207_v42 = vstv %s5172_s11  ;;  %v2142_v51 = vadd.f32 %v2139_v5, %v2120_v29  ;;  %v2150_v35 = vadd.f32 %v2147_v19, %v2128_v24  ;;  %s2807_s10 = scalar_lea.vmem %s2423_s1, 3072 }
 0x303   :  { %v2163_v12 = vmul.f32 %v2161_v50, %v2157_v36  ;;  %v2171_v55 = vmul.f32 %v2169_v15, %v2157_v36  ;;  %v2162_v60 = vmul.f32 %v2161_v50, %v2155_v26  ;;  %v2170_v56 = vmul.f32 %v2169_v15, %v2155_v26  ;;  %p2808_p11 = scmp.ne.s32.totalorder %s2423_s1, %s2807_s10  ;;  %p2813_p13 = scmp.lt.s32.totalorder %s2807_s10, %s2807_s10 }
 0x304   :  { %v1015_v40 = vmul.f32 %v5041_v25, %v5762_v6  ;;  %v1023_v27 = vmul.f32 %v5044_v4, %v5762_v6  ;;  %v5207_v20 = vadd.f32 %v4935_v46, %v981_v30  ;;  %v5210_v29 = vadd.f32 %v4938_v23, %v989_v3 }
 0x305   :  { %v2166_v7 = vadd.f32 %v2163_v12, %v2141_v8  ;;  %v2174_v9 = vadd.f32 %v2171_v55, %v2149_v57  ;;  %v2165_v22 = vadd.f32 %v2162_v60, %v2140_v58  ;;  %v2173_v52 = vadd.f32 %v2170_v56, %v2148_v43  ;;  %v5763_v55 = vld [vmem:[#allocation47_spill] sm:$0xff]  ;;  %p2814_p0 = por %p2813_p13, %p2812_p12 }
 0x306   :  { %v2193_v44 = vpop.permute.xlu0 %2192  ;;  %v2159_v41 = vpop.permute.xlu1 %2158  ;;  %v2180_v24 = vmul.f32 %v2177_v32, %v4784_v39  ;;  %v2188_v31 = vmul.f32 %v2185_v0, %v4784_v39  ;;  %v2224_v36 = vstv %s5190_s18  ;;  %v2232_v8 = vstv %s5192_s6 }
 0x307   :  { %v2182_v1 = vadd.f32 %v2179_v28, %v2166_v7  ;;  %v2190_v16 = vadd.f32 %v2187_v11, %v2174_v9  ;;  %v2181_v33 = vadd.f32 %v2178_v45, %v2165_v22  ;;  %v2189_v2 = vadd.f32 %v2186_v38, %v2173_v52  ;;  %p2815_p1 = pnand %p2814_p0, %p2808_p11 }
 0x308   :  { %v2164_v17 = vmul.f32 %v2161_v50, %v2159_v41  ;;  %v2172_v54 = vmul.f32 %v2169_v15, %v2159_v41  ;;  %v2200_v38 = vmul.f32 %v2199_v62, %v2193_v44  ;;  %v2208_v5 = vmul.f32 %v2207_v42, %v2193_v44 }
 0x309   :  { %v1018_v23 = vadd.f32 %v1015_v40, %v996_v53  ;;  %v1026_v3 = vadd.f32 %v1023_v27, %v1004_v18  ;;  %v1040_v32 = vmul.f32 %v5075_v13, %v5763_v55  ;;  %v1048_v39 = vmul.f32 %v5078_v14, %v5763_v55 }
 0x30a   :  { %v2167_v45 = vadd.f32 %v2164_v17, %v2142_v51  ;;  %v2175_v50 = vadd.f32 %v2172_v54, %v2150_v35  ;;  %v2197_v15 = vpop.permute.xlu0 %2196  ;;  %v2195_v19 = vpop.permute.xlu1 %2194  ;;  %v2240_v0 = vstv %s5196_s25  ;;  %v2248_v26 = vstv %s5198_s23 }
 0x30b   :  { %v2201_v30 = vmul.f32 %v2199_v62, %v2195_v19  ;;  %v2209_v12 = vmul.f32 %v2207_v42, %v2195_v19  ;;  %v2202_v58 = vmul.f32 %v2199_v62, %v2197_v15  ;;  %v2210_v43 = vmul.f32 %v2207_v42, %v2197_v15  ;;  %v5765_v15 = vld [vmem:[#allocation45_spill] sm:$0xff] }
 0x30c   :  { %v2183_v57 = vadd.f32 %v2180_v24, %v2167_v45  ;;  %v2191_v46 = vadd.f32 %v2188_v31, %v2175_v50  ;;  %v2203_v22 = vadd.f32 %v2200_v38, %v2181_v33  ;;  %v2211_v52 = vadd.f32 %v2208_v5, %v2189_v2  ;;  %v5764_v45 = vld [vmem:[#allocation44_spill] sm:$0xff] }
 0x30d   :  { %v2204_v56 = vadd.f32 %v2201_v30, %v2182_v1  ;;  %v2212_v28 = vadd.f32 %v2209_v12, %v2190_v16  ;;  %v2242_v44 = vmul.f32 %v2240_v0, %v4792_v61  ;;  %v2250_v51 = vmul.f32 %v2248_v26, %v4792_v61  ;;  %v5766_v30 = vld [vmem:[#allocation48_spill] sm:$0xff] }
 0x30e   :  { %v2220_v60 = vpop.permute.xlu0 %2219  ;;  %v2218_v9 = vpop.permute.xlu1 %2217  ;;  %v2241_v17 = vmul.f32 %v2240_v0, %v4796_v34  ;;  %v2249_v62 = vmul.f32 %v2248_v26, %v4796_v34  ;;  %v2205_v54 = vadd.f32 %v2202_v58, %v2183_v57  ;;  %v2213_v6 = vadd.f32 %v2210_v43, %v2191_v46  ;;  %v5769_v58 = vld [vmem:[#allocation37_spill] sm:$0xff] }
 0x30f   :  { %v2226_v11 = vmul.f32 %v2224_v36, %v2220_v60  ;;  %v2234_v7 = vmul.f32 %v2232_v8, %v2220_v60  ;;  %v2225_v53 = vmul.f32 %v2224_v36, %v2218_v9  ;;  %v2233_v18 = vmul.f32 %v2232_v8, %v2218_v9  ;;  %v5773_v9 = vld [vmem:[#allocation63_spill] sm:$0xff] }
 0x310   :  { %v1016_v34 = vmul.f32 %v5041_v25, %v5764_v45  ;;  %v1024_v50 = vmul.f32 %v5044_v4, %v5764_v45  ;;  %v1039_v38 = vmul.f32 %v5075_v13, %v5765_v15  ;;  %v1047_v5 = vmul.f32 %v5078_v14, %v5765_v15 }
 0x311   :  { %v2229_v35 = vadd.f32 %v2226_v11, %v2204_v56  ;;  %v2237_v41 = vadd.f32 %v2234_v7, %v2212_v28  ;;  %v2228_v42 = vadd.f32 %v2225_v53, %v2203_v22  ;;  %v2236_v1 = vadd.f32 %v2233_v18, %v2211_v52  ;;  %v5772_v28 = vld [vmem:[#allocation65_spill] sm:$0xff]  ;;  %v5774_v52 = vld [vmem:[#allocation64_spill] sm:$0xff]  ;;  %v5775_v18 = vld [vmem:[#allocation50_spill] sm:$0xff] }
 0x312   :  { %v5226_v16 = vpop.permute.xlu0 %1073  ;;  %v2222_v33 = vpop.permute.xlu1 %2221  ;;  %v2243_v19 = vmul.f32 %v2240_v0, %v4802_v47  ;;  %v1017_v4 = vadd.f32 %v5178_v49, %v5109_v37  ;;  %v1025_v46 = vadd.f32 %v5182_v63, %v5112_v10  ;;  %v1041_v12 = vmul.f32 %v5075_v13, %v5766_v30 }
 0x313   :  { %v5228_v2 = vadd.f32 %v2242_v44, %v2229_v35  ;;  %v5230_v40 = vadd.f32 %v2250_v51, %v2237_v41  ;;  %v2227_v27 = vmul.f32 %v2224_v36, %v2222_v33  ;;  %v2235_v24 = vmul.f32 %v2232_v8, %v2222_v33  ;;  %v5776_v35 = vld [vmem:[#allocation18_spill] sm:$0xff] }
 0x314   :  { %v5232_v61 = vadd.f32 %v2241_v17, %v2228_v42  ;;  %v5234_v31 = vadd.f32 %v2249_v62, %v2236_v1  ;;  %v2251_v36 = vmul.f32 %v2248_v26, %v4802_v47  ;;  %v1049_v47 = vmul.f32 %v5078_v14, %v5766_v30  ;;  %v5779_v62 = vld [vmem:[#allocation58_spill] sm:$0xff] }
 0x315   :  { %v2230_v8 = vadd.f32 %v2227_v27, %v2205_v54  ;;  %v2238_v57 = vadd.f32 %v2235_v24, %v2213_v6  ;;  %v1043_v0 = vadd.f32 %v1040_v32, %v1018_v23  ;;  %v1051_v26 = vadd.f32 %v1048_v39, %v1026_v3  ;;  %v5782_v54 = vld [vmem:[#allocation53_spill] sm:$0xff]  ;;  %v5783_v33 = vld [vmem:[#allocation54_spill] sm:$0xff] }
 0x316   :  { %v5250_v25 = vpop.permute.xlu0 %2257  ;;  %v5264_v55 = vpop.permute.xlu1 %2255  ;;  %v1019_v13 = vadd.f32 %v1016_v34, %v5207_v20  ;;  %v1027_v14 = vadd.f32 %v1024_v50, %v5210_v29  ;;  %v5282_v49 = vmul.f32 %v4816_v21, %v4864_v59  ;;  %v5286_v63 = vmul.f32 %v4816_v21, %v4866_v48  ;;  %v5767_v20 = vld [vmem:[#allocation57_spill] sm:$0xff]  ;;  %v5768_v29 = vld [vmem:[#allocation52_spill] sm:$0xff]  ;;  %v5771_v48 = vld [vmem:[#allocation62_spill] sm:$0xff] }
 0x317   :  { %v5270_v37 = vadd.f32 %v2243_v19, %v2230_v8  ;;  %v5272_v10 = vadd.f32 %v2251_v36, %v2238_v57  ;;  %v1042_v23 = vadd.f32 %v1039_v38, %v1017_v4  ;;  %v1050_v3 = vadd.f32 %v1047_v5, %v1025_v46  ;;  %v5770_v21 = vld [vmem:[#allocation49_spill] sm:$0xff]  ;;  %v5786_v38 = vld [vmem:[#allocation55_spill] sm:$0xff]  ;;  %v5787_v19 = vld [vmem:[#allocation56_spill] sm:$0xff] }
 0x318   :  { %v5296_v39 = vmul.f32 %v5768_v29, %v5767_v20  ;;  %v5300_v59 = vmul.f32 %v5769_v58, %v5767_v20  ;;  %v1044_v43 = vadd.f32 %v1041_v12, %v1019_v13  ;;  %v1052_v60 = vadd.f32 %v1049_v47, %v1027_v14  ;;  %v2743_v12 = vld [vmem:[#allocation9 + $0x50] sm:$0xff] }
 0x319   :  { %v1077_v56 = vmul.f32 %v5771_v48, %v5770_v21  ;;  %v1085_v11 = vmul.f32 %v5772_v28, %v5770_v21  ;;  %v1059_v22 = vadd.f32 %v5773_v9, %v1043_v0  ;;  %v1067_v53 = vadd.f32 %v5774_v52, %v1051_v26  ;;  %v2744_v26 = vld [vmem:[#allocation9 + $0x48] sm:$0xff] }
 0x31a   :  { %v5288_v32 = vpop.permute.xlu0 %1094  ;;  %v5306_v7 = vpop.permute.xlu1 %2259  ;;  %v1078_v44 = vmul.f32 %v5771_v48, %v5775_v18  ;;  %v1086_v51 = vmul.f32 %v5772_v28, %v5775_v18  ;;  %v5328_v41 = vmul.f32 %v5768_v29, %v5776_v35  ;;  %v5332_v17 = vmul.f32 %v5769_v58, %v5776_v35  ;;  %v5791_v9 = vld [vmem:[#allocation34_spill] sm:$0xff] }
 0x31b   :  { %v5336_v42 = vmul.f32 %v5768_v29, %v5779_v62  ;;  %v5340_v1 = vmul.f32 %v5769_v58, %v5779_v62  ;;  %v1058_v6 = vadd.f32 %v5782_v54, %v1042_v23  ;;  %v1066_v27 = vadd.f32 %v5783_v33, %v1050_v3  ;;  %v2745_v23 = vld [vmem:[#allocation9 + $0x58] sm:$0xff]  ;;  %v5788_v29 = vld [vmem:[#allocation51_spill] sm:$0xff] }
 0x31c   :  { %5777 = vst [vmem:[#allocation66_spill] sm:$0xff] %v5328_v41  ;;  %5778 = vst [vmem:[#allocation73_spill] sm:$0xff] %v5332_v17  ;;  %v2303_v24 = vstv %s5246_s28  ;;  %v2311_v45 = vstv %s5248_s12  ;;  %v5353_v50 = vstv %s5260_s13  ;;  %v5356_v15 = vstv %s5262_s14 }
 0x31d   :  { %5780 = vst [vmem:[#allocation67_spill] sm:$0xff] %v5336_v42  ;;  %5781 = vst [vmem:[#allocation68_spill] sm:$0xff] %v5340_v1  ;;  %v1060_v5 = vadd.f32 %v5786_v38, %v1044_v43  ;;  %v1068_v36 = vadd.f32 %v5787_v19, %v1052_v60  ;;  %v5364_v57 = vadd.f32 %v1077_v56, %v1058_v6  ;;  %v2262_v21 = vstv %s5266_s15 }
 0x31e   :  { %v5346_v34 = vpop.permute.xlu0 %1098  ;;  %5784 = vst [vmem:[#allocation69_spill] sm:$0xff] %v5353_v50  ;;  %5785 = vst [vmem:[#allocation70_spill] sm:$0xff] %v5356_v15  ;;  %v1097_v8 = vpop.permute.xlu1 %1096  ;;  %v5366_v4 = vadd.f32 %v1085_v11, %v1066_v27  ;;  %v5368_v46 = vadd.f32 %v1078_v44, %v1059_v22  ;;  %v5370_v30 = vadd.f32 %v1086_v51, %v1067_v53  ;;  %v2270_v56 = vstv %s5268_s16 }
 0x31f   :  { %v5376_v47 = vmul.f32 %v2743_v12, %v2303_v24  ;;  %v5378_v0 = vmul.f32 %v2743_v12, %v2311_v45  ;;  %v5380_v13 = vmul.f32 %v2744_v26, %v2303_v24  ;;  %v5382_v14 = vmul.f32 %v2744_v26, %v2311_v45 }
 0x320   :  { %v5384_v3 = vmul.f32 %v2745_v23, %v2303_v24  ;;  %v5386_v20 = vmul.f32 %v2745_v23, %v2311_v45  ;;  %v5390_v58 = vmul.f32 %v5353_v50, %v5788_v29  ;;  %v5394_v43 = vmul.f32 %v5356_v15, %v5788_v29 }
 0x321   :  { %v5400_v22 = vmul.f32 %v5353_v50, %v5791_v9  ;;  %v5404_v52 = vmul.f32 %v5356_v15, %v5791_v9  ;;  %v1101_v53 = vstv %s5276_s5  ;;  %v1109_v18 = vstv %s5278_s17 }
 0x322   :  { %5789 = vst [vmem:[#allocation43_spill] sm:$0xff] %v5390_v58  ;;  %5790 = vst [vmem:[#allocation71_spill] sm:$0xff] %v5394_v43  ;;  %v2283_v60 = vpop.permute.xlu0 %2282  ;;  %v2281_v11 = vpop.permute.xlu1 %2280  ;;  %v2287_v44 = vstv %s5290_s21  ;;  %v2295_v51 = vstv %s5292_s2  ;;  %v1079_v35 = vmul.f32 %v5771_v48, %v5226_v16  ;;  %v1087_v62 = vmul.f32 %v5772_v28, %v5226_v16 }
 0x323   :  { %5792 = vst [vmem:[#allocation72_spill] sm:$0xff] %v5400_v22  ;;  %5793 = vst [vmem:[#allocation74_spill] sm:$0xff] %v5404_v52  ;;  %v5415_v54 = vstv %s5308_s3  ;;  %v5418_v6 = vstv %s5310_s19  ;;  %v2264_v33 = vmul.f32 %v2262_v21, %v5250_v25  ;;  %v2272_v27 = vmul.f32 %v2270_v56, %v5250_v25 }
 0x324   :  { %v5423_v45 = vstv %s5318_s20  ;;  %v5426_v38 = vstv %s5320_s22  ;;  %v5429_v48 = vstv %s5322_s24  ;;  %v5432_v12 = vstv %s5324_s4 }
 0x325   :  { %v5435_v16 = vstv %s5348_s26  ;;  %v5438_v28 = vstv %s5350_s27  ;;  %v5441_v26 = vstv %s5360_s29  ;;  %v5444_v23 = vstv %s5362_s30 }
 0x326   :  { %v1133_v24 = vpop.permute.xlu0 %1132  ;;  %v2285_v19 = vpop.permute.xlu1 %2284  ;;  %5794 = vst [vmem:[#allocation75_spill] sm:$0xff] %v5441_v26  ;;  %5795 = vst [vmem:[#allocation46_spill] sm:$0xff] %v5444_v23  ;;  %v5447_v29 = vstv %s5372_s8  ;;  %v5450_v25 = vstv %s5374_s9  ;;  %v1082_v9 = vadd.f32 %v1079_v35, %v1060_v5  ;;  %v1090_v15 = vadd.f32 %v1087_v62, %v1068_v36 }
 0x327   :  { %5796 = vst [vmem:[#allocation76_spill] sm:$0xff] %v5447_v29  ;;  %5797 = vst [vmem:[#allocation77_spill] sm:$0xff] %v5450_v25  ;;  %v1102_v50 = vmul.f32 %v1101_v53, %v5288_v32  ;;  %v1110_v43 = vmul.f32 %v1109_v18, %v5288_v32  ;;  %v2267_v58 = vadd.f32 %v2264_v33, %v5228_v2 }
 0x328   :  { %v2275_v52 = vadd.f32 %v2272_v27, %v5230_v40  ;;  %v2263_v22 = vmul.f32 %v2262_v21, %v5264_v55  ;;  %v2271_v1 = vmul.f32 %v2270_v56, %v5264_v55  ;;  %v1104_v17 = vmul.f32 %v1101_v53, %v5346_v34 }
 0x329   :  { %v1112_v29 = vmul.f32 %v1109_v18, %v5346_v34  ;;  %v1103_v25 = vmul.f32 %v1101_v53, %v1097_v8  ;;  %v1111_v5 = vmul.f32 %v1109_v18, %v1097_v8  ;;  %v2265_v35 = vmul.f32 %v2262_v21, %v5306_v7 }
 0x32a   :  { %v1137_v42 = vpop.permute.xlu0 %1136  ;;  %v1135_v36 = vpop.permute.xlu1 %1134  ;;  %v2273_v32 = vmul.f32 %v2270_v56, %v5306_v7  ;;  %v2289_v62 = vmul.f32 %v2287_v44, %v2283_v60  ;;  %v2297_v2 = vmul.f32 %v2295_v51, %v2283_v60  ;;  %v1105_v40 = vadd.f32 %v1102_v50, %v5364_v57 }
 0x32b   :  { %v1113_v33 = vadd.f32 %v1110_v43, %v5366_v4  ;;  %v2288_v27 = vmul.f32 %v2287_v44, %v2281_v11  ;;  %v2296_v55 = vmul.f32 %v2295_v51, %v2281_v11  ;;  %v2266_v41 = vadd.f32 %v2263_v22, %v5232_v61  ;;  %v5798_v11 = vld [vmem:[#allocation59_spill] sm:$0xff] }
 0x32c   :  { %v2274_v23 = vadd.f32 %v2271_v1, %v5234_v31  ;;  %v2290_v34 = vmul.f32 %v2287_v44, %v2285_v19  ;;  %v2298_v53 = vmul.f32 %v2295_v51, %v2285_v19  ;;  %v1107_v18 = vadd.f32 %v1104_v17, %v1082_v9  ;;  %v5799_v1 = vld [vmem:[#allocation60_spill] sm:$0xff]  ;;  %v5800_v51 = vld [vmem:[#allocation39_spill] sm:$0xff] }
 0x32d   :  { %v1115_v26 = vadd.f32 %v1112_v29, %v1090_v15  ;;  %v1106_v21 = vadd.f32 %v1103_v25, %v5368_v46  ;;  %v1114_v7 = vadd.f32 %v1111_v5, %v5370_v30  ;;  %v2268_v50 = vadd.f32 %v2265_v35, %v5270_v37  ;;  %v5801_v37 = vld [vmem:[#allocation61_spill] sm:$0xff] }
 0x32e   :  { %v2321_v8 = vpop.permute.xlu0 %2320  ;;  %v2319_v60 = vpop.permute.xlu1 %2318  ;;  %v2276_v57 = vadd.f32 %v2273_v32, %v5272_v10  ;;  %v2292_v4 = vadd.f32 %v2289_v62, %v2267_v58  ;;  %v2300_v43 = vadd.f32 %v2297_v2, %v2275_v52  ;;  %v2291_v56 = vadd.f32 %v2288_v27, %v2266_v41 }
 0x32f   :  { %v2299_v61 = vadd.f32 %v2296_v55, %v2274_v23  ;;  %v1121_v31 = vadd.f32 %v5798_v11, %v1105_v40  ;;  %v1129_v22 = vadd.f32 %v5799_v1, %v1113_v33  ;;  %v1140_v17 = vmul.f32 %v5415_v54, %v1133_v24 }
 0x330   :  { %v1148_v15 = vmul.f32 %v5418_v6, %v1133_v24  ;;  %v2293_v46 = vadd.f32 %v2290_v34, %v2268_v50  ;;  %v2301_v44 = vadd.f32 %v2298_v53, %v2276_v57  ;;  %v1123_v19 = vadd.f32 %v5800_v51, %v1107_v18  ;;  %v5803_v51 = vld [vmem:[#allocation46_spill] sm:$0xff] }
 0x331   :  { %v1131_v29 = vadd.f32 %v5801_v37, %v1115_v26  ;;  %v1122_v10 = vadd.f32 %v5282_v49, %v1106_v21  ;;  %v1130_v41 = vadd.f32 %v5286_v63, %v1114_v7  ;;  %v1142_v52 = vmul.f32 %v5415_v54, %v1137_v42 }
 0x332   :  { %v1158_v30 = vpop.permute.xlu0 %1157  ;;  %v2323_v58 = vpop.permute.xlu1 %2322  ;;  %v1150_v23 = vmul.f32 %v5418_v6, %v1137_v42  ;;  %v2308_v25 = vadd.f32 %v5376_v47, %v2292_v4  ;;  %v2316_v24 = vadd.f32 %v5378_v0, %v2300_v43  ;;  %v1141_v9 = vmul.f32 %v5415_v54, %v1135_v36 }
 0x333   :  { %v1149_v5 = vmul.f32 %v5418_v6, %v1135_v36  ;;  %v2307_v35 = vadd.f32 %v5380_v13, %v2291_v56  ;;  %v2315_v26 = vadd.f32 %v5382_v14, %v2299_v61  ;;  %v1143_v49 = vadd.f32 %v1140_v17, %v1121_v31 }
 0x334   :  { %v1151_v32 = vadd.f32 %v1148_v15, %v1129_v22  ;;  %v2309_v63 = vadd.f32 %v5384_v3, %v2293_v46  ;;  %v2317_v62 = vadd.f32 %v5386_v20, %v2301_v44  ;;  %v2327_v42 = vmul.f32 %v5423_v45, %v2321_v8  ;;  %v5802_v44 = vld [vmem:[#allocation75_spill] sm:$0xff] }
 0x335   :  { %v2335_v47 = vmul.f32 %v5426_v38, %v2321_v8  ;;  %v1165_v0 = vmul.f32 %v5429_v48, %v1158_v30  ;;  %v1173_v54 = vmul.f32 %v5432_v12, %v1158_v30  ;;  %v1145_v36 = vadd.f32 %v1142_v52, %v1123_v19  ;;  %v5805_v52 = vld [vmem:[#allocation73_spill] sm:$0xff] }
 0x336   :  { %v1162_v2 = vpop.permute.xlu0 %1161  ;;  %v1160_v6 = vpop.permute.xlu1 %1159  ;;  %v1153_v13 = vadd.f32 %v1150_v23, %v1131_v29  ;;  %v1144_v33 = vadd.f32 %v1141_v9, %v1122_v10  ;;  %v1152_v3 = vadd.f32 %v1149_v5, %v1130_v41  ;;  %v2326_v20 = vmul.f32 %v5423_v45, %v2319_v60  ;;  %v5804_v41 = vld [vmem:[#allocation66_spill] sm:$0xff] }
 0x337   :  { %v1167_v14 = vmul.f32 %v5429_v48, %v1162_v2  ;;  %v1175_v40 = vmul.f32 %v5432_v12, %v1162_v2  ;;  %v2334_v27 = vmul.f32 %v5426_v38, %v2319_v60  ;;  %v2328_v55 = vmul.f32 %v5423_v45, %v2323_v58 }
 0x338   :  { %v2336_v34 = vmul.f32 %v5426_v38, %v2323_v58  ;;  %v1166_v53 = vmul.f32 %v5429_v48, %v1160_v6  ;;  %v1174_v8 = vmul.f32 %v5432_v12, %v1160_v6  ;;  %v2330_v21 = vadd.f32 %v2327_v42, %v2308_v25 }
 0x339   :  { %v2338_v7 = vadd.f32 %v2335_v47, %v2316_v24  ;;  %v1168_v50 = vadd.f32 %v1165_v0, %v1143_v49  ;;  %v1176_v57 = vadd.f32 %v1173_v54, %v1151_v32  ;;  %v1170_v43 = vadd.f32 %v1167_v14, %v1145_v36  ;;  %v5807_v32 = vld [vmem:[#allocation68_spill] sm:$0xff] }
 0x33a   :  { %v2346_v18 = vpop.permute.xlu0 %2345  ;;  %v2344_v4 = vpop.permute.xlu1 %2343  ;;  %v1178_v56 = vadd.f32 %v1175_v40, %v1153_v13  ;;  %v2329_v11 = vadd.f32 %v2326_v20, %v2307_v35  ;;  %v2337_v45 = vadd.f32 %v2334_v27, %v2315_v26  ;;  %v2331_v31 = vadd.f32 %v2328_v55, %v2309_v63  ;;  %v5806_v26 = vld [vmem:[#allocation67_spill] sm:$0xff]  ;;  %v5808_v36 = vld [vmem:[#allocation72_spill] sm:$0xff]  ;;  %v5809_v13 = vld [vmem:[#allocation74_spill] sm:$0xff] }
 0x33b   :  { %v2352_v61 = vmul.f32 %v5435_v16, %v2346_v18  ;;  %v2360_v60 = vmul.f32 %v5438_v28, %v2346_v18  ;;  %v2351_v38 = vmul.f32 %v5435_v16, %v2344_v4  ;;  %v2359_v48 = vmul.f32 %v5438_v28, %v2344_v4  ;;  %v5811_v20 = vld [vmem:[#allocation71_spill] sm:$0xff]  ;;  %v5813_v4 = vld [vmem:[#allocation77_spill] sm:$0xff] }
 0x33c   :  { %v2339_v12 = vadd.f32 %v2336_v34, %v2317_v62  ;;  %v1169_v1 = vadd.f32 %v1166_v53, %v1144_v33  ;;  %v1177_v22 = vadd.f32 %v1174_v8, %v1152_v3  ;;  %v1184_v15 = vadd.f32 %v5296_v39, %v1168_v50  ;;  %v5810_v33 = vld [vmem:[#allocation43_spill] sm:$0xff]  ;;  %v5812_v50 = vld [vmem:[#allocation76_spill] sm:$0xff] }
 0x33d   :  { %v1192_v46 = vadd.f32 %v5300_v59, %v1176_v57  ;;  %v2355_v29 = vadd.f32 %v2352_v61, %v2330_v21  ;;  %v2363_v10 = vadd.f32 %v2360_v60, %v2338_v7  ;;  %v1186_v58 = vadd.f32 %v5804_v41, %v1170_v43 }
 0x33e   :  { %v1196_v17 = vpop.permute.xlu0 %1195  ;;  %v2348_v37 = vpop.permute.xlu1 %2347  ;;  %v1194_v23 = vadd.f32 %v5805_v52, %v1178_v56  ;;  %v2354_v25 = vadd.f32 %v2351_v38, %v2329_v11  ;;  %v2362_v24 = vadd.f32 %v2359_v48, %v2337_v45  ;;  %v1185_v49 = vadd.f32 %v5806_v26, %v1169_v1 }
 0x33f   :  { %v1203_v30 = vmul.f32 %v5802_v44, %v1196_v17  ;;  %v1211_v19 = vmul.f32 %v5803_v51, %v1196_v17  ;;  %v2353_v35 = vmul.f32 %v5435_v16, %v2348_v37  ;;  %v2361_v39 = vmul.f32 %v5438_v28, %v2348_v37 }
 0x340   :  { %v1193_v63 = vadd.f32 %v5807_v32, %v1177_v22  ;;  %v2371_v16 = vadd.f32 %v5808_v36, %v2355_v29  ;;  %v2379_v28 = vadd.f32 %v5809_v13, %v2363_v10  ;;  %v2370_v3 = vadd.f32 %v5810_v33, %v2354_v25  ;;  %v5815_v22 = vld [vmem:[#allocation70_spill] sm:$0xff] }
 0x341   :  { %v1206_v9 = vadd.f32 %v1203_v30, %v1184_v15  ;;  %v1214_v5 = vadd.f32 %v1211_v19, %v1192_v46  ;;  %v2378_v27 = vadd.f32 %v5811_v20, %v2362_v24  ;;  %v2356_v55 = vadd.f32 %v2353_v35, %v2331_v31  ;;  %v2746_v31 = vld [vmem:[#allocation2 + $0x33] sm:$0xff] }
 0x342   :  { %v1200_v59 = vpop.permute.xlu0 %1199  ;;  %v1198_v0 = vpop.permute.xlu1 %1197  ;;  %v2364_v34 = vadd.f32 %v2361_v39, %v2339_v12  ;;  %v5814_v12 = vld [vmem:[#allocation69_spill] sm:$0xff]  ;;  %v2377_v17 = vmul.f32 %v2746_v31, %v5815_v22 }
 0x343   :  { %v1217_v62 = vmax.f32 %v1206_v9, 0.0  ;;  %v1224_v2 = vmax.f32 %v1214_v5, 0.0  ;;  %v1205_v42 = vmul.f32 %v5802_v44, %v1200_v59  ;;  %v1213_v47 = vmul.f32 %v5803_v51, %v1200_v59 }
 0x344   :  { %v1204_v54 = vmul.f32 %v5802_v44, %v1198_v0  ;;  %v1212_v6 = vmul.f32 %v5803_v51, %v1198_v0  ;;  %v2369_v1 = vmul.f32 %v2746_v31, %v5814_v12  ;;  %v2380_v19 = vadd.f32 %v2377_v17, %v2364_v34 }
 0x345   :  { %1221 = vst [vmem:[#allocation9 + $0x90] sm:$0xff] %v1217_v62  ;;  %1228 = vst [vmem:[#allocation9 + $0xa8] sm:$0xff] %v1224_v2  ;;  %v1208_v14 = vadd.f32 %v1205_v42, %v1186_v58  ;;  %v1216_v40 = vadd.f32 %v1213_v47, %v1194_v23 }
 0x346   :  { %v1207_v53 = vadd.f32 %v1204_v54, %v1185_v49  ;;  %v1215_v8 = vadd.f32 %v1212_v6, %v1193_v63  ;;  %v2384_v18 = vpop.permute.xlu0 %2383  ;;  %v2382_v56 = vpop.permute.xlu1 %2381  ;;  %v2372_v51 = vadd.f32 %v2369_v1, %v2356_v55 }
 0x347   :  { %v1219_v21 = vmax.f32 %v1208_v14, 0.0  ;;  %v1226_v7 = vmax.f32 %v1216_v40, 0.0  ;;  %v2390_v57 = vmul.f32 %v5812_v50, %v2384_v18  ;;  %v2398_v43 = vmul.f32 %v5813_v4, %v2384_v18 }
 0x348   :  { %v1218_v61 = vmax.f32 %v1207_v53, 0.0  ;;  %v1225_v60 = vmax.f32 %v1215_v8, 0.0  ;;  %v2389_v11 = vmul.f32 %v5812_v50, %v2382_v56  ;;  %v2397_v45 = vmul.f32 %v5813_v4, %v2382_v56 }
 0x349   :  { %1223 = vst [vmem:[#allocation9 + $0xa0] sm:$0xff] %v1219_v21  ;;  %1230 = vst [vmem:[#allocation9 + $0xb8] sm:$0xff] %v1226_v7  ;;  %v2393_v38 = vadd.f32 %v2390_v57, %v2371_v16  ;;  %v2401_v48 = vadd.f32 %v2398_v43, %v2379_v28 }
 0x34a   :  { %1222 = vst [vmem:[#allocation9 + $0x98] sm:$0xff] %v1218_v61  ;;  %1229 = vst [vmem:[#allocation9 + $0xb0] sm:$0xff] %v1225_v60  ;;  %v2392_v15 = vadd.f32 %v2389_v11, %v2370_v3  ;;  %v2400_v46 = vadd.f32 %v2397_v45, %v2378_v27  ;;  %v2386_v37 = vpop.permute.xlu1 %2385 }
 0x34b   :  { %v2404_v44 = vmax.f32 %v2393_v38, 0.0  ;;  %v2411_v30 = vmax.f32 %v2401_v48, 0.0  ;;  %v2391_v41 = vmul.f32 %v5812_v50, %v2386_v37  ;;  %v2399_v58 = vmul.f32 %v5813_v4, %v2386_v37 }
 0x34c   :  { %v2403_v29 = vmax.f32 %v2392_v15, 0.0  ;;  %v2410_v10 = vmax.f32 %v2400_v46, 0.0 }
 0x34d   :  { %2408 = vst [vmem:[#allocation9 + $0x68] sm:$0xff] %v2404_v44  ;;  %2415 = vst [vmem:[#allocation9 + $0x80] sm:$0xff] %v2411_v30  ;;  %v2394_v52 = vadd.f32 %v2391_v41, %v2372_v51  ;;  %v2402_v23 = vadd.f32 %v2399_v58, %v2380_v19 }
 0x34e   :  { %2407 = vst [vmem:[#allocation9 + $0x60] sm:$0xff] %v2403_v29  ;;  %2414 = vst [vmem:[#allocation9 + $0x78] sm:$0xff] %v2410_v10 }
 0x34f   :  { %v2405_v25 = vmax.f32 %v2394_v52, 0.0  ;;  %v2412_v24 = vmax.f32 %v2402_v23, 0.0 }
 0x351   :  { %2409 = vst [vmem:[#allocation9 + $0x70] sm:$0xff] %v2405_v25  ;;  %2416 = vst [vmem:[#allocation9 + $0x88] sm:$0xff] %v2412_v24 }
 0x352   :  { %2818 = shalt.err (!%p2815_p1)
}
 0x353   :  { %s2819_s6 = scalar_lea.hbm %s5545_s7, 3072 }
 0x354   :  { %p2820_p2 = scmp.ne.s32.totalorder %s5545_s7, %s2819_s6  ;;  %p2823_p3 = scmp.lt.u32.totalorder %s2819_s6, %s5545_s7 }
 0x356   :  { %p2825_p4 = pnand %p2823_p3, %p2820_p2 }
 0x358   :  { %2828 = shalt.err (!%p2825_p4)
}
 0x359   :  { %s2844_s13 = smov 128   ;;  %s2845_s14 = smov 8  }
 0x35a   :  { %2428 = dma.vmem_to_hbm [thread:$0]  %s2423_s1, 3072, %s5545_s7, [#allocation10], %s2844_s13, %s2844_s13, %s2845_s14  }
 0x35b   :  { %2831 = dma.done.wait [#allocation10], 3072  }
 0x35c   :  { %2832 = vsyncadd [#allocation10], 4294964224 }
 0x35d   :  { %2432 = vsyncpa [#allocation10], 1 }

</bundles_post_ra>
